<compile_context>
chip_gen: v7x
topology: tpu7x:2x2x1
jax: 0.10.0
libtpu: 0.0.40
codegen_flags: <defaults>
</compile_context>

<pallas_src>
import jax
import jax.numpy as jnp
from jax.experimental import pallas as pl
from jax.experimental.pallas import tpu as pltpu

C_PAD = 128   # lane width of the packed weight / activation slabs (== vreg lane count)
IN_W = 8      # narrow input-feature width (n_f <= 8)


# -----------------------------------------------------------------------------
# Fused Pallas kernel (factory closes over static depth / input width)
# -----------------------------------------------------------------------------
def _make_fused_kernel(nd, n_in):
    """nd = depth - 1 (levels below the stem); n_in = number of input features."""
    # stacked-weight indices (must match pack_kernel_params)
    w_enc = lambda d: d
    w_up = lambda i: nd + i
    w_fuse = lambda i: 2 * nd + i
    w_ppn = lambda i: 3 * nd + i
    w_heads = 4 * nd
    # stacked-bias indices
    b_stem = 0
    b_enc = lambda d: 1 + d
    b_up = lambda i: 1 + nd + i
    b_fuse = lambda i: 1 + 2 * nd + i
    b_ppn = lambda i: 1 + 3 * nd + i
    b_heads = 1 + 4 * nd

    def kernel(x_ref, ws_ref, w_ref, b_ref, enc_ref, dec_ref, heads_ref):
        bf16 = jnp.bfloat16

        def act(a, widx, bidx):
            # bf16 MXU matmul, f32 accumulate + bias + ReLU, single cast back to bf16.
            y = jnp.dot(a, w_ref[widx], preferred_element_type=jnp.float32)
            return jnp.maximum(y + b_ref[bidx], 0.0).astype(bf16)

        # ---- stem: tiny fan-in (n_in <= 8) -> VPU broadcast multiply-add -------
        x = x_ref[...]                                    # (tile_m, IN_W) f32
        ws = ws_ref[...]                                  # (IN_W, 128)   f32
        acc = x[:, 0:1] * ws[0:1, :]
        for k in range(1, n_in):
            acc = acc + x[:, k:k + 1] * ws[k:k + 1, :]
        stem = jnp.maximum(acc + b_ref[b_stem], 0.0).astype(bf16)   # lanes [0:planes0]

        # ---- encoder chain (each level lands at its own slab-A lane offset) ----
        enc = [stem]
        for d in range(nd):
            enc.append(act(enc[d], w_enc(d), b_enc(d)))

        a_slab = enc[0]
        for d in range(1, nd + 1):
            a_slab = a_slab + enc[d]                      # disjoint lanes -> exact
        enc_ref[...] = a_slab                             # bf16 store (slab A)

        # ---- decoder: up + skip live in disjoint lanes -> single fuse matmul ---
        y = enc[nd]
        dec, b_slab = [], None
        for i in range(nd):
            up = act(y, w_up(i), b_up(i))                 # lanes right after skip's
            comb = up + enc[nd - 1 - i]                   # skip at its slab-A lanes
            z = act(comb, w_fuse(i), b_fuse(i))           # dec_i at its slab-B lanes
            dec.append(z)
            b_slab = z if b_slab is None else b_slab + z
            y = z

        # ---- PPN per-level convs (land at their slab-B lane offsets) -----------
        for i in range(nd):
            b_slab = b_slab + act(dec[i], w_ppn(i), b_ppn(i))
        dec_ref[...] = b_slab                             # bf16 store (slab B)

        # ---- all heads in ONE matmul over slab B (unused rows are zero) --------
        heads = (jnp.dot(b_slab, w_ref[w_heads], preferred_element_type=jnp.float32)
                 + b_ref[b_heads])
        heads_ref[...] = heads[:, :heads_ref.shape[1]]    # f32, narrow lane-dense slab

    return kernel


def fused_forward_call(packed, feats, *, tile_m=512):
    """Run the fused kernel over voxel tiles; returns (slab_a, slab_b, heads) trimmed to N."""
    nd = packed["nd"]
    n_in = packed["n_in"]
    heads_w = packed["heads_w"]
    n, n_f = feats.shape
    n_pad = pl.cdiv(n, tile_m) * tile_m

    x = jnp.zeros((n_pad, IN_W), jnp.float32)
    x = x.at[:n, :n_f].set(feats.astype(jnp.float32))

    nw = packed["W"].shape[0]
    nb = packed["B"].shape[0]

    outs = pl.pallas_call(
        _make_fused_kernel(nd, n_in),
        out_shape=[
            jax.ShapeDtypeStruct((n_pad, C_PAD), jnp.bfloat16),    # slab A (encoder)
            jax.ShapeDtypeStruct((n_pad, C_PAD), jnp.bfloat16),    # slab B (dec + ppn)
            jax.ShapeDtypeStruct((n_pad, heads_w), jnp.float32),   # heads
        ],
        grid_spec=pltpu.PrefetchScalarGridSpec(
            num_scalar_prefetch=0,
            grid=(n_pad // tile_m,),
            in_specs=[
                pl.BlockSpec((tile_m, IN_W), lambda i: (i, 0)),        # voxel tile (narrow)
                pl.BlockSpec((IN_W, C_PAD), lambda i: (0, 0)),         # stem weight (resident)
                pl.BlockSpec((nw, C_PAD, C_PAD), lambda i: (0, 0, 0)),  # stacked weights
                pl.BlockSpec((nb, 1, C_PAD), lambda i: (0, 0, 0)),      # stacked biases
            ],
            out_specs=[
                pl.BlockSpec((tile_m, C_PAD), lambda i: (i, 0)),
                pl.BlockSpec((tile_m, C_PAD), lambda i: (i, 0)),
                pl.BlockSpec((tile_m, heads_w), lambda i: (i, 0)),
            ],
        ),
        compiler_params=pltpu.CompilerParams(
            dimension_semantics=("parallel",),
            # ~3 MiB actually needed at tile_m=512; 48 MiB leaves headroom for larger tiles
            # and stays inside v7x's 64 MiB VMEM (v5e/v6e have 128 MiB).
            vmem_limit_bytes=48 * 1024 * 1024),
    )(x, packed["WS"], packed["W"], packed["B"])
    return [o[:n] for o in outs]


# -----------------------------------------------------------------------------
# Deterministic parameter construction (logical, unpadded)
# -----------------------------------------------------------------------------
def _init_linear(key, cin, cout, scale=None):
    kw, kb = jax.random.split(key)
    if scale is None:
        scale = 1.0 / jnp.sqrt(jnp.float32(cin))
    w = scale * jax.random.normal(kw, (cin, cout), dtype=jnp.float32)
    b = 0.01 * jax.random.normal(kb, (cout,), dtype=jnp.float32)
    return {"w": w, "b": b}


def make_params(num_input=1, num_filters=16, depth=3, num_classes=5, dim=3):
    key = jax.random.PRNGKey(42)
    keys = iter(jax.random.split(key, 64))
    F = num_filters
    planes = [F * (2 ** d) for d in range(depth)]            # e.g. [16, 32, 64]

    p = {"planes": planes, "num_classes": num_classes, "dim": dim}
    p["stem"] = _init_linear(next(keys), num_input, planes[0])
    p["enc"] = [_init_linear(next(keys), planes[d], planes[d + 1])
                for d in range(depth - 1)]
    p["dec_up"], p["dec_fuse"] = [], []
    for d in reversed(range(depth - 1)):                     # deepest first
        p["dec_up"].append(_init_linear(next(keys), planes[d + 1], planes[d]))
        p["dec_fuse"].append(_init_linear(next(keys), 2 * planes[d], planes[d]))
    p["seg"] = _init_linear(next(keys), planes[0], num_classes)

    dec_planes = [planes[d] for d in reversed(range(depth - 1))]
    p["ppn_conv"] = [_init_linear(next(keys), c, c) for c in dec_planes]
    p["ppn_mask"] = [_init_linear(next(keys), c, 2) for c in dec_planes]
    p["ppn_points"] = _init_linear(next(keys), planes[0], dim + 2 + num_classes)
    p["ppn_endpoints"] = _init_linear(next(keys), planes[0], 2)
    return p


# -----------------------------------------------------------------------------
# Pack logical params into the block-diagonal / lane-offset kernel weight layout
# -----------------------------------------------------------------------------
def pack_kernel_params(params):
    planes = params["planes"]
    nd = len(planes) - 1
    nc = params["num_classes"]
    dim = params["dim"]
    n_in = params["stem"]["w"].shape[0]

    # ---- lane layout --------------------------------------------------------
    enc_off = [0]
    for d in range(nd):
        enc_off.append(enc_off[-1] + planes[d])              # encoder level d at enc_off[d]
    dplanes = [planes[nd - 1 - i] for i in range(nd)]        # decoder widths, deepest first
    dec_off, off = [], 0
    for c in dplanes:
        dec_off.append(off); off += c
    ppn_off = []
    for c in dplanes:
        ppn_off.append(off); off += c
    # `up` for level i is placed right after its skip's lanes (disjoint by construction)
    up_off = [enc_off[nd - 1 - i] + dplanes[i] for i in range(nd)]

    off_pts = nc
    off_end = nc + dim + 2 + nc
    heads_used = off_end + 2 + 2 * nd
    heads_w = 32
    while heads_w < heads_used:
        heads_w *= 2

    assert n_in <= IN_W, "more than 8 input features needs a wider input slab"
    assert enc_off[nd] + planes[nd] <= C_PAD, "encoder slab exceeds 128 lanes"
    assert 2 * sum(dplanes) <= C_PAD, "decoder/ppn slab exceeds 128 lanes"
    assert all(up_off[i] + dplanes[i] <= C_PAD for i in range(nd)), "up placement overflows"
    assert heads_w <= C_PAD, "merged head exceeds one 128-lane slab"

    def pad_w(w, row_off, col_off, base=None):
        base = jnp.zeros((C_PAD, C_PAD), jnp.float32) if base is None else base
        r, c = w.shape
        return base.at[row_off:row_off + r, col_off:col_off + c].set(w)

    def pad_b(b, off_, base=None):
        base = jnp.zeros((C_PAD,), jnp.float32) if base is None else base
        return base.at[off_:off_ + b.shape[0]].set(b)

    # ---- stacked weights: [enc x nd | up x nd | fuse x nd | ppn x nd | heads] ----
    W = []
    for d in range(nd):
        W.append(pad_w(params["enc"][d]["w"], enc_off[d], enc_off[d + 1]))
    for i in range(nd):
        row = enc_off[nd] if i == 0 else dec_off[i - 1]
        W.append(pad_w(params["dec_up"][i]["w"], row, up_off[i]))
    for i in range(nd):
        c = dplanes[i]
        wf = params["dec_fuse"][i]["w"]                      # (2c, c): rows [up ; skip]
        w = pad_w(wf[:c], up_off[i], dec_off[i])
        w = pad_w(wf[c:], enc_off[nd - 1 - i], dec_off[i], base=w)
        W.append(w)
    for i in range(nd):
        W.append(pad_w(params["ppn_conv"][i]["w"], dec_off[i], ppn_off[i]))
    # merged heads weight: rows come from final decoder lanes + ppn lanes of slab B
    hw = pad_w(params["seg"]["w"], dec_off[nd - 1], 0)
    hw = pad_w(params["ppn_points"]["w"], dec_off[nd - 1], off_pts, base=hw)
    hw = pad_w(params["ppn_endpoints"]["w"], dec_off[nd - 1], off_end, base=hw)
    for i in range(nd):
        hw = pad_w(params["ppn_mask"][i]["w"], ppn_off[i], off_end + 2 + 2 * i, base=hw)
    W.append(hw)

    # ---- stacked biases: [stem | enc x nd | up x nd | fuse x nd | ppn x nd | heads] ----
    B = [pad_b(params["stem"]["b"], enc_off[0])]
    for d in range(nd):
        B.append(pad_b(params["enc"][d]["b"], enc_off[d + 1]))
    for i in range(nd):
        B.append(pad_b(params["dec_up"][i]["b"], up_off[i]))
    for i in range(nd):
        B.append(pad_b(params["dec_fuse"][i]["b"], dec_off[i]))
    for i in range(nd):
        B.append(pad_b(params["ppn_conv"][i]["b"], ppn_off[i]))
    hb = pad_b(params["seg"]["b"], 0)
    hb = pad_b(params["ppn_points"]["b"], off_pts, base=hb)
    hb = pad_b(params["ppn_endpoints"]["b"], off_end, base=hb)
    for i in range(nd):
        hb = pad_b(params["ppn_mask"][i]["b"], off_end + 2 + 2 * i, base=hb)
    B.append(hb)

    # narrow stem weight (kept f32 — applied on the VPU, not the MXU)
    ws = jnp.zeros((IN_W, C_PAD), jnp.float32).at[:n_in, :planes[0]].set(params["stem"]["w"])

    return {
        "W": jnp.stack(W).astype(jnp.bfloat16),              # (4*nd+1, 128, 128) bf16
        "B": jnp.stack(B).reshape(len(B), 1, C_PAD),         # (4*nd+2, 1, 128)   f32
        "WS": ws,                                            # (8, 128)           f32
        "nd": nd, "n_in": n_in, "planes": planes,
        "enc_off": enc_off, "dplanes": dplanes,
        "dec_off": dec_off, "ppn_off": ppn_off,
        "heads_w": heads_w, "off_pts": off_pts, "off_end": off_end,
    }


# -----------------------------------------------------------------------------
# Forward pass (mirrors UResNetPPN.forward: backbone -> PPN -> merged result)
# -----------------------------------------------------------------------------
def uresnet_ppn_forward(params, packed, data, *, tile_m=512):
    """data : (N, 1 + D + N_f) — [batch_id | D coords | features]  (ghost=False)."""
    dim = params["dim"]
    nc = params["num_classes"]
    planes = packed["planes"]
    nd = packed["nd"]
    enc_off, dec_off, ppn_off = packed["enc_off"], packed["dec_off"], packed["ppn_off"]
    dplanes, off_end = packed["dplanes"], packed["off_end"]

    coords = data[:, :1 + dim]                  # (N, 1 + D) batch id + coords
    feats = data[:, 1 + dim:]                   # (N, N_f)   voxel features

    slab_a, slab_b, heads = fused_forward_call(packed, feats, tile_m=tile_m)

    encoder_tensors = [slab_a[:, enc_off[d]:enc_off[d] + planes[d]] for d in range(nd + 1)]
    decoder_tensors = [slab_b[:, dec_off[i]:dec_off[i] + dplanes[i]] for i in range(nd)]
    ppn_layers = [slab_b[:, ppn_off[i]:ppn_off[i] + dplanes[i]] for i in range(nd)]

    final_tensor = decoder_tensors[-1]
    segmentation = heads[:, :nc]
    raw = heads[:, nc:nc + dim + 2 + nc]
    offsets = raw[:, :dim]
    score_logits = raw[:, dim:dim + 2]
    type_logits = raw[:, dim + 2:dim + 2 + nc]
    endpoints = heads[:, off_end:off_end + 2]
    ppn_masks = [heads[:, off_end + 2 + 2 * i: off_end + 4 + 2 * i] for i in range(nd)]
    points = coords[:, 1:1 + dim].astype(jnp.float32) + offsets

    return {
        "segmentation": segmentation,
        "final_tensor": final_tensor,
        "encoder_tensors": encoder_tensors,
        "decoder_tensors": decoder_tensors,
        "ppn_points": jnp.concatenate([points, score_logits, type_logits], axis=1),
        "ppn_masks": ppn_masks,
        "ppn_layers": ppn_layers,
        "ppn_coords": coords,
        "ppn_classify_endpoints": endpoints,
    }


# -----------------------------------------------------------------------------
# Pure-JAX f32 reference (layer-by-layer, mirrors the original module exactly)
# -----------------------------------------------------------------------------
def reference_forward(params, data):
    dim = params["dim"]
    coords = data[:, :1 + dim]
    feats = data[:, 1 + dim:]

    def lin(x, l, relu):
        y = x @ l["w"] + l["b"]
        return jnp.maximum(y, 0.0) if relu else y

    x = lin(feats, params["stem"], True)
    encoder_tensors = [x]
    for l in params["enc"]:
        x = lin(x, l, True)
        encoder_tensors.append(x)

    decoder_tensors = []
    y = encoder_tensors[-1]
    for i in range(len(params["dec_up"])):
        skip = encoder_tensors[-(i + 2)]
        up = lin(y, params["dec_up"][i], True)
        cat = jnp.concatenate([up, skip], axis=1)
        y = lin(cat, params["dec_fuse"][i], True)
        decoder_tensors.append(y)

    final_tensor = decoder_tensors[-1]
    segmentation = lin(final_tensor, params["seg"], False)

    ppn_layers, ppn_masks = [], []
    for i, dec in enumerate(decoder_tensors):
        h = lin(dec, params["ppn_conv"][i], True)
        ppn_layers.append(h)
        ppn_masks.append(lin(h, params["ppn_mask"][i], False))

    raw = lin(final_tensor, params["ppn_points"], False)
    endpoints = lin(final_tensor, params["ppn_endpoints"], False)
    points = coords[:, 1:1 + dim] + raw[:, :dim]
    return {
        "segmentation": segmentation,
        "final_tensor": final_tensor,
        "ppn_points": jnp.concatenate([points, raw[:, dim:]], axis=1),
        "ppn_masks": ppn_masks,
        "ppn_classify_endpoints": endpoints,
    }


# -----------------------------------------------------------------------------
if __name__ == "__main__":
    N = 1000         # arbitrary voxel count (exercises N-padding / tail slicing)
    D = 3            # spatial dimensions
    N_F = 1          # features per voxel
    NUM_CLASSES = 5
    TILE_M = 512     # 2 grid tiles for N=1000 -> both v7x TensorCores busy; for large N
                     # raise to 1024 (v7x) or 1024-2048 (v5e/v6e, 128 MiB VMEM)

    key = jax.random.PRNGKey(0)
    k_batch, k_coord, k_feat = jax.random.split(key, 3)
    batch_ids = jax.random.randint(k_batch, (N, 1), 0, 2).astype(jnp.float32)
    coords = jax.random.randint(k_coord, (N, D), 0, 16).astype(jnp.float32)
    feats = jax.random.normal(k_feat, (N, N_F), dtype=jnp.float32)
    data = jnp.concatenate([batch_ids, coords, feats], axis=1)   # (N, 1+D+N_f)

    params = make_params(num_input=N_F, num_filters=16, depth=3,
                         num_classes=NUM_CLASSES, dim=D)
    packed = pack_kernel_params(params)

    result = uresnet_ppn_forward(params, packed, data, tile_m=TILE_M)
    jax.block_until_ready(result)

    # shape sanity checks
    assert result["segmentation"].shape == (N, NUM_CLASSES)
    assert result["final_tensor"].shape == (N, 16)
    assert result["ppn_points"].shape == (N, D + 2 + NUM_CLASSES)
    assert len(result["encoder_tensors"]) == 3
    assert len(result["decoder_tensors"]) == 2
    assert len(result["ppn_masks"]) == 2 and result["ppn_masks"][0].shape == (N, 2)
    assert result["ppn_classify_endpoints"].shape == (N, 2)

    # numerical check vs. pure-JAX f32 reference (kernel uses bf16 matmuls + bf16
    # intermediate slabs) — scale-aware tolerance instead of a loose flat 0.15
    ref = reference_forward(params, data)

    def check(name, a, b):
        a = a.astype(jnp.float32)
        err = float(jnp.max(jnp.abs(a - b)))
        tol = 0.05 + 0.04 * float(jnp.max(jnp.abs(b)))
        assert err < tol, f"{name}: max abs err {err} (tol {tol})"

    for k in ("segmentation", "final_tensor", "ppn_points", "ppn_classify_endpoints"):
        check(k, result[k], ref[k])
    for i, (a, b) in enumerate(zip(result["ppn_masks"], ref["ppn_masks"])):
        check(f"ppn_masks[{i}]", a, b)

    print("KERNEL_OK")
</pallas_src>

<mosaic_0001>
module attributes {stable_mosaic.version = 11 : i64} {
  func.func @kernel(%arg0: i32, %arg1: memref<512x8xf32, #tpu.memory_space<vmem>>, %arg2: memref<8x128xf32, #tpu.memory_space<vmem>>, %arg3: memref<9x128x128xbf16, #tpu.memory_space<vmem>>, %arg4: memref<10x1x128xf32, #tpu.memory_space<vmem>>, %arg5: memref<512x128xbf16, #tpu.memory_space<vmem>>, %arg6: memref<512x128xbf16, #tpu.memory_space<vmem>>, %arg7: memref<512x32xf32, #tpu.memory_space<vmem>>) attributes {dimension_semantics = [#tpu.dimension_semantics<parallel>], iteration_bounds = array<i64: 2>, scalar_prefetch = 0 : i64, scratch_operands = 0 : i64, tpu.core_type = #tpu.core_type<tc>, window_params = [{transform_indices = @transform_0, window_bounds = array<i64: 512, 8>}, {pipeline_mode = #tpu.pipeline_mode<synchronous>, transform_indices = @transform_1, window_bounds = array<i64: 8, 128>}, {pipeline_mode = #tpu.pipeline_mode<synchronous>, transform_indices = @transform_2, window_bounds = array<i64: 9, 128, 128>}, {pipeline_mode = #tpu.pipeline_mode<synchronous>, transform_indices = @transform_3, window_bounds = array<i64: 10, 1, 128>}, {transform_indices = @transform_4, window_bounds = array<i64: 512, 128>}, {transform_indices = @transform_5, window_bounds = array<i64: 512, 128>}, {transform_indices = @transform_6, window_bounds = array<i64: 512, 32>}]} {
    %c0 = arith.constant 0 : index
    %c0_0 = arith.constant 0 : index
    %0 = vector.load %arg1[%c0, %c0_0] : memref<512x8xf32, #tpu.memory_space<vmem>>, vector<512x8xf32>
    %c0_1 = arith.constant 0 : index
    %c0_2 = arith.constant 0 : index
    %1 = vector.load %arg2[%c0_1, %c0_2] : memref<8x128xf32, #tpu.memory_space<vmem>>, vector<8x128xf32>
    %2 = vector.extract_strided_slice %0 {offsets = [0, 0], sizes = [512, 1], strides = [1, 1]} : vector<512x8xf32> to vector<512x1xf32>
    %3 = vector.extract_strided_slice %1 {offsets = [0, 0], sizes = [1, 128], strides = [1, 1]} : vector<8x128xf32> to vector<1x128xf32>
    %4 = vector.broadcast %2 : vector<512x1xf32> to vector<512x128xf32>
    %5 = vector.broadcast %3 : vector<1x128xf32> to vector<512x128xf32>
    %6 = arith.mulf %4, %5 : vector<512x128xf32>
    %c0_3 = arith.constant 0 : index
    %c0_4 = arith.constant 0 : index
    %c0_5 = arith.constant 0 : index
    %7 = vector.load %arg4[%c0_3, %c0_4, %c0_5] : memref<10x1x128xf32, #tpu.memory_space<vmem>>, vector<1x1x128xf32>
    %8 = vector.shape_cast %7 : vector<1x1x128xf32> to vector<1x128xf32>
    %9 = vector.broadcast %8 : vector<1x128xf32> to vector<512x128xf32>
    %10 = arith.addf %6, %9 : vector<512x128xf32>
    %cst = arith.constant 0.000000e+00 : f32
    %11 = vector.broadcast %cst : f32 to vector<512x128xf32>
    %12 = arith.maximumf %10, %11 : vector<512x128xf32>
    %13 = arith.truncf %12 : vector<512x128xf32> to vector<512x128xbf16>
    %c0_6 = arith.constant 0 : index
    %c0_7 = arith.constant 0 : index
    %c0_8 = arith.constant 0 : index
    %14 = vector.load %arg3[%c0_6, %c0_7, %c0_8] : memref<9x128x128xbf16, #tpu.memory_space<vmem>>, vector<1x128x128xbf16>
    %15 = vector.shape_cast %14 : vector<1x128x128xbf16> to vector<128x128xbf16>
    %cst_9 = arith.constant dense<0.000000e+00> : vector<512x128xf32>
    %16 = tpu.matmul %13, %15, %cst_9 {dimension_numbers = #tpu.dot_dimension_numbers<[1], [0], [0], [1], [0, 0, 1, 1], [], []>} : vector<512x128xbf16>, vector<128x128xbf16>, vector<512x128xf32> -> vector<512x128xf32>
    %c1 = arith.constant 1 : index
    %c0_10 = arith.constant 0 : index
    %c0_11 = arith.constant 0 : index
    %17 = vector.load %arg4[%c1, %c0_10, %c0_11] : memref<10x1x128xf32, #tpu.memory_space<vmem>>, vector<1x1x128xf32>
    %18 = vector.shape_cast %17 : vector<1x1x128xf32> to vector<1x128xf32>
    %19 = vector.broadcast %18 : vector<1x128xf32> to vector<512x128xf32>
    %20 = arith.addf %16, %19 : vector<512x128xf32>
    %cst_12 = arith.constant 0.000000e+00 : f32
    %21 = vector.broadcast %cst_12 : f32 to vector<512x128xf32>
    %22 = arith.maximumf %20, %21 : vector<512x128xf32>
    %23 = arith.truncf %22 : vector<512x128xf32> to vector<512x128xbf16>
    %c1_13 = arith.constant 1 : index
    %c0_14 = arith.constant 0 : index
    %c0_15 = arith.constant 0 : index
    %24 = vector.load %arg3[%c1_13, %c0_14, %c0_15] : memref<9x128x128xbf16, #tpu.memory_space<vmem>>, vector<1x128x128xbf16>
    %25 = vector.shape_cast %24 : vector<1x128x128xbf16> to vector<128x128xbf16>
    %cst_16 = arith.constant dense<0.000000e+00> : vector<512x128xf32>
    %26 = tpu.matmul %23, %25, %cst_16 {dimension_numbers = #tpu.dot_dimension_numbers<[1], [0], [0], [1], [0, 0, 1, 1], [], []>} : vector<512x128xbf16>, vector<128x128xbf16>, vector<512x128xf32> -> vector<512x128xf32>
    %c2 = arith.constant 2 : index
    %c0_17 = arith.constant 0 : index
    %c0_18 = arith.constant 0 : index
    %27 = vector.load %arg4[%c2, %c0_17, %c0_18] : memref<10x1x128xf32, #tpu.memory_space<vmem>>, vector<1x1x128xf32>
    %28 = vector.shape_cast %27 : vector<1x1x128xf32> to vector<1x128xf32>
    %29 = vector.broadcast %28 : vector<1x128xf32> to vector<512x128xf32>
    %30 = arith.addf %26, %29 : vector<512x128xf32>
    %cst_19 = arith.constant 0.000000e+00 : f32
    %31 = vector.broadcast %cst_19 : f32 to vector<512x128xf32>
    %32 = arith.maximumf %30, %31 : vector<512x128xf32>
    %33 = arith.truncf %32 : vector<512x128xf32> to vector<512x128xbf16>
    %34 = arith.addf %13, %23 : vector<512x128xbf16>
    %35 = arith.addf %34, %33 : vector<512x128xbf16>
    %c0_20 = arith.constant 0 : index
    %c0_21 = arith.constant 0 : index
    %36 = vector.load %arg5[%c0_20, %c0_21] : memref<512x128xbf16, #tpu.memory_space<vmem>>, vector<512x128xbf16>
    tpu.vector_store %arg5[%c0_20, %c0_21], %35 {strides = array<i32>} : memref<512x128xbf16, #tpu.memory_space<vmem>>, vector<512x128xbf16>,
    %c2_22 = arith.constant 2 : index
    %c0_23 = arith.constant 0 : index
    %c0_24 = arith.constant 0 : index
    %37 = vector.load %arg3[%c2_22, %c0_23, %c0_24] : memref<9x128x128xbf16, #tpu.memory_space<vmem>>, vector<1x128x128xbf16>
    %38 = vector.shape_cast %37 : vector<1x128x128xbf16> to vector<128x128xbf16>
    %cst_25 = arith.constant dense<0.000000e+00> : vector<512x128xf32>
    %39 = tpu.matmul %33, %38, %cst_25 {dimension_numbers = #tpu.dot_dimension_numbers<[1], [0], [0], [1], [0, 0, 1, 1], [], []>} : vector<512x128xbf16>, vector<128x128xbf16>, vector<512x128xf32> -> vector<512x128xf32>
    %c3 = arith.constant 3 : index
    %c0_26 = arith.constant 0 : index
    %c0_27 = arith.constant 0 : index
    %40 = vector.load %arg4[%c3, %c0_26, %c0_27] : memref<10x1x128xf32, #tpu.memory_space<vmem>>, vector<1x1x128xf32>
    %41 = vector.shape_cast %40 : vector<1x1x128xf32> to vector<1x128xf32>
    %42 = vector.broadcast %41 : vector<1x128xf32> to vector<512x128xf32>
    %43 = arith.addf %39, %42 : vector<512x128xf32>
    %cst_28 = arith.constant 0.000000e+00 : f32
    %44 = vector.broadcast %cst_28 : f32 to vector<512x128xf32>
    %45 = arith.maximumf %43, %44 : vector<512x128xf32>
    %46 = arith.truncf %45 : vector<512x128xf32> to vector<512x128xbf16>
    %47 = arith.addf %46, %23 : vector<512x128xbf16>
    %c4 = arith.constant 4 : index
    %c0_29 = arith.constant 0 : index
    %c0_30 = arith.constant 0 : index
    %48 = vector.load %arg3[%c4, %c0_29, %c0_30] : memref<9x128x128xbf16, #tpu.memory_space<vmem>>, vector<1x128x128xbf16>
    %49 = vector.shape_cast %48 : vector<1x128x128xbf16> to vector<128x128xbf16>
    %cst_31 = arith.constant dense<0.000000e+00> : vector<512x128xf32>
    %50 = tpu.matmul %47, %49, %cst_31 {dimension_numbers = #tpu.dot_dimension_numbers<[1], [0], [0], [1], [0, 0, 1, 1], [], []>} : vector<512x128xbf16>, vector<128x128xbf16>, vector<512x128xf32> -> vector<512x128xf32>
    %c5 = arith.constant 5 : index
    %c0_32 = arith.constant 0 : index
    %c0_33 = arith.constant 0 : index
    %51 = vector.load %arg4[%c5, %c0_32, %c0_33] : memref<10x1x128xf32, #tpu.memory_space<vmem>>, vector<1x1x128xf32>
    %52 = vector.shape_cast %51 : vector<1x1x128xf32> to vector<1x128xf32>
    %53 = vector.broadcast %52 : vector<1x128xf32> to vector<512x128xf32>
    %54 = arith.addf %50, %53 : vector<512x128xf32>
    %cst_34 = arith.constant 0.000000e+00 : f32
    %55 = vector.broadcast %cst_34 : f32 to vector<512x128xf32>
    %56 = arith.maximumf %54, %55 : vector<512x128xf32>
    %57 = arith.truncf %56 : vector<512x128xf32> to vector<512x128xbf16>
    %c3_35 = arith.constant 3 : index
    %c0_36 = arith.constant 0 : index
    %c0_37 = arith.constant 0 : index
    %58 = vector.load %arg3[%c3_35, %c0_36, %c0_37] : memref<9x128x128xbf16, #tpu.memory_space<vmem>>, vector<1x128x128xbf16>
    %59 = vector.shape_cast %58 : vector<1x128x128xbf16> to vector<128x128xbf16>
    %cst_38 = arith.constant dense<0.000000e+00> : vector<512x128xf32>
    %60 = tpu.matmul %57, %59, %cst_38 {dimension_numbers = #tpu.dot_dimension_numbers<[1], [0], [0], [1], [0, 0, 1, 1], [], []>} : vector<512x128xbf16>, vector<128x128xbf16>, vector<512x128xf32> -> vector<512x128xf32>
    %c4_39 = arith.constant 4 : index
    %c0_40 = arith.constant 0 : index
    %c0_41 = arith.constant 0 : index
    %61 = vector.load %arg4[%c4_39, %c0_40, %c0_41] : memref<10x1x128xf32, #tpu.memory_space<vmem>>, vector<1x1x128xf32>
    %62 = vector.shape_cast %61 : vector<1x1x128xf32> to vector<1x128xf32>
    %63 = vector.broadcast %62 : vector<1x128xf32> to vector<512x128xf32>
    %64 = arith.addf %60, %63 : vector<512x128xf32>
    %cst_42 = arith.constant 0.000000e+00 : f32
    %65 = vector.broadcast %cst_42 : f32 to vector<512x128xf32>
    %66 = arith.maximumf %64, %65 : vector<512x128xf32>
    %67 = arith.truncf %66 : vector<512x128xf32> to vector<512x128xbf16>
    %68 = arith.addf %67, %13 : vector<512x128xbf16>
    %c5_43 = arith.constant 5 : index
    %c0_44 = arith.constant 0 : index
    %c0_45 = arith.constant 0 : index
    %69 = vector.load %arg3[%c5_43, %c0_44, %c0_45] : memref<9x128x128xbf16, #tpu.memory_space<vmem>>, vector<1x128x128xbf16>
    %70 = vector.shape_cast %69 : vector<1x128x128xbf16> to vector<128x128xbf16>
    %cst_46 = arith.constant dense<0.000000e+00> : vector<512x128xf32>
    %71 = tpu.matmul %68, %70, %cst_46 {dimension_numbers = #tpu.dot_dimension_numbers<[1], [0], [0], [1], [0, 0, 1, 1], [], []>} : vector<512x128xbf16>, vector<128x128xbf16>, vector<512x128xf32> -> vector<512x128xf32>
    %c6 = arith.constant 6 : index
    %c0_47 = arith.constant 0 : index
    %c0_48 = arith.constant 0 : index
    %72 = vector.load %arg4[%c6, %c0_47, %c0_48] : memref<10x1x128xf32, #tpu.memory_space<vmem>>, vector<1x1x128xf32>
    %73 = vector.shape_cast %72 : vector<1x1x128xf32> to vector<1x128xf32>
    %74 = vector.broadcast %73 : vector<1x128xf32> to vector<512x128xf32>
    %75 = arith.addf %71, %74 : vector<512x128xf32>
    %cst_49 = arith.constant 0.000000e+00 : f32
    %76 = vector.broadcast %cst_49 : f32 to vector<512x128xf32>
    %77 = arith.maximumf %75, %76 : vector<512x128xf32>
    %78 = arith.truncf %77 : vector<512x128xf32> to vector<512x128xbf16>
    %79 = arith.addf %57, %78 : vector<512x128xbf16>
    %c6_50 = arith.constant 6 : index
    %c0_51 = arith.constant 0 : index
    %c0_52 = arith.constant 0 : index
    %80 = vector.load %arg3[%c6_50, %c0_51, %c0_52] : memref<9x128x128xbf16, #tpu.memory_space<vmem>>, vector<1x128x128xbf16>
    %81 = vector.shape_cast %80 : vector<1x128x128xbf16> to vector<128x128xbf16>
    %cst_53 = arith.constant dense<0.000000e+00> : vector<512x128xf32>
    %82 = tpu.matmul %57, %81, %cst_53 {dimension_numbers = #tpu.dot_dimension_numbers<[1], [0], [0], [1], [0, 0, 1, 1], [], []>} : vector<512x128xbf16>, vector<128x128xbf16>, vector<512x128xf32> -> vector<512x128xf32>
    %c7 = arith.constant 7 : index
    %c0_54 = arith.constant 0 : index
    %c0_55 = arith.constant 0 : index
    %83 = vector.load %arg4[%c7, %c0_54, %c0_55] : memref<10x1x128xf32, #tpu.memory_space<vmem>>, vector<1x1x128xf32>
    %84 = vector.shape_cast %83 : vector<1x1x128xf32> to vector<1x128xf32>
    %85 = vector.broadcast %84 : vector<1x128xf32> to vector<512x128xf32>
    %86 = arith.addf %82, %85 : vector<512x128xf32>
    %cst_56 = arith.constant 0.000000e+00 : f32
    %87 = vector.broadcast %cst_56 : f32 to vector<512x128xf32>
    %88 = arith.maximumf %86, %87 : vector<512x128xf32>
    %89 = arith.truncf %88 : vector<512x128xf32> to vector<512x128xbf16>
    %90 = arith.addf %79, %89 : vector<512x128xbf16>
    %c7_57 = arith.constant 7 : index
    %c0_58 = arith.constant 0 : index
    %c0_59 = arith.constant 0 : index
    %91 = vector.load %arg3[%c7_57, %c0_58, %c0_59] : memref<9x128x128xbf16, #tpu.memory_space<vmem>>, vector<1x128x128xbf16>
    %92 = vector.shape_cast %91 : vector<1x128x128xbf16> to vector<128x128xbf16>
    %cst_60 = arith.constant dense<0.000000e+00> : vector<512x128xf32>
    %93 = tpu.matmul %78, %92, %cst_60 {dimension_numbers = #tpu.dot_dimension_numbers<[1], [0], [0], [1], [0, 0, 1, 1], [], []>} : vector<512x128xbf16>, vector<128x128xbf16>, vector<512x128xf32> -> vector<512x128xf32>
    %c8 = arith.constant 8 : index
    %c0_61 = arith.constant 0 : index
    %c0_62 = arith.constant 0 : index
    %94 = vector.load %arg4[%c8, %c0_61, %c0_62] : memref<10x1x128xf32, #tpu.memory_space<vmem>>, vector<1x1x128xf32>
    %95 = vector.shape_cast %94 : vector<1x1x128xf32> to vector<1x128xf32>
    %96 = vector.broadcast %95 : vector<1x128xf32> to vector<512x128xf32>
    %97 = arith.addf %93, %96 : vector<512x128xf32>
    %cst_63 = arith.constant 0.000000e+00 : f32
    %98 = vector.broadcast %cst_63 : f32 to vector<512x128xf32>
    %99 = arith.maximumf %97, %98 : vector<512x128xf32>
    %100 = arith.truncf %99 : vector<512x128xf32> to vector<512x128xbf16>
    %101 = arith.addf %90, %100 : vector<512x128xbf16>
    %c0_64 = arith.constant 0 : index
    %c0_65 = arith.constant 0 : index
    %102 = vector.load %arg6[%c0_64, %c0_65] : memref<512x128xbf16, #tpu.memory_space<vmem>>, vector<512x128xbf16>
    tpu.vector_store %arg6[%c0_64, %c0_65], %101 {strides = array<i32>} : memref<512x128xbf16, #tpu.memory_space<vmem>>, vector<512x128xbf16>,
    %c8_66 = arith.constant 8 : index
    %c0_67 = arith.constant 0 : index
    %c0_68 = arith.constant 0 : index
    %103 = vector.load %arg3[%c8_66, %c0_67, %c0_68] : memref<9x128x128xbf16, #tpu.memory_space<vmem>>, vector<1x128x128xbf16>
    %104 = vector.shape_cast %103 : vector<1x128x128xbf16> to vector<128x128xbf16>
    %cst_69 = arith.constant dense<0.000000e+00> : vector<512x128xf32>
    %105 = tpu.matmul %101, %104, %cst_69 {dimension_numbers = #tpu.dot_dimension_numbers<[1], [0], [0], [1], [0, 0, 1, 1], [], []>} : vector<512x128xbf16>, vector<128x128xbf16>, vector<512x128xf32> -> vector<512x128xf32>
    %c9 = arith.constant 9 : index
    %c0_70 = arith.constant 0 : index
    %c0_71 = arith.constant 0 : index
    %106 = vector.load %arg4[%c9, %c0_70, %c0_71] : memref<10x1x128xf32, #tpu.memory_space<vmem>>, vector<1x1x128xf32>
    %107 = vector.shape_cast %106 : vector<1x1x128xf32> to vector<1x128xf32>
    %108 = vector.broadcast %107 : vector<1x128xf32> to vector<512x128xf32>
    %109 = arith.addf %105, %108 : vector<512x128xf32>
    %110 = vector.extract_strided_slice %109 {offsets = [0, 0], sizes = [512, 32], strides = [1, 1]} : vector<512x128xf32> to vector<512x32xf32>
    %c0_72 = arith.constant 0 : index
    %c0_73 = arith.constant 0 : index
    %111 = vector.load %arg7[%c0_72, %c0_73] : memref<512x32xf32, #tpu.memory_space<vmem>>, vector<512x32xf32>
    tpu.vector_store %arg7[%c0_72, %c0_73], %110 {strides = array<i32>} : memref<512x32xf32, #tpu.memory_space<vmem>>, vector<512x32xf32>,
    return
  }
  func.func @transform_0(%arg0: i32) -> (i32, i32) {
    %c0_i32 = arith.constant 0 : i32
    %c0_i32_0 = arith.constant 0 : i32
    return %arg0, %c0_i32 : i32, i32
  }
  func.func @transform_1(%arg0: i32) -> (i32, i32) {
    %c0_i32 = arith.constant 0 : i32
    %c0_i32_0 = arith.constant 0 : i32
    %c0_i32_1 = arith.constant 0 : i32
    return %c0_i32, %c0_i32_0 : i32, i32
  }
  func.func @transform_2(%arg0: i32) -> (i32, i32, i32) {
    %c0_i32 = arith.constant 0 : i32
    %c0_i32_0 = arith.constant 0 : i32
    %c0_i32_1 = arith.constant 0 : i32
    %c0_i32_2 = arith.constant 0 : i32
    return %c0_i32, %c0_i32_0, %c0_i32_1 : i32, i32, i32
  }
  func.func @transform_3(%arg0: i32) -> (i32, i32, i32) {
    %c0_i32 = arith.constant 0 : i32
    %c0_i32_0 = arith.constant 0 : i32
    %c0_i32_1 = arith.constant 0 : i32
    %c0_i32_2 = arith.constant 0 : i32
    return %c0_i32, %c0_i32_0, %c0_i32_1 : i32, i32, i32
  }
  func.func @transform_4(%arg0: i32) -> (i32, i32) {
    %c0_i32 = arith.constant 0 : i32
    %c0_i32_0 = arith.constant 0 : i32
    return %arg0, %c0_i32 : i32, i32
  }
  func.func @transform_5(%arg0: i32) -> (i32, i32) {
    %c0_i32 = arith.constant 0 : i32
    %c0_i32_0 = arith.constant 0 : i32
    return %arg0, %c0_i32 : i32, i32
  }
  func.func @transform_6(%arg0: i32) -> (i32, i32) {
    %c0_i32 = arith.constant 0 : i32
    %c0_i32_0 = arith.constant 0 : i32
    return %arg0, %c0_i32 : i32, i32
  }
}

</mosaic_0001>

<bundles_post_ra>
// kernel: tpu_custom_call.1
= control target key start
LH: loop header
LB: loop body
LE: loop exit
PB: predicated region body
PF: predicated region fallthrough
CT: control target
= control target key end

     0   :  { %12 = vsyncpa [#allocation3], 0  ;;  %s9813_s0 = inlined_call_operand.vmem [shape: f32[1024,8], index: 0, kind: input, shape index: {}]   ;;  %s9814_s1 = inlined_call_operand.vmem [shape: f32[8,128], index: 1, kind: input, shape index: {}]   ;;  %s9815_s2 = inlined_call_operand.vmem [shape: bf16[9,128,128], index: 2, kind: input, shape index: {}]   ;;  %s9816_s3 = inlined_call_operand.vmem [shape: f32[10,1,128], index: 3, kind: input, shape index: {}]   ;;  %s9817_s4 = inlined_call_operand.hbm [shape: bf16[1024,128], index: 4, kind: output, shape index: {0}]   ;;  %s9818_s5 = inlined_call_operand.hbm [shape: bf16[1024,128], index: 5, kind: output, shape index: {1}]   ;;  %s9819_s6 = inlined_call_operand.vmem [shape: f32[1024,32], index: 6, kind: output, shape index: {2}]  }
   0x1   :  { %14 = vsyncpa [#allocation3 + $0x1], 0 }
   0x2   :  { %15 = vsyncpa [#allocation5], 0 }
   0x3   :  { %17 = vsyncpa [#allocation5 + $0x1], 0  ;;  %s7672_s21 = smov 0   ;;  %s7674_s22 = smov 0  }
   0x4   :  { %s7676_s23 = smov 0   ;;  %s7678_s24 = smov 0  }
   0x5 LB: > { %s7693_s25 = sadd.s32 4294967295, %s7630_s24   ;;  %s5952_s26 = sadd.s32 4294967294, %s7630_s24   ;;  %s7630_s24 = sphi %s7678_s24, %s9979_s24   ;;  %s7626_s23 = sphi %s7676_s23, %s9978_s23   ;;  %s7622_s22 = sphi %s7674_s22, %s9977_s22   ;;  %s7618_s21 = sphi %s7672_s21, %s9976_s21  }
   0x6   : > { %s7697_s27 = sadd.s32 1, %s7630_s24   ;;  %s119_s28 = sadd.s32 1, %s7626_s23 }
   0x7   : > { %s116_s29 = ssub.s32 %s7630_s24, %s7697_s27  ;;  %p129_p0 = scmp.ne.s32.totalorder %s7626_s23, %s7622_s22 }
   0x8   : > { %p117_p1 = scmp.eq.s32.totalorder %s116_s29, 0  ;;  %p130_p2 = scmp.eq.s32.totalorder %s7693_s25, 1 }
   0x9   : > { %p135_p3 = scmp.ne.s32.totalorder %s7622_s22, %s7618_s21  ;;  %p136_p4 = scmp.eq.s32.totalorder %s5952_s26, 1 }
   0xa   : > { %s7708_s30 = scalar_select %p117_p1, %s7626_s23, %s119_s28  }
   0xb   : > { %p7710_p5 = por %p130_p2, %p129_p0  ;;  %p7714_p6 = por %p136_p4, %p135_p3 }
   0xc   : > { %p5955_p7 = scmp.ge.s32.totalorder %s7630_s24, 1  ;;  %p224_p8 = scmp.lt.s32.totalorder %s7630_s24, 3 }
   0xe   : > { %p225_p9 = pnand %p5955_p7, %p224_p8 }
  0x10   : > { %228 = sbr.rel (%p225_p9) target bundleno = 2069 (0x815), region = 36 }
  0x17   : > { %s5958_s9 = sshll.u32 %s7693_s25, 6  ;;  %v7632_v0 = vmov 0   ;;  %v7464_v1 = vld [vmem:[%s9815_s2] sm:$0xff]   ;;  %v7465_v2 = vld [vmem:[%s9815_s2 + $0x8] sm:$0xff]   ;;  %v7466_v3 = vld [vmem:[%s9815_s2 + $0x10] sm:$0xff]   ;;  %s8282_s26 = sand.u32 1, %s7622_s22  }
  0x18   : > { %7463 = vset.pattern.permute.xlu1 %v7632_v0  ;;  %7462 = vset.pattern.permute.xlu0 %v7632_v0  ;;  %p265_p10 = scmp.lt.s32.totalorder %s5958_s9, 127  ;;  %v7467_v8 = vld [vmem:[%s9815_s2 + $0x18] sm:$0xff]   ;;  %v7468_v11 = vld [vmem:[%s9815_s2 + $0x20] sm:$0xff]   ;;  %v7469_v20 = vld [vmem:[%s9815_s2 + $0x28] sm:$0xff]   ;;  %s5956_s11 = sshll.u32 %s8282_s26, 8  ;;  %vm5724_vm0 = vcmask 261120  }
  0x19   : > { %6679 = vmatprep.subr.bf16.mxu0 %v7464_v1  ;;  %7399 = vmatprep.subr.bf16.mxu1 %v7464_v1  ;;  %v7470_v21 = vld [vmem:[%s9815_s2 + $0x30] sm:$0xff]   ;;  %v7471_v24 = vld [vmem:[%s9815_s2 + $0x38] sm:$0xff]   ;;  %s8305_s15 = scalar_lea.vmem [#allocation2], %s5956_s11  ;;  %s9365_s16 = scalar_lea.vmem [#allocation4], %s5956_s11 }
  0x1a   : > { %s9981_s9 = smov (!%p265_p10, %s5958_s9), 127  ;;  %6680 = vmatpush3.bf16.msra.mxu0 %v7464_v1  ;;  %7407 = vmatpush3.bf16.msra.mxu1 %v7464_v1  ;;  %s6317_s28 = sshll.u32 %s7693_s25, 12 }
  0x1b   : > { %s5959_s14 = sshll.u32 %s9981_s9, 3  ;;  %6681 = vmatprep.subr.bf16.mxu0 %v7465_v2  ;;  %7400 = vmatprep.subr.bf16.mxu1 %v7465_v2  ;;  %s9535_s12 = scalar_lea.hbm %s9817_s4, %s6317_s28 }
  0x1c   : > { %s7738_s19 = scalar_lea.vmem %s9813_s0, %s5959_s14  ;;  %s9522_s18 = scalar_lea.vmem %s9819_s6, %s5959_s14 }
  0x1d   : > { %v281_v4 = vld [vmem:[%s7738_s19 + $0x10] sm:$0xff]  ;;  %v279_v5 = vld [vmem:[%s7738_s19] sm:$0xff]  ;;  %v282_v6 = vld [vmem:[%s7738_s19 + $0x18] sm:$0xff]  ;;  %s5813_s13 = sshll.u32 %s8305_s15, 4  ;;  %s5790_s9 = scalar_lea.sflag [#allocation3], %s8282_s26  ;;  %s9538_s13 = int_to_ptr.vmem [resolvable:$true] %s5813_s13 }
  0x1e   : > { %356 = vperm.xlu1 %7463, %v281_v4   ;;  %346 = vperm.xlu0 %7462, %v279_v5   ;;  %v280_v7 = vld [vmem:[%s7738_s19 + $0x8] sm:$0xff]  ;;  %v283_v10 = vld [vmem:[%s7738_s19 + $0x20] sm:$0xff]  ;;  %v286_v12 = vld [vmem:[%s7738_s19 + $0x38] sm:$0xff]  ;;  %s7536_s14 = scalar_lea.vmem %s9538_s13, 4096 }
  0x1f   : > { %6682 = vmatpush3.bf16.msra.mxu0 %v7465_v2  ;;  %7408 = vmatpush3.bf16.msra.mxu1 %v7465_v2  ;;  %v284_v9 = vld [vmem:[%s7738_s19 + $0x28] sm:$0xff]  ;;  %v285_v13 = vld [vmem:[%s7738_s19 + $0x30] sm:$0xff]  ;;  %v287_v15 = vld [vmem:[%s7738_s19 + $0x40] sm:$0xff]  ;;  %p7537_p11 = scmp.ne.s32.totalorder %s9538_s13, %s7536_s14 }
  0x20   : > { %6683 = vmatprep.subr.bf16.mxu0 %v7466_v3  ;;  %7401 = vmatprep.subr.bf16.mxu1 %v7466_v3  ;;  %v288_v14 = vld [vmem:[%s7738_s19 + $0x48] sm:$0xff]  ;;  %v290_v16 = vld [vmem:[%s7738_s19 + $0x58] sm:$0xff]  ;;  %v289_v17 = vld [vmem:[%s7738_s19 + $0x50] sm:$0xff] }
  0x21   : > { %v292_v18 = vld [vmem:[%s7738_s19 + $0x68] sm:$0xff]  ;;  %v291_v19 = vld [vmem:[%s7738_s19 + $0x60] sm:$0xff]  ;;  %v294_v22 = vld [vmem:[%s7738_s19 + $0x78] sm:$0xff]  ;;  %p7538_p12 = pnand %p7537_p11, %p7710_p5 }
  0x22   : > { %361 = vperm.xlu1 %7463, %v282_v6   ;;  %351 = vperm.xlu0 %7462, %v280_v7   ;;  %v293_v23 = vld [vmem:[%s7738_s19 + $0x70] sm:$0xff]  ;;  %v296_v25 = vld [vmem:[%s7738_s19 + $0x88] sm:$0xff]  ;;  %v295_v26 = vld [vmem:[%s7738_s19 + $0x80] sm:$0xff] }
  0x23   : > { %6684 = vmatpush3.bf16.msra.mxu0 %v7466_v3  ;;  %7409 = vmatpush3.bf16.msra.mxu1 %v7466_v3  ;;  %v298_v27 = vld [vmem:[%s7738_s19 + $0x98] sm:$0xff]  ;;  %v297_v28 = vld [vmem:[%s7738_s19 + $0x90] sm:$0xff]  ;;  %v300_v29 = vld [vmem:[%s7738_s19 + $0xa8] sm:$0xff]  ;;  %v664_v3 = vlaneseq  ;;  %p7539_p13 = pneg %p7538_p12 }
  0x24   : > { %6685 = vmatprep.subr.bf16.mxu0 %v7467_v8  ;;  %7402 = vmatprep.subr.bf16.mxu1 %v7467_v8  ;;  %v299_v30 = vld [vmem:[%s7738_s19 + $0xa0] sm:$0xff]  ;;  %v302_v31 = vld [vmem:[%s7738_s19 + $0xb8] sm:$0xff]  ;;  %v301_v32 = vld [vmem:[%s7738_s19 + $0xb0] sm:$0xff] }
  0x25   : > { %v304_v33 = vld [vmem:[%s7738_s19 + $0xc8] sm:$0xff]  ;;  %v303_v34 = vld [vmem:[%s7738_s19 + $0xc0] sm:$0xff]  ;;  %v306_v35 = vld [vmem:[%s7738_s19 + $0xd8] sm:$0xff]  ;;  %v665_v6 = vshrl.u32 %v664_v3, 7 }
  0x26   : > { %371 = vperm.xlu1 %7463, %v284_v9   ;;  %366 = vperm.xlu0 %7462, %v283_v10   ;;  %v305_v36 = vld [vmem:[%s7738_s19 + $0xd0] sm:$0xff]  ;;  %v308_v37 = vld [vmem:[%s7738_s19 + $0xe8] sm:$0xff]  ;;  %v307_v38 = vld [vmem:[%s7738_s19 + $0xe0] sm:$0xff] }
  0x27   : > { %6686 = vmatpush3.bf16.msra.mxu0 %v7467_v8  ;;  %7410 = vmatpush3.bf16.msra.mxu1 %v7467_v8  ;;  %v310_v39 = vld [vmem:[%s7738_s19 + $0xf8] sm:$0xff]  ;;  %v309_v40 = vld [vmem:[%s7738_s19 + $0xf0] sm:$0xff]  ;;  %v312_v41 = vld [vmem:[%s7738_s19 + $0x108] sm:$0xff]  ;;  %v666_v9 = vsub.s32 0, %v665_v6 }
  0x28   : > { %6687 = vmatprep.subr.bf16.mxu0 %v7468_v11  ;;  %7403 = vmatprep.subr.bf16.mxu1 %v7468_v11  ;;  %v311_v42 = vld [vmem:[%s7738_s19 + $0x100] sm:$0xff]  ;;  %v314_v43 = vld [vmem:[%s7738_s19 + $0x118] sm:$0xff]  ;;  %v313_v44 = vld [vmem:[%s7738_s19 + $0x110] sm:$0xff] }
  0x29   : > { %v316_v45 = vld [vmem:[%s7738_s19 + $0x128] sm:$0xff]  ;;  %v315_v46 = vld [vmem:[%s7738_s19 + $0x120] sm:$0xff]  ;;  %v318_v47 = vld [vmem:[%s7738_s19 + $0x138] sm:$0xff] }
  0x2a   : > { %381 = vperm.xlu1 %7463, %v286_v12   ;;  %376 = vperm.xlu0 %7462, %v285_v13   ;;  %v317_v48 = vld [vmem:[%s7738_s19 + $0x130] sm:$0xff]  ;;  %v320_v49 = vld [vmem:[%s7738_s19 + $0x148] sm:$0xff]  ;;  %v319_v50 = vld [vmem:[%s7738_s19 + $0x140] sm:$0xff] }
  0x2b   : > { %6688 = vmatpush3.bf16.msra.mxu0 %v7468_v11  ;;  %7411 = vmatpush3.bf16.msra.mxu1 %v7468_v11  ;;  %v322_v51 = vld [vmem:[%s7738_s19 + $0x158] sm:$0xff]  ;;  %v321_v52 = vld [vmem:[%s7738_s19 + $0x150] sm:$0xff]  ;;  %v324_v53 = vld [vmem:[%s7738_s19 + $0x168] sm:$0xff] }
  0x2c   : > { %6689 = vmatprep.subr.bf16.mxu0 %v7469_v20  ;;  %7404 = vmatprep.subr.bf16.mxu1 %v7469_v20  ;;  %v323_v54 = vld [vmem:[%s7738_s19 + $0x160] sm:$0xff]  ;;  %v326_v55 = vld [vmem:[%s7738_s19 + $0x178] sm:$0xff]  ;;  %v325_v56 = vld [vmem:[%s7738_s19 + $0x170] sm:$0xff] }
  0x2d   : > { %v328_v57 = vld [vmem:[%s7738_s19 + $0x188] sm:$0xff]  ;;  %v327_v58 = vld [vmem:[%s7738_s19 + $0x180] sm:$0xff]  ;;  %v330_v59 = vld [vmem:[%s7738_s19 + $0x198] sm:$0xff] }
  0x2e   : > { %391 = vperm.xlu1 %7463, %v288_v14   ;;  %386 = vperm.xlu0 %7462, %v287_v15   ;;  %v329_v60 = vld [vmem:[%s7738_s19 + $0x190] sm:$0xff]  ;;  %v332_v61 = vld [vmem:[%s7738_s19 + $0x1a8] sm:$0xff]  ;;  %v331_v62 = vld [vmem:[%s7738_s19 + $0x1a0] sm:$0xff] }
  0x2f   : > { %6690 = vmatpush3.bf16.msra.mxu0 %v7469_v20  ;;  %7412 = vmatpush3.bf16.msra.mxu1 %v7469_v20  ;;  %v334_v63 = vld [vmem:[%s7738_s19 + $0x1b8] sm:$0xff]  ;;  %v333_v0 = vld [vmem:[%s7738_s19 + $0x1b0] sm:$0xff]  ;;  %v336_v1 = vld [vmem:[%s7738_s19 + $0x1c8] sm:$0xff] }
  0x30   : > { %6691 = vmatprep.subr.bf16.mxu0 %v7470_v21  ;;  %7405 = vmatprep.subr.bf16.mxu1 %v7470_v21  ;;  %v335_v2 = vld [vmem:[%s7738_s19 + $0x1c0] sm:$0xff]  ;;  %v338_v4 = vld [vmem:[%s7738_s19 + $0x1d8] sm:$0xff]  ;;  %v337_v5 = vld [vmem:[%s7738_s19 + $0x1d0] sm:$0xff] }
  0x31   : > { %v340_v7 = vld [vmem:[%s7738_s19 + $0x1e8] sm:$0xff]  ;;  %v339_v8 = vld [vmem:[%s7738_s19 + $0x1e0] sm:$0xff]  ;;  %v342_v10 = vld [vmem:[%s7738_s19 + $0x1f8] sm:$0xff] }
  0x32   : > { %401 = vperm.xlu1 %7463, %v290_v16   ;;  %396 = vperm.xlu0 %7462, %v289_v17   ;;  %v341_v11 = vld [vmem:[%s7738_s19 + $0x1f0] sm:$0xff]  ;;  %v343_v12 = vld [vmem:[%s9814_s1] sm:$0xff] }
  0x33   : > { %6692 = vmatpush3.bf16.msra.mxu0 %v7470_v21  ;;  %7413 = vmatpush3.bf16.msra.mxu1 %v7470_v21  ;;  %v7822_v13 = vrot.slane %v343_v12, %v666_v9  ;;  %v7827_v16 = vld [vmem:[%s9816_s3] ss:$0 sm:$0xff] }
  0x34   : > { %6693 = vmatprep.subr.bf16.mxu0 %v7471_v24  ;;  %7406 = vmatprep.subr.bf16.mxu1 %v7471_v24 }
  0x36   : > { %411 = vperm.xlu1 %7463, %v292_v18   ;;  %406 = vperm.xlu0 %7462, %v291_v19  }
  0x37   : > { %6694 = vmatpush3.bf16.msra.mxu0 %v7471_v24  ;;  %7414 = vmatpush3.bf16.msra.mxu1 %v7471_v24 }
  0x3a   : > { %421 = vperm.xlu1 %7463, %v294_v22   ;;  %416 = vperm.xlu0 %7462, %v293_v23  }
  0x3e   : > { %431 = vperm.xlu1 %7463, %v296_v25   ;;  %426 = vperm.xlu0 %7462, %v295_v26   ;;  %v7838_v25 = vld [vmem:[%s9815_s2 + $0x40] sm:$0xff]  }
  0x3f   : > { %6759 = vmatprep.subr.bf16.mxu1 %v7838_v25 }
  0x42   : > { %441 = vperm.xlu1 %7463, %v298_v27   ;;  %436 = vperm.xlu0 %7462, %v297_v28  }
  0x46   : > { %451 = vperm.xlu1 %7463, %v300_v29   ;;  %446 = vperm.xlu0 %7462, %v299_v30  }
  0x4a   : > { %461 = vperm.xlu1 %7463, %v302_v31   ;;  %456 = vperm.xlu0 %7462, %v301_v32  }
  0x4e   : > { %471 = vperm.xlu1 %7463, %v304_v33   ;;  %466 = vperm.xlu0 %7462, %v303_v34  }
  0x52   : > { %481 = vperm.xlu1 %7463, %v306_v35   ;;  %476 = vperm.xlu0 %7462, %v305_v36  }
  0x56   : > { %491 = vperm.xlu1 %7463, %v308_v37   ;;  %486 = vperm.xlu0 %7462, %v307_v38  }
  0x5a   : > { %501 = vperm.xlu1 %7463, %v310_v39   ;;  %496 = vperm.xlu0 %7462, %v309_v40  }
  0x5e   : > { %511 = vperm.xlu1 %7463, %v312_v41   ;;  %506 = vperm.xlu0 %7462, %v311_v42  }
  0x62   : > { %521 = vperm.xlu1 %7463, %v314_v43   ;;  %516 = vperm.xlu0 %7462, %v313_v44  }
  0x66   : > { %531 = vperm.xlu1 %7463, %v316_v45   ;;  %526 = vperm.xlu0 %7462, %v315_v46  }
  0x6a   : > { %541 = vperm.xlu1 %7463, %v318_v47   ;;  %536 = vperm.xlu0 %7462, %v317_v48  }
  0x6e   : > { %551 = vperm.xlu1 %7463, %v320_v49   ;;  %546 = vperm.xlu0 %7462, %v319_v50  }
  0x72   : > { %561 = vperm.xlu1 %7463, %v322_v51   ;;  %556 = vperm.xlu0 %7462, %v321_v52  }
  0x76   : > { %571 = vperm.xlu1 %7463, %v324_v53   ;;  %566 = vperm.xlu0 %7462, %v323_v54  }
  0x7a   : > { %581 = vperm.xlu1 %7463, %v326_v55   ;;  %576 = vperm.xlu0 %7462, %v325_v56  }
  0x7e   : > { %591 = vperm.xlu1 %7463, %v328_v57   ;;  %586 = vperm.xlu0 %7462, %v327_v58  }
  0x82   : > { %601 = vperm.xlu1 %7463, %v330_v59   ;;  %596 = vperm.xlu0 %7462, %v329_v60  }
  0x86   : > { %611 = vperm.xlu1 %7463, %v332_v61   ;;  %606 = vperm.xlu0 %7462, %v331_v62  }
  0x8a   : > { %621 = vperm.xlu1 %7463, %v334_v63   ;;  %616 = vperm.xlu0 %7462, %v333_v0  }
  0x8e   : > { %631 = vperm.xlu1 %7463, %v336_v1   ;;  %626 = vperm.xlu0 %7462, %v335_v2  }
  0x92   : > { %641 = vperm.xlu1 %7463, %v338_v4   ;;  %636 = vperm.xlu0 %7462, %v337_v5  }
  0x96   : > { %651 = vperm.xlu1 %7463, %v340_v7   ;;  %646 = vperm.xlu0 %7462, %v339_v8  }
  0x9a   : > { %661 = vperm.xlu1 %7463, %v342_v10   ;;  %656 = vperm.xlu0 %7462, %v341_v11  }
  0x9d   : > { %v357_v14 = vpop.permute.xlu1 %356  ;;  %v347_v15 = vpop.permute.xlu0 %346 }
  0x9e   : > { %v670_v17 = vmul.f32 %v7822_v13, %v357_v14  ;;  %v668_v18 = vmul.f32 %v7822_v13, %v347_v15 }
  0xa0   : > { %v741_v19 = vadd.f32 %v7827_v16, %v670_v17  ;;  %v739_v20 = vadd.f32 %v7827_v16, %v668_v18 }
  0xa1   : > { %v362_v21 = vpop.permute.xlu1 %361  ;;  %v352_v22 = vpop.permute.xlu0 %351 }
  0xa2   : > { %v671_v23 = vmul.f32 %v7822_v13, %v362_v21  ;;  %v669_v24 = vmul.f32 %v7822_v13, %v352_v22  ;;  %v805_v28 = vmax.f32 %v741_v19, 0.0  ;;  %v803_v29 = vmax.f32 %v739_v20, 0.0 }
  0xa4   : > { %v742_v26 = vadd.f32 %v7827_v16, %v671_v23  ;;  %v740_v27 = vadd.f32 %v7827_v16, %v669_v24 }
  0xa5   : > { %v372_v30 = vpop.permute.xlu1 %371  ;;  %v367_v31 = vpop.permute.xlu0 %366 }
  0xa6   : > { %v806_v32 = vmax.f32 %v742_v26, 0.0  ;;  %v804_v33 = vmax.f32 %v740_v27, 0.0  ;;  %v673_v34 = vmul.f32 %v7822_v13, %v372_v30  ;;  %v672_v35 = vmul.f32 %v7822_v13, %v367_v31 }
  0xa8   : > { %v744_v36 = vadd.f32 %v7827_v16, %v673_v34  ;;  %v743_v37 = vadd.f32 %v7827_v16, %v672_v35  ;;  %v7847_v38 = vpack.c.bf16 %v804_v33, %v803_v29  ;;  %v7849_v39 = vpack.c.bf16 %v806_v32, %v805_v28 }
  0xa9   : > { %v382_v40 = vpop.permute.xlu1 %381  ;;  %v377_v41 = vpop.permute.xlu0 %376 }
  0xaa   : > { %9876 = vst [vmem:[#allocation8_spill] sm:$0xff] %v7847_v38  ;;  %9877 = vst [vmem:[#allocation9_spill] sm:$0xff] %v7849_v39  ;;  %v808_v42 = vmax.f32 %v744_v36, 0.0  ;;  %v807_v43 = vmax.f32 %v743_v37, 0.0  ;;  %v675_v44 = vmul.f32 %v7822_v13, %v382_v40  ;;  %v674_v45 = vmul.f32 %v7822_v13, %v377_v41  ;;  %6695 = vmatprep.mubr.bf16.mxu0 %v7847_v38 }
  0xab   : > { %6696 = vmatmul.mubr.bf16.vlgmr.msra.gmra.mrb[0].mxu0 %v7849_v39 }
  0xac   : > { %v746_v46 = vadd.f32 %v7827_v16, %v675_v44  ;;  %v745_v47 = vadd.f32 %v7827_v16, %v674_v45  ;;  %v7857_v48 = vpack.c.bf16 %v808_v42, %v807_v43 }
  0xad   : > { %v392_v49 = vpop.permute.xlu1 %391  ;;  %v387_v50 = vpop.permute.xlu0 %386 }
  0xae   : > { %v810_v51 = vmax.f32 %v746_v46, 0.0  ;;  %v809_v52 = vmax.f32 %v745_v47, 0.0  ;;  %v677_v53 = vmul.f32 %v7822_v13, %v392_v49  ;;  %v676_v54 = vmul.f32 %v7822_v13, %v387_v50  ;;  %6699 = vmatprep.mubr.bf16.mxu0 %v7857_v48 }
  0xb0   : > { %v748_v55 = vadd.f32 %v7827_v16, %v677_v53  ;;  %v747_v56 = vadd.f32 %v7827_v16, %v676_v54  ;;  %v7864_v57 = vpack.c.bf16 %v810_v51, %v809_v52 }
  0xb1   : > { %v402_v58 = vpop.permute.xlu1 %401  ;;  %v397_v59 = vpop.permute.xlu0 %396 }
  0xb2   : > { %9878 = vst [vmem:[#allocation10_spill] sm:$0xff] %v7864_v57  ;;  %v812_v60 = vmax.f32 %v748_v55, 0.0  ;;  %v811_v61 = vmax.f32 %v747_v56, 0.0  ;;  %v679_v62 = vmul.f32 %v7822_v13, %v402_v58  ;;  %v678_v63 = vmul.f32 %v7822_v13, %v397_v59 }
  0xb3   : > { %6700 = vmatmul.mubr.bf16.gmra.mrb[4].mxu0 %v7864_v57 }
  0xb4   : > { %v750_v0 = vadd.f32 %v7827_v16, %v679_v62  ;;  %v749_v1 = vadd.f32 %v7827_v16, %v678_v63  ;;  %v7871_v2 = vpack.c.bf16 %v812_v60, %v811_v61 }
  0xb5   : > { %v412_v3 = vpop.permute.xlu1 %411  ;;  %v407_v4 = vpop.permute.xlu0 %406 }
  0xb6   : > { %v814_v5 = vmax.f32 %v750_v0, 0.0  ;;  %v813_v6 = vmax.f32 %v749_v1, 0.0  ;;  %v681_v7 = vmul.f32 %v7822_v13, %v412_v3  ;;  %v680_v8 = vmul.f32 %v7822_v13, %v407_v4  ;;  %6703 = vmatprep.mubr.bf16.mxu0 %v7871_v2 }
  0xb8   : > { %v752_v9 = vadd.f32 %v7827_v16, %v681_v7  ;;  %v751_v10 = vadd.f32 %v7827_v16, %v680_v8  ;;  %v7878_v11 = vpack.c.bf16 %v814_v5, %v813_v6 }
  0xb9   : > { %v422_v12 = vpop.permute.xlu1 %421  ;;  %v417_v14 = vpop.permute.xlu0 %416 }
  0xba   : > { %9879 = vst [vmem:[#allocation11_spill] sm:$0xff] %v7878_v11  ;;  %v816_v15 = vmax.f32 %v752_v9, 0.0  ;;  %v815_v17 = vmax.f32 %v751_v10, 0.0  ;;  %v683_v18 = vmul.f32 %v7822_v13, %v422_v12  ;;  %v682_v19 = vmul.f32 %v7822_v13, %v417_v14 }
  0xbb   : > { %6704 = vmatmul.mubr.bf16.gmra.mrb[8].mxu0 %v7878_v11 }
  0xbc   : > { %v754_v20 = vadd.f32 %v7827_v16, %v683_v18  ;;  %v753_v21 = vadd.f32 %v7827_v16, %v682_v19  ;;  %v7885_v22 = vpack.c.bf16 %v816_v15, %v815_v17 }
  0xbd   : > { %v432_v23 = vpop.permute.xlu1 %431  ;;  %v427_v24 = vpop.permute.xlu0 %426 }
  0xbe   : > { %v818_v26 = vmax.f32 %v754_v20, 0.0  ;;  %v817_v27 = vmax.f32 %v753_v21, 0.0  ;;  %v685_v28 = vmul.f32 %v7822_v13, %v432_v23  ;;  %v684_v29 = vmul.f32 %v7822_v13, %v427_v24  ;;  %6707 = vmatprep.mubr.bf16.mxu0 %v7885_v22 }
  0xc0   : > { %v756_v30 = vadd.f32 %v7827_v16, %v685_v28  ;;  %v755_v31 = vadd.f32 %v7827_v16, %v684_v29  ;;  %v7892_v32 = vpack.c.bf16 %v818_v26, %v817_v27 }
  0xc1   : > { %v442_v33 = vpop.permute.xlu1 %441  ;;  %v437_v34 = vpop.permute.xlu0 %436 }
  0xc2   : > { %v820_v35 = vmax.f32 %v756_v30, 0.0  ;;  %v819_v36 = vmax.f32 %v755_v31, 0.0  ;;  %v687_v37 = vmul.f32 %v7822_v13, %v442_v33  ;;  %v686_v40 = vmul.f32 %v7822_v13, %v437_v34 }
  0xc3   : > { %6708 = vmatmul.mubr.bf16.gmra.mrb[12].mxu0 %v7892_v32 }
  0xc4   : > { %v758_v41 = vadd.f32 %v7827_v16, %v687_v37  ;;  %v757_v42 = vadd.f32 %v7827_v16, %v686_v40  ;;  %v7899_v43 = vpack.c.bf16 %v820_v35, %v819_v36 }
  0xc5   : > { %v452_v44 = vpop.permute.xlu1 %451  ;;  %v447_v45 = vpop.permute.xlu0 %446 }
  0xc6   : > { %v822_v46 = vmax.f32 %v758_v41, 0.0  ;;  %v821_v47 = vmax.f32 %v757_v42, 0.0  ;;  %v689_v49 = vmul.f32 %v7822_v13, %v452_v44  ;;  %v688_v50 = vmul.f32 %v7822_v13, %v447_v45  ;;  %6711 = vmatprep.mubr.bf16.mxu0 %v7899_v43 }
  0xc8   : > { %v760_v51 = vadd.f32 %v7827_v16, %v689_v49  ;;  %v759_v52 = vadd.f32 %v7827_v16, %v688_v50  ;;  %v7906_v53 = vpack.c.bf16 %v822_v46, %v821_v47 }
  0xc9   : > { %v462_v54 = vpop.permute.xlu1 %461  ;;  %v457_v55 = vpop.permute.xlu0 %456 }
  0xca   : > { %v824_v56 = vmax.f32 %v760_v51, 0.0  ;;  %v823_v58 = vmax.f32 %v759_v52, 0.0  ;;  %v691_v59 = vmul.f32 %v7822_v13, %v462_v54  ;;  %v690_v60 = vmul.f32 %v7822_v13, %v457_v55 }
  0xcb   : > { %6712 = vmatmul.mubr.bf16.gmra.mrb[16].mxu0 %v7906_v53 }
  0xcc   : > { %v762_v61 = vadd.f32 %v7827_v16, %v691_v59  ;;  %v761_v62 = vadd.f32 %v7827_v16, %v690_v60  ;;  %v7913_v63 = vpack.c.bf16 %v824_v56, %v823_v58 }
  0xcd   : > { %v472_v0 = vpop.permute.xlu1 %471  ;;  %v467_v1 = vpop.permute.xlu0 %466 }
  0xce   : > { %v826_v3 = vmax.f32 %v762_v61, 0.0  ;;  %v825_v4 = vmax.f32 %v761_v62, 0.0  ;;  %v693_v5 = vmul.f32 %v7822_v13, %v472_v0  ;;  %v692_v6 = vmul.f32 %v7822_v13, %v467_v1  ;;  %6715 = vmatprep.mubr.bf16.mxu0 %v7913_v63 }
  0xd0   : > { %v764_v7 = vadd.f32 %v7827_v16, %v693_v5  ;;  %v763_v8 = vadd.f32 %v7827_v16, %v692_v6  ;;  %v7920_v9 = vpack.c.bf16 %v826_v3, %v825_v4 }
  0xd1   : > { %v482_v10 = vpop.permute.xlu1 %481  ;;  %v477_v12 = vpop.permute.xlu0 %476 }
  0xd2   : > { %v828_v14 = vmax.f32 %v764_v7, 0.0  ;;  %v827_v15 = vmax.f32 %v763_v8, 0.0  ;;  %v695_v17 = vmul.f32 %v7822_v13, %v482_v10  ;;  %v694_v18 = vmul.f32 %v7822_v13, %v477_v12 }
  0xd3   : > { %6716 = vmatmul.mubr.bf16.gmra.mrb[20].mxu0 %v7920_v9 }
  0xd4   : > { %v766_v19 = vadd.f32 %v7827_v16, %v695_v17  ;;  %v765_v20 = vadd.f32 %v7827_v16, %v694_v18  ;;  %v7927_v21 = vpack.c.bf16 %v828_v14, %v827_v15  ;;  %v7473_v18 = vld [vmem:[%s9815_s2 + $0x48] sm:$0xff]  }
  0xd5   : > { %v492_v23 = vpop.permute.xlu1 %491  ;;  %v487_v24 = vpop.permute.xlu0 %486 }
  0xd6   : > { %v830_v26 = vmax.f32 %v766_v19, 0.0  ;;  %v829_v27 = vmax.f32 %v765_v20, 0.0  ;;  %v697_v28 = vmul.f32 %v7822_v13, %v492_v23  ;;  %v696_v29 = vmul.f32 %v7822_v13, %v487_v24  ;;  %6719 = vmatprep.mubr.bf16.mxu0 %v7927_v21 }
  0xd8   : > { %v768_v30 = vadd.f32 %v7827_v16, %v697_v28  ;;  %v767_v31 = vadd.f32 %v7827_v16, %v696_v29  ;;  %v7934_v33 = vpack.c.bf16 %v830_v26, %v829_v27 }
  0xd9   : > { %v502_v34 = vpop.permute.xlu1 %501  ;;  %v497_v35 = vpop.permute.xlu0 %496 }
  0xda   : > { %v832_v36 = vmax.f32 %v768_v30, 0.0  ;;  %v831_v37 = vmax.f32 %v767_v31, 0.0  ;;  %v699_v40 = vmul.f32 %v7822_v13, %v502_v34  ;;  %v698_v41 = vmul.f32 %v7822_v13, %v497_v35  ;;  %v7474_v31 = vld [vmem:[%s9815_s2 + $0x50] sm:$0xff]  }
  0xdb   : > { %6720 = vmatmul.mubr.bf16.gmra.mrb[24].mxu0 %v7934_v33 }
  0xdc   : > { %v770_v42 = vadd.f32 %v7827_v16, %v699_v40  ;;  %v769_v44 = vadd.f32 %v7827_v16, %v698_v41  ;;  %v7941_v45 = vpack.c.bf16 %v832_v36, %v831_v37 }
  0xdd   : > { %v512_v46 = vpop.permute.xlu1 %511  ;;  %v507_v47 = vpop.permute.xlu0 %506 }
  0xde   : > { %v834_v49 = vmax.f32 %v770_v42, 0.0  ;;  %v833_v50 = vmax.f32 %v769_v44, 0.0  ;;  %v701_v51 = vmul.f32 %v7822_v13, %v512_v46  ;;  %v700_v52 = vmul.f32 %v7822_v13, %v507_v47  ;;  %6723 = vmatprep.mubr.bf16.mxu0 %v7941_v45  ;;  %v7475_v46 = vld [vmem:[%s9815_s2 + $0x58] sm:$0xff]  }
  0xe0   : > { %v772_v54 = vadd.f32 %v7827_v16, %v701_v51  ;;  %v771_v55 = vadd.f32 %v7827_v16, %v700_v52  ;;  %v7948_v56 = vpack.c.bf16 %v834_v49, %v833_v50 }
  0xe1   : > { %v522_v58 = vpop.permute.xlu1 %521  ;;  %v517_v59 = vpop.permute.xlu0 %516 }
  0xe2   : > { %v836_v60 = vmax.f32 %v772_v54, 0.0  ;;  %v835_v61 = vmax.f32 %v771_v55, 0.0  ;;  %v703_v62 = vmul.f32 %v7822_v13, %v522_v58  ;;  %v702_v0 = vmul.f32 %v7822_v13, %v517_v59 }
  0xe3   : > { %6724 = vmatmul.mubr.bf16.gmra.mrb[28].mxu0 %v7948_v56 }
  0xe4   : > { %v774_v1 = vadd.f32 %v7827_v16, %v703_v62  ;;  %v773_v3 = vadd.f32 %v7827_v16, %v702_v0  ;;  %v7955_v4 = vpack.c.bf16 %v836_v60, %v835_v61  ;;  %v7476_v60 = vld [vmem:[%s9815_s2 + $0x60] sm:$0xff]  }
  0xe5   : > { %v532_v5 = vpop.permute.xlu1 %531  ;;  %v527_v6 = vpop.permute.xlu0 %526 }
  0xe6   : > { %v838_v7 = vmax.f32 %v774_v1, 0.0  ;;  %v837_v8 = vmax.f32 %v773_v3, 0.0  ;;  %v705_v10 = vmul.f32 %v7822_v13, %v532_v5  ;;  %v704_v12 = vmul.f32 %v7822_v13, %v527_v6  ;;  %6727 = vmatprep.mubr.bf16.mxu1 %v7955_v4 }
  0xe8   : > { %v776_v14 = vadd.f32 %v7827_v16, %v705_v10  ;;  %v775_v15 = vadd.f32 %v7827_v16, %v704_v12  ;;  %v7962_v17 = vpack.c.bf16 %v838_v7, %v837_v8  ;;  %v7477_v10 = vld [vmem:[%s9815_s2 + $0x68] sm:$0xff]  }
  0xe9   : > { %v542_v19 = vpop.permute.xlu1 %541  ;;  %v537_v20 = vpop.permute.xlu0 %536 }
  0xea   : > { %9880 = vst [vmem:[#allocation12_spill] sm:$0xff] %v7962_v17  ;;  %v840_v23 = vmax.f32 %v776_v14, 0.0  ;;  %v839_v24 = vmax.f32 %v775_v15, 0.0  ;;  %v707_v26 = vmul.f32 %v7822_v13, %v542_v19  ;;  %v706_v27 = vmul.f32 %v7822_v13, %v537_v20  ;;  %6728 = vmatmul.mubr.bf16.vlgmr.msra.gmra.mrb[0].mxu1 %v7962_v17 }
  0xeb   : > { %6760 = vmatpush3.bf16.msra.mxu1 %v7838_v25 }
  0xec   : > { %v778_v28 = vadd.f32 %v7827_v16, %v707_v26  ;;  %v777_v29 = vadd.f32 %v7827_v16, %v706_v27  ;;  %v7973_v30 = vpack.c.bf16 %v840_v23, %v839_v24  ;;  %6761 = vmatprep.subr.bf16.mxu1 %v7473_v18  ;;  %v7478_v27 = vld [vmem:[%s9815_s2 + $0x70] sm:$0xff]  }
  0xed   : > { %v552_v34 = vpop.permute.xlu1 %551  ;;  %v547_v35 = vpop.permute.xlu0 %546 }
  0xee   : > { %9881 = vst [vmem:[#allocation13_spill] sm:$0xff] %v7973_v30  ;;  %v842_v36 = vmax.f32 %v778_v28, 0.0  ;;  %v841_v37 = vmax.f32 %v777_v29, 0.0  ;;  %v709_v40 = vmul.f32 %v7822_v13, %v552_v34  ;;  %v708_v41 = vmul.f32 %v7822_v13, %v547_v35  ;;  %6731 = vmatprep.mubr.bf16.mxu1 %v7973_v30 }
  0xef   : > { %6762 = vmatpush3.bf16.msra.mxu1 %v7473_v18 }
  0xf0   : > { %v780_v25 = vadd.f32 %v7827_v16, %v709_v40  ;;  %v779_v42 = vadd.f32 %v7827_v16, %v708_v41  ;;  %v7983_v44 = vpack.c.bf16 %v842_v36, %v841_v37  ;;  %6763 = vmatprep.subr.bf16.mxu1 %v7474_v31 }
  0xf1   : > { %v562_v47 = vpop.permute.xlu1 %561  ;;  %v557_v49 = vpop.permute.xlu0 %556 }
  0xf2   : > { %9882 = vst [vmem:[#allocation14_spill] sm:$0xff] %v7983_v44  ;;  %v844_v50 = vmax.f32 %v780_v25, 0.0  ;;  %v843_v51 = vmax.f32 %v779_v42, 0.0  ;;  %v711_v52 = vmul.f32 %v7822_v13, %v562_v47  ;;  %v710_v54 = vmul.f32 %v7822_v13, %v557_v49  ;;  %6732 = vmatmul.mubr.bf16.gmra.mrb[4].mxu1 %v7983_v44 }
  0xf3   : > { %6764 = vmatpush3.bf16.msra.mxu1 %v7474_v31 }
  0xf4   : > { %v782_v55 = vadd.f32 %v7827_v16, %v711_v52  ;;  %v781_v58 = vadd.f32 %v7827_v16, %v710_v54  ;;  %v7993_v59 = vpack.c.bf16 %v844_v50, %v843_v51  ;;  %6765 = vmatprep.subr.bf16.mxu1 %v7475_v46  ;;  %v7479_v51 = vld [vmem:[%s9815_s2 + $0x78] sm:$0xff]  }
  0xf5   : > { %v572_v61 = vpop.permute.xlu1 %571  ;;  %v567_v62 = vpop.permute.xlu0 %566 }
  0xf6   : > { %9883 = vst [vmem:[#allocation15_spill] sm:$0xff] %v7993_v59  ;;  %v846_v0 = vmax.f32 %v782_v55, 0.0  ;;  %v845_v1 = vmax.f32 %v781_v58, 0.0  ;;  %v713_v3 = vmul.f32 %v7822_v13, %v572_v61  ;;  %v712_v5 = vmul.f32 %v7822_v13, %v567_v62  ;;  %6735 = vmatprep.mubr.bf16.mxu1 %v7993_v59 }
  0xf7   : > { %6766 = vmatpush3.bf16.msra.mxu1 %v7475_v46 }
  0xf8   : > { %v784_v6 = vadd.f32 %v7827_v16, %v713_v3  ;;  %v783_v7 = vadd.f32 %v7827_v16, %v712_v5  ;;  %v8003_v8 = vpack.c.bf16 %v846_v0, %v845_v1  ;;  %6767 = vmatprep.subr.bf16.mxu1 %v7476_v60 }
  0xf9   : > { %v582_v12 = vpop.permute.xlu1 %581  ;;  %v577_v14 = vpop.permute.xlu0 %576 }
  0xfa   : > { %9884 = vst [vmem:[#allocation16_spill] sm:$0xff] %v8003_v8  ;;  %v848_v15 = vmax.f32 %v784_v6, 0.0  ;;  %v847_v18 = vmax.f32 %v783_v7, 0.0  ;;  %v715_v19 = vmul.f32 %v7822_v13, %v582_v12  ;;  %v714_v20 = vmul.f32 %v7822_v13, %v577_v14  ;;  %6736 = vmatmul.mubr.bf16.gmra.mrb[8].mxu1 %v8003_v8 }
  0xfb   : > { %6768 = vmatpush3.bf16.msra.mxu1 %v7476_v60 }
  0xfc   : > { %v786_v23 = vadd.f32 %v7827_v16, %v715_v19  ;;  %v785_v24 = vadd.f32 %v7827_v16, %v714_v20  ;;  %v8013_v26 = vpack.c.bf16 %v848_v15, %v847_v18  ;;  %6769 = vmatprep.subr.bf16.mxu1 %v7477_v10 }
  0xfd   : > { %v592_v28 = vpop.permute.xlu1 %591  ;;  %v587_v29 = vpop.permute.xlu0 %586 }
  0xfe   : > { %9885 = vst [vmem:[#allocation17_spill] sm:$0xff] %v8013_v26  ;;  %v850_v31 = vmax.f32 %v786_v23, 0.0  ;;  %v849_v34 = vmax.f32 %v785_v24, 0.0  ;;  %v717_v35 = vmul.f32 %v7822_v13, %v592_v28  ;;  %v716_v36 = vmul.f32 %v7822_v13, %v587_v29  ;;  %6739 = vmatprep.mubr.bf16.mxu1 %v8013_v26 }
  0xff   : > { %6770 = vmatpush3.bf16.msra.mxu1 %v7477_v10 }
 0x100   : > { %v788_v37 = vadd.f32 %v7827_v16, %v717_v35  ;;  %v787_v40 = vadd.f32 %v7827_v16, %v716_v36  ;;  %v8023_v41 = vpack.c.bf16 %v850_v31, %v849_v34  ;;  %6771 = vmatprep.subr.bf16.mxu1 %v7478_v27 }
 0x101   : > { %v602_v25 = vpop.permute.xlu1 %601  ;;  %v597_v42 = vpop.permute.xlu0 %596 }
 0x102   : > { %9886 = vst [vmem:[#allocation18_spill] sm:$0xff] %v8023_v41  ;;  %v852_v46 = vmax.f32 %v788_v37, 0.0  ;;  %v851_v47 = vmax.f32 %v787_v40, 0.0  ;;  %v719_v49 = vmul.f32 %v7822_v13, %v602_v25  ;;  %v718_v50 = vmul.f32 %v7822_v13, %v597_v42  ;;  %6740 = vmatmul.mubr.bf16.gmra.mrb[12].mxu1 %v8023_v41 }
 0x103   : > { %6772 = vmatpush3.bf16.msra.mxu1 %v7478_v27 }
 0x104   : > { %v790_v52 = vadd.f32 %v7827_v16, %v719_v49  ;;  %v789_v54 = vadd.f32 %v7827_v16, %v718_v50  ;;  %v8033_v55 = vpack.c.bf16 %v852_v46, %v851_v47  ;;  %6773 = vmatprep.subr.bf16.mxu1 %v7479_v51 }
 0x105   : > { %v612_v58 = vpop.permute.xlu1 %611  ;;  %v607_v60 = vpop.permute.xlu0 %606 }
 0x106   : > { %9887 = vst [vmem:[#allocation19_spill] sm:$0xff] %v8033_v55  ;;  %v854_v61 = vmax.f32 %v790_v52, 0.0  ;;  %v853_v62 = vmax.f32 %v789_v54, 0.0  ;;  %v721_v0 = vmul.f32 %v7822_v13, %v612_v58  ;;  %v720_v1 = vmul.f32 %v7822_v13, %v607_v60  ;;  %6743 = vmatprep.mubr.bf16.mxu1 %v8033_v55 }
 0x107   : > { %6774 = vmatpush3.bf16.msra.mxu1 %v7479_v51 }
 0x108   : > { %v792_v3 = vadd.f32 %v7827_v16, %v721_v0  ;;  %v791_v5 = vadd.f32 %v7827_v16, %v720_v1  ;;  %v8040_v6 = vpack.c.bf16 %v854_v61, %v853_v62 }
 0x109   : > { %v622_v7 = vpop.permute.xlu1 %621  ;;  %v617_v10 = vpop.permute.xlu0 %616 }
 0x10a   : > { %9888 = vst [vmem:[#allocation20_spill] sm:$0xff] %v8040_v6  ;;  %v856_v12 = vmax.f32 %v792_v3, 0.0  ;;  %v855_v14 = vmax.f32 %v791_v5, 0.0  ;;  %v723_v15 = vmul.f32 %v7822_v13, %v622_v7  ;;  %v722_v18 = vmul.f32 %v7822_v13, %v617_v10  ;;  %6744 = vmatmul.mubr.bf16.gmra.mrb[16].mxu1 %v8040_v6 }
 0x10c   : > { %v794_v19 = vadd.f32 %v7827_v16, %v723_v15  ;;  %v793_v20 = vadd.f32 %v7827_v16, %v722_v18  ;;  %v8047_v23 = vpack.c.bf16 %v856_v12, %v855_v14 }
 0x10d   : > { %v632_v24 = vpop.permute.xlu1 %631  ;;  %v627_v27 = vpop.permute.xlu0 %626 }
 0x10e   : > { %9889 = vst [vmem:[#allocation21_spill] sm:$0xff] %v8047_v23  ;;  %v858_v28 = vmax.f32 %v794_v19, 0.0  ;;  %v857_v29 = vmax.f32 %v793_v20, 0.0  ;;  %v725_v31 = vmul.f32 %v7822_v13, %v632_v24  ;;  %v724_v34 = vmul.f32 %v7822_v13, %v627_v27  ;;  %6747 = vmatprep.mubr.bf16.mxu1 %v8047_v23 }
 0x110   : > { %v796_v35 = vadd.f32 %v7827_v16, %v725_v31  ;;  %v795_v36 = vadd.f32 %v7827_v16, %v724_v34  ;;  %v8054_v37 = vpack.c.bf16 %v858_v28, %v857_v29 }
 0x111   : > { %v642_v40 = vpop.permute.xlu1 %641  ;;  %v637_v25 = vpop.permute.xlu0 %636 }
 0x112   : > { %9890 = vst [vmem:[#allocation22_spill] sm:$0xff] %v8054_v37  ;;  %v860_v42 = vmax.f32 %v796_v35, 0.0  ;;  %v859_v46 = vmax.f32 %v795_v36, 0.0  ;;  %v727_v47 = vmul.f32 %v7822_v13, %v642_v40  ;;  %v726_v49 = vmul.f32 %v7822_v13, %v637_v25  ;;  %6748 = vmatmul.mubr.bf16.gmra.mrb[20].mxu1 %v8054_v37 }
 0x114   : > { %v798_v50 = vadd.f32 %v7827_v16, %v727_v47  ;;  %v797_v51 = vadd.f32 %v7827_v16, %v726_v49  ;;  %v8061_v52 = vpack.c.bf16 %v860_v42, %v859_v46  ;;  %v7480_v42 = vld [vmem:[%s9815_s2 + $0x80] sm:$0xff]   ;;  %v7481_v46 = vld [vmem:[%s9815_s2 + $0x88] sm:$0xff]  }
 0x115   : > { %v652_v54 = vpop.permute.xlu1 %651  ;;  %v647_v58 = vpop.permute.xlu0 %646  ;;  %6839 = vmatprep.subr.bf16.mxu0 %v7480_v42 }
 0x116   : > { %9891 = vst [vmem:[#allocation23_spill] sm:$0xff] %v8061_v52  ;;  %v862_v60 = vmax.f32 %v798_v50, 0.0  ;;  %v861_v61 = vmax.f32 %v797_v51, 0.0  ;;  %v729_v62 = vmul.f32 %v7822_v13, %v652_v54  ;;  %v728_v0 = vmul.f32 %v7822_v13, %v647_v58  ;;  %6751 = vmatprep.mubr.bf16.mxu1 %v8061_v52  ;;  %6840 = vmatpush3.bf16.msra.mxu0 %v7480_v42 }
 0x117   : > { %6841 = vmatprep.subr.bf16.mxu0 %v7481_v46 }
 0x118   : > { %v800_v1 = vadd.f32 %v7827_v16, %v729_v62  ;;  %v799_v3 = vadd.f32 %v7827_v16, %v728_v0  ;;  %v8068_v5 = vpack.c.bf16 %v862_v60, %v861_v61  ;;  %v7482_v60 = vld [vmem:[%s9815_s2 + $0x90] sm:$0xff]  }
 0x119   : > { %v662_v7 = vpop.permute.xlu1 %661  ;;  %v657_v10 = vpop.permute.xlu0 %656 }
 0x11a   : > { %9892 = vst [vmem:[#allocation24_spill] sm:$0xff] %v8068_v5  ;;  %v864_v12 = vmax.f32 %v800_v1, 0.0  ;;  %v863_v14 = vmax.f32 %v799_v3, 0.0  ;;  %v731_v15 = vmul.f32 %v7822_v13, %v662_v7  ;;  %v730_v18 = vmul.f32 %v7822_v13, %v657_v10  ;;  %6752 = vmatmul.mubr.bf16.gmra.mrb[24].mxu1 %v8068_v5  ;;  %v8084_v13 = vld [vmem:[%s9816_s3 + $0x1] ss:$0 sm:$0xff]  ;;  %6842 = vmatpush3.bf16.msra.mxu0 %v7481_v46 }
 0x11b   : > { %6843 = vmatprep.subr.bf16.mxu0 %v7482_v60 }
 0x11c   : > { %v802_v19 = vadd.f32 %v7827_v16, %v731_v15  ;;  %v801_v20 = vadd.f32 %v7827_v16, %v730_v18  ;;  %v8075_v24 = vpack.c.bf16 %v864_v12, %v863_v14  ;;  %v7483_v14 = vld [vmem:[%s9815_s2 + $0x98] sm:$0xff]  }
 0x11e   : > { %9893 = vst [vmem:[#allocation25_spill] sm:$0xff] %v8075_v24  ;;  %v866_v27 = vmax.f32 %v802_v19, 0.0  ;;  %v865_v28 = vmax.f32 %v801_v20, 0.0  ;;  %6755 = vmatprep.mubr.bf16.mxu1 %v8075_v24  ;;  %6844 = vmatpush3.bf16.msra.mxu0 %v7482_v60 }
 0x11f   : > { %6845 = vmatprep.subr.bf16.mxu0 %v7483_v14 }
 0x120   : > { %v8078_v29 = vpack.c.bf16 %v866_v27, %v865_v28 }
 0x122   : > { %9894 = vst [vmem:[#allocation26_spill] sm:$0xff] %v8078_v29  ;;  %6756 = vmatmul.mubr.bf16.gmra.mrb[28].mxu1 %v8078_v29  ;;  %6846 = vmatpush3.bf16.msra.mxu0 %v7483_v14 }
 0x17e   : > { %v6697_v31 = vpop.f32.mrb[0].mxu0 }
 0x17f   : > { %v1014_v34 = vadd.f32 %v6697_v31, %v8084_v13  ;;  %v1005_v35 = vpop.f32.mrb[1].mxu0  ;;  %v7484_v31 = vld [vmem:[%s9815_s2 + $0xa0] sm:$0xff]  }
 0x180   : > { %v1006_v16 = vadd.f32 %v8084_v13, %v1005_v35  ;;  %v6698_v36 = vpop.f32.mrb[2].mxu0  ;;  %6847 = vmatprep.subr.bf16.mxu0 %v7484_v31 }
 0x181   : > { %v1017_v40 = vadd.f32 %v6698_v36, %v8084_v13  ;;  %v1008_v25 = vpop.f32.mrb[3].mxu0  ;;  %v1262_v49 = vmax.f32 %v1014_v34, 0.0  ;;  %6848 = vmatpush3.bf16.msra.mxu0 %v7484_v31 }
 0x182   : > { %v1009_v47 = vadd.f32 %v8084_v13, %v1008_v25  ;;  %v1260_v51 = vmax.f32 %v1006_v16, 0.0 }
 0x183   : > { %v1263_v50 = vmax.f32 %v1017_v40, 0.0 }
 0x184   : > { %v1261_v54 = vmax.f32 %v1009_v47, 0.0  ;;  %v7485_v47 = vld [vmem:[%s9815_s2 + $0xa8] sm:$0xff]  }
 0x185   : > { %v8096_v58 = vpack.c.bf16 %v1263_v50, %v1262_v49  ;;  %6849 = vmatprep.subr.bf16.mxu0 %v7485_v47 }
 0x186   : > { %v6701_v61 = vpop.f32.mrb[4].mxu0  ;;  %v8101_v62 = vpack.c.bf16 %v1261_v54, %v1260_v51  ;;  %6850 = vmatpush3.bf16.msra.mxu0 %v7485_v47 }
 0x187   : > { %9895 = vst [vmem:[#allocation27_spill] sm:$0xff] %v8096_v58  ;;  %v1030_v0 = vadd.f32 %v6701_v61, %v8084_v13  ;;  %v1021_v1 = vpop.f32.mrb[5].mxu0 }
 0x188   : > { %9896 = vst [vmem:[#allocation28_spill] sm:$0xff] %v8101_v62  ;;  %v1022_v3 = vadd.f32 %v8084_v13, %v1021_v1  ;;  %v6702_v7 = vpop.f32.mrb[6].mxu0  ;;  %6775 = vmatprep.mubr.bf16.mxu1 %v8101_v62 }
 0x189   : > { %v1033_v10 = vadd.f32 %v6702_v7, %v8084_v13  ;;  %v1024_v12 = vpop.f32.mrb[7].mxu0  ;;  %6776 = vmatmul.mubr.bf16.vlgmr.msra.gmra.mrb[32].mxu1 %v8096_v58  ;;  %v1266_v18 = vmax.f32 %v1030_v0, 0.0  ;;  %v7486_v0 = vld [vmem:[%s9815_s2 + $0xb0] sm:$0xff]  }
 0x18a   : > { %v1025_v15 = vadd.f32 %v8084_v13, %v1024_v12  ;;  %v1264_v20 = vmax.f32 %v1022_v3, 0.0  ;;  %6851 = vmatprep.subr.bf16.mxu0 %v7486_v0 }
 0x18b   : > { %v1267_v19 = vmax.f32 %v1033_v10, 0.0  ;;  %6852 = vmatpush3.bf16.msra.mxu0 %v7486_v0 }
 0x18c   : > { %v1265_v27 = vmax.f32 %v1025_v15, 0.0 }
 0x18d   : > { %v8112_v28 = vpack.c.bf16 %v1267_v19, %v1266_v18 }
 0x18e   : > { %v6705_v34 = vpop.f32.mrb[8].mxu0  ;;  %v8117_v35 = vpack.c.bf16 %v1265_v27, %v1264_v20 }
 0x18f   : > { %v1046_v16 = vadd.f32 %v6705_v34, %v8084_v13  ;;  %v1037_v36 = vpop.f32.mrb[9].mxu0 }
 0x190   : > { %v1038_v40 = vadd.f32 %v8084_v13, %v1037_v36  ;;  %v6706_v25 = vpop.f32.mrb[10].mxu0  ;;  %6779 = vmatprep.mubr.bf16.mxu1 %v8117_v35 }
 0x191   : > { %v1049_v42 = vadd.f32 %v6706_v25, %v8084_v13  ;;  %v1040_v46 = vpop.f32.mrb[11].mxu0  ;;  %6780 = vmatmul.mubr.bf16.gmra.mrb[36].mxu1 %v8112_v28  ;;  %v1270_v50 = vmax.f32 %v1046_v16, 0.0 }
 0x192   : > { %v1041_v49 = vadd.f32 %v8084_v13, %v1040_v46  ;;  %v1268_v54 = vmax.f32 %v1038_v40, 0.0 }
 0x193   : > { %v1271_v51 = vmax.f32 %v1049_v42, 0.0 }
 0x194   : > { %v1269_v60 = vmax.f32 %v1041_v49, 0.0 }
 0x195   : > { %v8128_v61 = vpack.c.bf16 %v1271_v51, %v1270_v50 }
 0x196   : > { %v6709_v1 = vpop.f32.mrb[12].mxu0  ;;  %v8133_v3 = vpack.c.bf16 %v1269_v60, %v1268_v54 }
 0x197   : > { %v1062_v7 = vadd.f32 %v6709_v1, %v8084_v13  ;;  %v1053_v10 = vpop.f32.mrb[13].mxu0 }
 0x198   : > { %v1054_v12 = vadd.f32 %v8084_v13, %v1053_v10  ;;  %v6710_v14 = vpop.f32.mrb[14].mxu0  ;;  %6783 = vmatprep.mubr.bf16.mxu1 %v8133_v3 }
 0x199   : > { %v1065_v15 = vadd.f32 %v6710_v14, %v8084_v13  ;;  %v1056_v18 = vpop.f32.mrb[15].mxu0  ;;  %6784 = vmatmul.mubr.bf16.gmra.mrb[40].mxu1 %v8128_v61  ;;  %v1274_v20 = vmax.f32 %v1062_v7, 0.0 }
 0x19a   : > { %v1057_v19 = vadd.f32 %v8084_v13, %v1056_v18  ;;  %v1272_v31 = vmax.f32 %v1054_v12, 0.0 }
 0x19b   : > { %v1275_v27 = vmax.f32 %v1065_v15, 0.0 }
 0x19c   : > { %v1273_v34 = vmax.f32 %v1057_v19, 0.0 }
 0x19d   : > { %v8141_v16 = vpack.c.bf16 %v1275_v27, %v1274_v20 }
 0x19e   : > { %v6713_v36 = vpop.f32.mrb[16].mxu0  ;;  %v8143_v40 = vpack.c.bf16 %v1273_v34, %v1272_v31 }
 0x19f   : > { %v1078_v25 = vadd.f32 %v6713_v36, %v8084_v13  ;;  %v1069_v42 = vpop.f32.mrb[17].mxu0 }
 0x1a0   : > { %v1070_v46 = vadd.f32 %v8084_v13, %v1069_v42  ;;  %v6714_v47 = vpop.f32.mrb[18].mxu0  ;;  %6787 = vmatprep.mubr.bf16.mxu1 %v8143_v40 }
 0x1a1   : > { %v1081_v49 = vadd.f32 %v6714_v47, %v8084_v13  ;;  %v1072_v50 = vpop.f32.mrb[19].mxu0  ;;  %6788 = vmatmul.mubr.bf16.gmra.mrb[44].mxu1 %v8141_v16  ;;  %v1278_v54 = vmax.f32 %v1078_v25, 0.0 }
 0x1a2   : > { %v1073_v51 = vadd.f32 %v8084_v13, %v1072_v50  ;;  %v1276_v0 = vmax.f32 %v1070_v46, 0.0 }
 0x1a3   : > { %v1279_v60 = vmax.f32 %v1081_v49, 0.0 }
 0x1a4   : > { %v1277_v1 = vmax.f32 %v1073_v51, 0.0 }
 0x1a5   : > { %v8151_v7 = vpack.c.bf16 %v1279_v60, %v1278_v54 }
 0x1a6   : > { %v6717_v10 = vpop.f32.mrb[20].mxu0  ;;  %v8153_v12 = vpack.c.bf16 %v1277_v1, %v1276_v0 }
 0x1a7   : > { %v1094_v14 = vadd.f32 %v6717_v10, %v8084_v13  ;;  %v1085_v15 = vpop.f32.mrb[21].mxu0 }
 0x1a8   : > { %v1086_v18 = vadd.f32 %v8084_v13, %v1085_v15  ;;  %v6718_v19 = vpop.f32.mrb[22].mxu0  ;;  %6791 = vmatprep.mubr.bf16.mxu1 %v8153_v12 }
 0x1a9   : > { %v1097_v20 = vadd.f32 %v6718_v19, %v8084_v13  ;;  %v1088_v27 = vpop.f32.mrb[23].mxu0  ;;  %6792 = vmatmul.mubr.bf16.gmra.mrb[48].mxu1 %v8151_v7  ;;  %v1282_v34 = vmax.f32 %v1094_v14, 0.0 }
 0x1aa   : > { %v1089_v31 = vadd.f32 %v8084_v13, %v1088_v27  ;;  %v1280_v25 = vmax.f32 %v1086_v18, 0.0 }
 0x1ab   : > { %v1283_v36 = vmax.f32 %v1097_v20, 0.0 }
 0x1ac   : > { %v1281_v42 = vmax.f32 %v1089_v31, 0.0 }
 0x1ad   : > { %v8161_v46 = vpack.c.bf16 %v1283_v36, %v1282_v34 }
 0x1ae   : > { %v6721_v47 = vpop.f32.mrb[24].mxu0  ;;  %v8163_v49 = vpack.c.bf16 %v1281_v42, %v1280_v25 }
 0x1af   : > { %v1110_v50 = vadd.f32 %v6721_v47, %v8084_v13  ;;  %v1101_v51 = vpop.f32.mrb[25].mxu0 }
 0x1b0   : > { %v1102_v54 = vadd.f32 %v8084_v13, %v1101_v51  ;;  %v6722_v60 = vpop.f32.mrb[26].mxu0  ;;  %6795 = vmatprep.mubr.bf16.mxu1 %v8163_v49 }
 0x1b1   : > { %v1113_v0 = vadd.f32 %v6722_v60, %v8084_v13  ;;  %v1104_v1 = vpop.f32.mrb[27].mxu0  ;;  %6796 = vmatmul.mubr.bf16.gmra.mrb[52].mxu1 %v8161_v46  ;;  %v1286_v14 = vmax.f32 %v1110_v50, 0.0 }
 0x1b2   : > { %v1105_v10 = vadd.f32 %v8084_v13, %v1104_v1  ;;  %v1284_v18 = vmax.f32 %v1102_v54, 0.0 }
 0x1b3   : > { %v1287_v15 = vmax.f32 %v1113_v0, 0.0 }
 0x1b4   : > { %v1285_v19 = vmax.f32 %v1105_v10, 0.0 }
 0x1b5   : > { %v8171_v20 = vpack.c.bf16 %v1287_v15, %v1286_v14 }
 0x1b6   : > { %v6725_v27 = vpop.f32.mrb[28].mxu0  ;;  %v8173_v31 = vpack.c.bf16 %v1285_v19, %v1284_v18 }
 0x1b7   : > { %v1126_v34 = vadd.f32 %v6725_v27, %v8084_v13  ;;  %v1117_v36 = vpop.f32.mrb[29].mxu0 }
 0x1b8   : > { %v1118_v25 = vadd.f32 %v8084_v13, %v1117_v36  ;;  %v6726_v42 = vpop.f32.mrb[30].mxu0  ;;  %6799 = vmatprep.mubr.bf16.mxu1 %v8173_v31 }
 0x1b9   : > { %v1129_v47 = vadd.f32 %v6726_v42, %v8084_v13  ;;  %v1120_v51 = vpop.f32.mrb[31].mxu0  ;;  %6800 = vmatmul.mubr.bf16.gmra.mrb[56].mxu1 %v8171_v20  ;;  %v1290_v54 = vmax.f32 %v1126_v34, 0.0 }
 0x1ba   : > { %v1121_v50 = vadd.f32 %v8084_v13, %v1120_v51  ;;  %v1288_v0 = vmax.f32 %v1118_v25, 0.0 }
 0x1bb   : > { %v1291_v60 = vmax.f32 %v1129_v47, 0.0 }
 0x1bc   : > { %v1289_v1 = vmax.f32 %v1121_v50, 0.0 }
 0x1bd   : > { %v6729_v10 = vpop.f32.mrb[0].mxu1  ;;  %v8181_v14 = vpack.c.bf16 %v1291_v60, %v1290_v54 }
 0x1be   : > { %v1142_v15 = vadd.f32 %v6729_v10, %v8084_v13  ;;  %v1133_v18 = vpop.f32.mrb[1].mxu1  ;;  %v8184_v19 = vpack.c.bf16 %v1289_v1, %v1288_v0 }
 0x1bf   : > { %v1134_v27 = vadd.f32 %v8084_v13, %v1133_v18  ;;  %v6730_v36 = vpop.f32.mrb[2].mxu1 }
 0x1c0   : > { %v1145_v42 = vadd.f32 %v6730_v36, %v8084_v13  ;;  %v1136_v24 = vpop.f32.mrb[3].mxu1  ;;  %6803 = vmatprep.mubr.bf16.mxu1 %v8184_v19  ;;  %v1294_v25 = vmax.f32 %v1142_v15, 0.0 }
 0x1c1   : > { %v1137_v34 = vadd.f32 %v8084_v13, %v1136_v24  ;;  %6804 = vmatmul.mubr.bf16.gmra.mrb[60].mxu1 %v8181_v14  ;;  %v1292_v51 = vmax.f32 %v1134_v27, 0.0 }
 0x1c2   : > { %v1295_v47 = vmax.f32 %v1145_v42, 0.0 }
 0x1c3   : > { %v1293_v50 = vmax.f32 %v1137_v34, 0.0 }
 0x1c4   : > { %v8191_v54 = vpack.c.bf16 %v1295_v47, %v1294_v25 }
 0x1c5   : > { %v6733_v60 = vpop.f32.mrb[4].mxu1  ;;  %v8193_v0 = vpack.c.bf16 %v1293_v50, %v1292_v51 }
 0x1c6   : > { %v1158_v1 = vadd.f32 %v6733_v60, %v8084_v13  ;;  %v1149_v10 = vpop.f32.mrb[5].mxu1 }
 0x1c7   : > { %v1150_v18 = vadd.f32 %v8084_v13, %v1149_v10  ;;  %v6734_v36 = vpop.f32.mrb[6].mxu1  ;;  %6807 = vmatprep.mubr.bf16.mxu1 %v8193_v0 }
 0x1c8   : > { %v1161_v24 = vadd.f32 %v6734_v36, %v8084_v13  ;;  %v1152_v29 = vpop.f32.mrb[7].mxu1  ;;  %v1298_v27 = vmax.f32 %v1158_v1, 0.0 }
 0x1c9   : > { %v1153_v15 = vadd.f32 %v8084_v13, %v1152_v29  ;;  %6808 = vmatmul.mubr.bf16.gmra.mrb[64].mxu1 %v8191_v54  ;;  %v1296_v34 = vmax.f32 %v1150_v18, 0.0 }
 0x1ca   : > { %v1299_v42 = vmax.f32 %v1161_v24, 0.0 }
 0x1cb   : > { %v1297_v25 = vmax.f32 %v1153_v15, 0.0 }
 0x1cc   : > { %v8201_v47 = vpack.c.bf16 %v1299_v42, %v1298_v27 }
 0x1cd   : > { %v6737_v51 = vpop.f32.mrb[8].mxu1  ;;  %v8203_v50 = vpack.c.bf16 %v1297_v25, %v1296_v34 }
 0x1ce   : > { %v1174_v60 = vadd.f32 %v6737_v51, %v8084_v13  ;;  %v1165_v10 = vpop.f32.mrb[9].mxu1 }
 0x1cf   : > { %v1166_v52 = vadd.f32 %v8084_v13, %v1165_v10  ;;  %v6738_v36 = vpop.f32.mrb[10].mxu1  ;;  %6811 = vmatprep.mubr.bf16.mxu1 %v8203_v50 }
 0x1d0   : > { %v1177_v29 = vadd.f32 %v6738_v36, %v8084_v13  ;;  %v1168_v5 = vpop.f32.mrb[11].mxu1  ;;  %v1302_v18 = vmax.f32 %v1174_v60, 0.0 }
 0x1d1   : > { %v1169_v1 = vadd.f32 %v8084_v13, %v1168_v5  ;;  %6812 = vmatmul.mubr.bf16.gmra.mrb[68].mxu1 %v8201_v47  ;;  %v1300_v15 = vmax.f32 %v1166_v52, 0.0 }
 0x1d2   : > { %v1303_v24 = vmax.f32 %v1177_v29, 0.0 }
 0x1d3   : > { %v1301_v27 = vmax.f32 %v1169_v1, 0.0 }
 0x1d4   : > { %v8211_v42 = vpack.c.bf16 %v1303_v24, %v1302_v18 }
 0x1d5   : > { %v6741_v34 = vpop.f32.mrb[12].mxu1  ;;  %v8213_v25 = vpack.c.bf16 %v1301_v27, %v1300_v15 }
 0x1d6   : > { %v1190_v51 = vadd.f32 %v6741_v34, %v8084_v13  ;;  %v1181_v10 = vpop.f32.mrb[13].mxu1 }
 0x1d7   : > { %v1182_v23 = vadd.f32 %v8084_v13, %v1181_v10  ;;  %v6742_v36 = vpop.f32.mrb[14].mxu1  ;;  %6815 = vmatprep.mubr.bf16.mxu1 %v8213_v25 }
 0x1d8   : > { %v1193_v5 = vadd.f32 %v6742_v36, %v8084_v13  ;;  %v1184_v37 = vpop.f32.mrb[15].mxu1  ;;  %v1306_v52 = vmax.f32 %v1190_v51, 0.0 }
 0x1d9   : > { %v1185_v60 = vadd.f32 %v8084_v13, %v1184_v37  ;;  %6816 = vmatmul.mubr.bf16.gmra.mrb[72].mxu1 %v8211_v42  ;;  %v1304_v1 = vmax.f32 %v1182_v23, 0.0  ;;  %v7487_v23 = vld [vmem:[%s9815_s2 + $0xb8] sm:$0xff]  }
 0x1da   : > { %v1307_v29 = vmax.f32 %v1193_v5, 0.0  ;;  %6853 = vmatprep.subr.bf16.mxu0 %v7487_v23 }
 0x1db   : > { %v1305_v18 = vmax.f32 %v1185_v60, 0.0  ;;  %6854 = vmatpush3.bf16.msra.mxu0 %v7487_v23 }
 0x1dc   : > { %v8221_v24 = vpack.c.bf16 %v1307_v29, %v1306_v52 }
 0x1dd   : > { %v6745_v15 = vpop.f32.mrb[16].mxu1  ;;  %v8223_v27 = vpack.c.bf16 %v1305_v18, %v1304_v1 }
 0x1de   : > { %v1206_v34 = vadd.f32 %v6745_v15, %v8084_v13  ;;  %v1197_v10 = vpop.f32.mrb[17].mxu1 }
 0x1df   : > { %9897 = vst [vmem:[#allocation29_spill] sm:$0xff] %v8223_v27  ;;  %v1198_v55 = vadd.f32 %v8084_v13, %v1197_v10  ;;  %v6746_v36 = vpop.f32.mrb[18].mxu1  ;;  %6819 = vmatprep.mubr.bf16.mxu1 %v8223_v27 }
 0x1e0   : > { %v1209_v37 = vadd.f32 %v6746_v36, %v8084_v13  ;;  %v1200_v6 = vpop.f32.mrb[19].mxu1  ;;  %v1310_v5 = vmax.f32 %v1206_v34, 0.0 }
 0x1e1   : > { %v1201_v51 = vadd.f32 %v8084_v13, %v1200_v6  ;;  %6820 = vmatmul.mubr.bf16.gmra.mrb[76].mxu1 %v8221_v24  ;;  %v1308_v52 = vmax.f32 %v1198_v55, 0.0 }
 0x1e2   : > { %v1311_v60 = vmax.f32 %v1209_v37, 0.0 }
 0x1e3   : > { %v1309_v29 = vmax.f32 %v1201_v51, 0.0 }
 0x1e4   : > { %v8234_v1 = vpack.c.bf16 %v1311_v60, %v1310_v5 }
 0x1e5   : > { %v6749_v18 = vpop.f32.mrb[20].mxu1  ;;  %v8236_v15 = vpack.c.bf16 %v1309_v29, %v1308_v52 }
 0x1e6   : > { %9898 = vst [vmem:[#allocation30_spill] sm:$0xff] %v8234_v1  ;;  %v1222_v10 = vadd.f32 %v6749_v18, %v8084_v13  ;;  %v1213_v6 = vpop.f32.mrb[21].mxu1 }
 0x1e7   : > { %9899 = vst [vmem:[#allocation31_spill] sm:$0xff] %v8236_v15  ;;  %v1214_v36 = vadd.f32 %v8084_v13, %v1213_v6  ;;  %v6750_v27 = vpop.f32.mrb[22].mxu1  ;;  %6823 = vmatprep.mubr.bf16.mxu1 %v8236_v15 }
 0x1e8   : > { %v1225_v34 = vadd.f32 %v6750_v27, %v8084_v13  ;;  %v1216_v37 = vpop.f32.mrb[23].mxu1  ;;  %v1314_v51 = vmax.f32 %v1222_v10, 0.0 }
 0x1e9   : > { %v1217_v55 = vadd.f32 %v8084_v13, %v1216_v37  ;;  %6824 = vmatmul.mubr.bf16.gmra.mrb[80].mxu1 %v8234_v1  ;;  %v1312_v5 = vmax.f32 %v1214_v36, 0.0 }
 0x1ea   : > { %v1315_v23 = vmax.f32 %v1225_v34, 0.0 }
 0x1eb   : > { %v1313_v60 = vmax.f32 %v1217_v55, 0.0 }
 0x1ec   : > { %v8244_v52 = vpack.c.bf16 %v1315_v23, %v1314_v51 }
 0x1ed   : > { %v6753_v29 = vpop.f32.mrb[24].mxu1  ;;  %v8246_v18 = vpack.c.bf16 %v1313_v60, %v1312_v5 }
 0x1ee   : > { %9900 = vst [vmem:[#allocation32_spill] sm:$0xff] %v8244_v52  ;;  %v1238_v6 = vadd.f32 %v6753_v29, %v8084_v13  ;;  %v1229_v26 = vpop.f32.mrb[25].mxu1 }
 0x1ef   : > { %9901 = vst [vmem:[#allocation33_spill] sm:$0xff] %v8246_v18  ;;  %v1230_v15 = vadd.f32 %v8084_v13, %v1229_v26  ;;  %v6754_v27 = vpop.f32.mrb[26].mxu1  ;;  %6827 = vmatprep.mubr.bf16.mxu1 %v8246_v18 }
 0x1f0   : > { %v1241_v37 = vadd.f32 %v6754_v27, %v8084_v13  ;;  %v1232_v1 = vpop.f32.mrb[27].mxu1  ;;  %v1318_v36 = vmax.f32 %v1238_v6, 0.0 }
 0x1f1   : > { %v1233_v10 = vadd.f32 %v8084_v13, %v1232_v1  ;;  %6828 = vmatmul.mubr.bf16.gmra.mrb[84].mxu1 %v8244_v52  ;;  %v1316_v55 = vmax.f32 %v1230_v15, 0.0 }
 0x1f2   : > { %v1319_v34 = vmax.f32 %v1241_v37, 0.0 }
 0x1f3   : > { %v1317_v51 = vmax.f32 %v1233_v10, 0.0 }
 0x1f4   : > { %v8254_v23 = vpack.c.bf16 %v1319_v34, %v1318_v36 }
 0x1f5   : > { %v6757_v5 = vpop.f32.mrb[28].mxu1  ;;  %v8256_v60 = vpack.c.bf16 %v1317_v51, %v1316_v55  ;;  %v7488_v51 = vld [vmem:[%s9815_s2 + $0x100] sm:$0xff]  }
 0x1f6   : > { %v1254_v26 = vadd.f32 %v6757_v5, %v8084_v13  ;;  %v1245_v29 = vpop.f32.mrb[29].mxu1  ;;  %6919 = vmatprep.subr.bf16.mxu1 %v7488_v51 }
 0x1f7   : > { %v1246_v18 = vadd.f32 %v8084_v13, %v1245_v29  ;;  %v6758_v27 = vpop.f32.mrb[30].mxu1  ;;  %6831 = vmatprep.mubr.bf16.mxu1 %v8256_v60  ;;  %6920 = vmatpush3.bf16.msra.mxu1 %v7488_v51 }
 0x1f8   : > { %v1257_v1 = vadd.f32 %v6758_v27, %v8084_v13  ;;  %v1248_v52 = vpop.f32.mrb[31].mxu1  ;;  %v1322_v15 = vmax.f32 %v1254_v26, 0.0 }
 0x1f9   : > { %v1249_v6 = vadd.f32 %v8084_v13, %v1248_v52  ;;  %6832 = vmatmul.mubr.bf16.gmra.mrb[88].mxu1 %v8254_v23  ;;  %v1320_v10 = vmax.f32 %v1246_v18, 0.0  ;;  %v8276_v13 = vld [vmem:[%s9816_s3 + $0x2] ss:$0 sm:$0xff] }
 0x1fa   : > { %v1323_v37 = vmax.f32 %v1257_v1, 0.0 }
 0x1fb   : > { %v1321_v36 = vmax.f32 %v1249_v6, 0.0 }
 0x1fc   : > { %v8264_v34 = vpack.c.bf16 %v1323_v37, %v1322_v15 }
 0x1fd   : > { %v8266_v55 = vpack.c.bf16 %v1321_v36, %v1320_v10  ;;  %v7489_v10 = vld [vmem:[%s9815_s2 + $0x108] sm:$0xff]  }
 0x1fe   : > { %6921 = vmatprep.subr.bf16.mxu1 %v7489_v10 }
 0x1ff   : > { %9902 = vst [vmem:[#allocation34_spill] sm:$0xff] %v8266_v55  ;;  %6835 = vmatprep.mubr.bf16.mxu1 %v8266_v55  ;;  %6922 = vmatpush3.bf16.msra.mxu1 %v7489_v10 }
 0x201   : > { %6836 = vmatmul.mubr.bf16.gmra.mrb[92].mxu1 %v8264_v34 }
 0x25c   : > { %v6777_v52 = vpop.f32.mrb[32].mxu1 }
 0x25d   : > { %v1472_v18 = vadd.f32 %v6777_v52, %v8276_v13  ;;  %v1463_v5 = vpop.f32.mrb[33].mxu1  ;;  %v7490_v52 = vld [vmem:[%s9815_s2 + $0x110] sm:$0xff]  }
 0x25e   : > { %v1464_v26 = vadd.f32 %v8276_v13, %v1463_v5  ;;  %v6778_v29 = vpop.f32.mrb[34].mxu1  ;;  %6923 = vmatprep.subr.bf16.mxu1 %v7490_v52 }
 0x25f   : > { %v1475_v27 = vadd.f32 %v6778_v29, %v8276_v13  ;;  %v1466_v1 = vpop.f32.mrb[35].mxu1  ;;  %v1720_v15 = vmax.f32 %v1472_v18, 0.0  ;;  %v1815_v29 = vadd.bf16 %v8096_v58, %v7849_v39  ;;  %v1814_v18 = vadd.bf16 %v8101_v62, %v7847_v38  ;;  %6924 = vmatpush3.bf16.msra.mxu1 %v7490_v52 }
 0x260   : > { %v1467_v6 = vadd.f32 %v8276_v13, %v1466_v1  ;;  %v1718_v36 = vmax.f32 %v1464_v26, 0.0 }
 0x261   : > { %v1721_v37 = vmax.f32 %v1475_v27, 0.0 }
 0x262   : > { %v1719_v51 = vmax.f32 %v1467_v6, 0.0 }
 0x263   : > { %v1783_v5 = vpack.c.bf16 %v1721_v37, %v1720_v15  ;;  %v7491_v15 = vld [vmem:[%s9815_s2 + $0x118] sm:$0xff]  }
 0x264   : > { %v1782_v55 = vpack.c.bf16 %v1719_v51, %v1718_v36  ;;  %v6781_v27 = vpop.f32.mrb[36].mxu1  ;;  %6925 = vmatprep.subr.bf16.mxu1 %v7491_v15 }
 0x265   : > { %v1847_v1 = vadd.bf16 %v1815_v29, %v1783_v5  ;;  %v1488_v26 = vadd.f32 %v6781_v27, %v8276_v13  ;;  %v1479_v6 = vpop.f32.mrb[37].mxu1  ;;  %6926 = vmatpush3.bf16.msra.mxu1 %v7491_v15 }
 0x266   : > { %v1846_v37 = vadd.bf16 %v1814_v18, %v1782_v55  ;;  %v1480_v39 = vadd.f32 %v8276_v13, %v1479_v6  ;;  %v6782_v58 = vpop.f32.mrb[38].mxu1  ;;  %6855 = vmatprep.mubr.bf16.mxu0 %v1782_v55  ;;  %v1817_v6 = vadd.bf16 %v8112_v28, %v7864_v57 }
 0x267   : > { %v6001_v36 = vcombine.low %v1847_v1, %v1847_v1  ;;  %v6002_v51 = vcombine.high %v1847_v1, %v1847_v1  ;;  %v1491_v38 = vadd.f32 %v6782_v58, %v8276_v13  ;;  %v1482_v10 = vpop.f32.mrb[39].mxu1  ;;  %6856 = vmatmul.mubr.bf16.vlgmr.msra.gmra.mrb[32].mxu0 %v1783_v5  ;;  %v1724_v55 = vmax.f32 %v1488_v26, 0.0  ;;  %v7492_v58 = vld [vmem:[%s9815_s2 + $0x120] sm:$0xff]  }
 0x268   : > { %v5999_v29 = vcombine.low %v1846_v37, %v1846_v37  ;;  %v6000_v27 = vcombine.high %v1846_v37, %v1846_v37  ;;  %v1483_v62 = vadd.f32 %v8276_v13, %v1482_v10  ;;  %v1722_v5 = vmax.f32 %v1480_v39, 0.0  ;;  %6927 = vmatprep.subr.bf16.mxu1 %v7492_v58  ;;  %v7493_v39 = vld [vmem:[%s9815_s2 + $0x128] sm:$0xff]  }
 0x269   : > { %2104 = vst [vmem:[%s8305_s15 + $0x8] sm:$0xf] %v6001_v36  ;;  %2105 = vst [vmem:[%s8305_s15 + $0xc] sm:$0xf] %v6002_v51  ;;  %v1725_v18 = vmax.f32 %v1491_v38, 0.0  ;;  %v1816_v36 = vadd.bf16 %v8117_v35, %v7857_v48  ;;  %6928 = vmatpush3.bf16.msra.mxu1 %v7492_v58  ;;  %v1818_v58 = vadd.bf16 %v8133_v3, %v7871_v2 }
 0x26a   : > { %2102 = vst [vmem:[%s8305_s15] sm:$0xf] %v5999_v29  ;;  %2103 = vst [vmem:[%s8305_s15 + $0x4] sm:$0xf] %v6000_v27  ;;  %v1723_v52 = vmax.f32 %v1483_v62, 0.0  ;;  %6929 = vmatprep.subr.bf16.mxu1 %v7493_v39 }
 0x26b   : > { %v1785_v1 = vpack.c.bf16 %v1725_v18, %v1724_v55 }
 0x26c   : > { %v1784_v37 = vpack.c.bf16 %v1723_v52, %v1722_v5  ;;  %v6785_v51 = vpop.f32.mrb[40].mxu1 }
 0x26d   : > { %v1849_v38 = vadd.bf16 %v1817_v6, %v1785_v1  ;;  %v1504_v26 = vadd.f32 %v6785_v51, %v8276_v13  ;;  %v1495_v10 = vpop.f32.mrb[41].mxu1  ;;  %6930 = vmatpush3.bf16.msra.mxu1 %v7493_v39 }
 0x26e   : > { %v1848_v62 = vadd.bf16 %v1816_v36, %v1784_v37  ;;  %v1496_v29 = vadd.f32 %v8276_v13, %v1495_v10  ;;  %v6786_v27 = vpop.f32.mrb[42].mxu1  ;;  %6859 = vmatprep.mubr.bf16.mxu0 %v1784_v37  ;;  %v7494_v37 = vld [vmem:[%s9815_s2 + $0x130] sm:$0xff]  }
 0x26f   : > { %v6005_v55 = vcombine.low %v1849_v38, %v1849_v38  ;;  %v6006_v15 = vcombine.high %v1849_v38, %v1849_v38  ;;  %v1507_v18 = vadd.f32 %v6786_v27, %v8276_v13  ;;  %v1498_v5 = vpop.f32.mrb[43].mxu1  ;;  %6860 = vmatmul.mubr.bf16.gmra.mrb[36].mxu0 %v1785_v1  ;;  %v1728_v36 = vmax.f32 %v1504_v26, 0.0  ;;  %6931 = vmatprep.subr.bf16.mxu1 %v7494_v37 }
 0x270   : > { %v6003_v52 = vcombine.low %v1848_v62, %v1848_v62  ;;  %v6004_v6 = vcombine.high %v1848_v62, %v1848_v62  ;;  %v1499_v51 = vadd.f32 %v8276_v13, %v1498_v5  ;;  %v1726_v38 = vmax.f32 %v1496_v29, 0.0 }
 0x271   : > { %2108 = vst [vmem:[%s8305_s15 + $0x18] sm:$0xf] %v6005_v55  ;;  %2109 = vst [vmem:[%s8305_s15 + $0x1c] sm:$0xf] %v6006_v15  ;;  %v1729_v57 = vmax.f32 %v1507_v18, 0.0  ;;  %v1819_v1 = vadd.bf16 %v8128_v61, %v7878_v11  ;;  %6932 = vmatpush3.bf16.msra.mxu1 %v7494_v37 }
 0x272   : > { %2106 = vst [vmem:[%s8305_s15 + $0x10] sm:$0xf] %v6003_v52  ;;  %2107 = vst [vmem:[%s8305_s15 + $0x14] sm:$0xf] %v6004_v6  ;;  %v1727_v10 = vmax.f32 %v1499_v51, 0.0 }
 0x273   : > { %v1787_v27 = vpack.c.bf16 %v1729_v57, %v1728_v36  ;;  %v7495_v57 = vld [vmem:[%s9815_s2 + $0x138] sm:$0xff]  }
 0x274   : > { %v1786_v62 = vpack.c.bf16 %v1727_v10, %v1726_v38  ;;  %v6789_v55 = vpop.f32.mrb[44].mxu1  ;;  %6933 = vmatprep.subr.bf16.mxu1 %v7495_v57 }
 0x275   : > { %v1851_v26 = vadd.bf16 %v1819_v1, %v1787_v27  ;;  %v1520_v15 = vadd.f32 %v6789_v55, %v8276_v13  ;;  %v1511_v18 = vpop.f32.mrb[45].mxu1  ;;  %6934 = vmatpush3.bf16.msra.mxu1 %v7495_v57 }
 0x276   : > { %v1850_v29 = vadd.bf16 %v1818_v58, %v1786_v62  ;;  %v1512_v5 = vadd.f32 %v8276_v13, %v1511_v18  ;;  %v6790_v52 = vpop.f32.mrb[46].mxu1  ;;  %6863 = vmatprep.mubr.bf16.mxu0 %v1786_v62 }
 0x277   : > { %v6009_v6 = vcombine.low %v1851_v26, %v1851_v26  ;;  %v6010_v39 = vcombine.high %v1851_v26, %v1851_v26  ;;  %v1523_v51 = vadd.f32 %v6790_v52, %v8276_v13  ;;  %v1514_v36 = vpop.f32.mrb[47].mxu1  ;;  %6864 = vmatmul.mubr.bf16.gmra.mrb[40].mxu0 %v1787_v27  ;;  %v1732_v58 = vmax.f32 %v1520_v15, 0.0 }
 0x278   : > { %v6007_v38 = vcombine.low %v1850_v29, %v1850_v29  ;;  %v6008_v10 = vcombine.high %v1850_v29, %v1850_v29  ;;  %v1515_v1 = vadd.f32 %v8276_v13, %v1514_v36  ;;  %v1730_v62 = vmax.f32 %v1512_v5, 0.0 }
 0x279   : > { %2112 = vst [vmem:[%s8305_s15 + $0x28] sm:$0xf] %v6009_v6  ;;  %2113 = vst [vmem:[%s8305_s15 + $0x2c] sm:$0xf] %v6010_v39  ;;  %v1733_v55 = vmax.f32 %v1523_v51, 0.0  ;;  %v1821_v26 = vadd.bf16 %v8141_v16, %v7892_v32  ;;  %v1820_v27 = vadd.bf16 %v8143_v40, %v7885_v22 }
 0x27a   : > { %2110 = vst [vmem:[%s8305_s15 + $0x20] sm:$0xf] %v6007_v38  ;;  %2111 = vst [vmem:[%s8305_s15 + $0x24] sm:$0xf] %v6008_v10  ;;  %v1731_v18 = vmax.f32 %v1515_v1, 0.0 }
 0x27b   : > { %v1789_v11 = vpack.c.bf16 %v1733_v55, %v1732_v58 }
 0x27c   : > { %v1788_v52 = vpack.c.bf16 %v1731_v18, %v1730_v62  ;;  %v6793_v29 = vpop.f32.mrb[48].mxu1 }
 0x27d   : > { %v1853_v37 = vadd.bf16 %v1821_v26, %v1789_v11  ;;  %v1536_v15 = vadd.f32 %v6793_v29, %v8276_v13  ;;  %v1527_v6 = vpop.f32.mrb[49].mxu1 }
 0x27e   : > { %v1852_v39 = vadd.bf16 %v1820_v27, %v1788_v52  ;;  %v1528_v5 = vadd.f32 %v8276_v13, %v1527_v6  ;;  %v6794_v51 = vpop.f32.mrb[50].mxu1  ;;  %6867 = vmatprep.mubr.bf16.mxu0 %v1788_v52  ;;  %v1823_v52 = vadd.bf16 %v8151_v7, %v7906_v53 }
 0x27f   : > { %v6013_v36 = vcombine.low %v1853_v37, %v1853_v37  ;;  %v6014_v38 = vcombine.high %v1853_v37, %v1853_v37  ;;  %v1539_v10 = vadd.f32 %v6794_v51, %v8276_v13  ;;  %v1530_v1 = vpop.f32.mrb[51].mxu1  ;;  %6868 = vmatmul.mubr.bf16.gmra.mrb[44].mxu0 %v1789_v11  ;;  %v1736_v62 = vmax.f32 %v1536_v15, 0.0 }
 0x280   : > { %v6011_v57 = vcombine.low %v1852_v39, %v1852_v39  ;;  %v6012_v58 = vcombine.high %v1852_v39, %v1852_v39  ;;  %v1531_v55 = vadd.f32 %v8276_v13, %v1530_v1  ;;  %v1734_v26 = vmax.f32 %v1528_v5, 0.0 }
 0x281   : > { %2116 = vst [vmem:[%s8305_s15 + $0x38] sm:$0xf] %v6013_v36  ;;  %2117 = vst [vmem:[%s8305_s15 + $0x3c] sm:$0xf] %v6014_v38  ;;  %v1737_v18 = vmax.f32 %v1539_v10, 0.0  ;;  %v1822_v11 = vadd.bf16 %v8153_v12, %v7899_v43 }
 0x282   : > { %2114 = vst [vmem:[%s8305_s15 + $0x30] sm:$0xf] %v6011_v57  ;;  %2115 = vst [vmem:[%s8305_s15 + $0x34] sm:$0xf] %v6012_v58  ;;  %v1735_v27 = vmax.f32 %v1531_v55, 0.0 }
 0x283   : > { %v1791_v29 = vpack.c.bf16 %v1737_v18, %v1736_v62 }
 0x284   : > { %v1790_v37 = vpack.c.bf16 %v1735_v27, %v1734_v26  ;;  %v6797_v6 = vpop.f32.mrb[52].mxu1 }
 0x285   : > { %v1855_v39 = vadd.bf16 %v1823_v52, %v1791_v29  ;;  %v1552_v51 = vadd.f32 %v6797_v6, %v8276_v13  ;;  %v1543_v15 = vpop.f32.mrb[53].mxu1 }
 0x286   : > { %v1854_v36 = vadd.bf16 %v1822_v11, %v1790_v37  ;;  %v1544_v5 = vadd.f32 %v8276_v13, %v1543_v15  ;;  %v6798_v38 = vpop.f32.mrb[54].mxu1  ;;  %6871 = vmatprep.mubr.bf16.mxu0 %v1790_v37  ;;  %v1825_v37 = vadd.bf16 %v8161_v46, %v7920_v9 }
 0x287   : > { %v6017_v10 = vcombine.low %v1855_v39, %v1855_v39  ;;  %v6018_v1 = vcombine.high %v1855_v39, %v1855_v39  ;;  %v1555_v57 = vadd.f32 %v6798_v38, %v8276_v13  ;;  %v1546_v58 = vpop.f32.mrb[55].mxu1  ;;  %6872 = vmatmul.mubr.bf16.gmra.mrb[48].mxu0 %v1791_v29  ;;  %v1740_v26 = vmax.f32 %v1552_v51, 0.0 }
 0x288   : > { %v6015_v55 = vcombine.low %v1854_v36, %v1854_v36  ;;  %v6016_v62 = vcombine.high %v1854_v36, %v1854_v36  ;;  %v1547_v18 = vadd.f32 %v8276_v13, %v1546_v58  ;;  %v1738_v52 = vmax.f32 %v1544_v5, 0.0 }
 0x289   : > { %2120 = vst [vmem:[%s8305_s15 + $0x48] sm:$0xf] %v6017_v10  ;;  %2121 = vst [vmem:[%s8305_s15 + $0x4c] sm:$0xf] %v6018_v1  ;;  %v1741_v27 = vmax.f32 %v1555_v57, 0.0  ;;  %v1824_v29 = vadd.bf16 %v8163_v49, %v7913_v63 }
 0x28a   : > { %2118 = vst [vmem:[%s8305_s15 + $0x40] sm:$0xf] %v6015_v55  ;;  %2119 = vst [vmem:[%s8305_s15 + $0x44] sm:$0xf] %v6016_v62  ;;  %v1739_v11 = vmax.f32 %v1547_v18, 0.0 }
 0x28b   : > { %v1793_v6 = vpack.c.bf16 %v1741_v27, %v1740_v26 }
 0x28c   : > { %v1792_v39 = vpack.c.bf16 %v1739_v11, %v1738_v52  ;;  %v6801_v15 = vpop.f32.mrb[56].mxu1 }
 0x28d   : > { %v1857_v36 = vadd.bf16 %v1825_v37, %v1793_v6  ;;  %v1568_v38 = vadd.f32 %v6801_v15, %v8276_v13  ;;  %v1559_v51 = vpop.f32.mrb[57].mxu1 }
 0x28e   : > { %v1856_v10 = vadd.bf16 %v1824_v29, %v1792_v39  ;;  %v1560_v5 = vadd.f32 %v8276_v13, %v1559_v51  ;;  %v6802_v1 = vpop.f32.mrb[58].mxu1  ;;  %6875 = vmatprep.mubr.bf16.mxu0 %v1792_v39  ;;  %v1827_v39 = vadd.bf16 %v8171_v20, %v7934_v33 }
 0x28f   : > { %v6021_v57 = vcombine.low %v1857_v36, %v1857_v36  ;;  %v6022_v58 = vcombine.high %v1857_v36, %v1857_v36  ;;  %v1571_v55 = vadd.f32 %v6802_v1, %v8276_v13  ;;  %v1562_v62 = vpop.f32.mrb[59].mxu1  ;;  %6876 = vmatmul.mubr.bf16.gmra.mrb[52].mxu0 %v1793_v6  ;;  %v1744_v52 = vmax.f32 %v1568_v38, 0.0 }
 0x290   : > { %v6019_v18 = vcombine.low %v1856_v10, %v1856_v10  ;;  %v6020_v26 = vcombine.high %v1856_v10, %v1856_v10  ;;  %v1563_v27 = vadd.f32 %v8276_v13, %v1562_v62  ;;  %v1742_v37 = vmax.f32 %v1560_v5, 0.0 }
 0x291   : > { %2124 = vst [vmem:[%s8305_s15 + $0x58] sm:$0xf] %v6021_v57  ;;  %2125 = vst [vmem:[%s8305_s15 + $0x5c] sm:$0xf] %v6022_v58  ;;  %v1745_v11 = vmax.f32 %v1571_v55, 0.0  ;;  %v1826_v6 = vadd.bf16 %v8173_v31, %v7927_v21 }
 0x292   : > { %2122 = vst [vmem:[%s8305_s15 + $0x50] sm:$0xf] %v6019_v18  ;;  %2123 = vst [vmem:[%s8305_s15 + $0x54] sm:$0xf] %v6020_v26  ;;  %v1743_v29 = vmax.f32 %v1563_v27, 0.0 }
 0x293   : > { %v1795_v15 = vpack.c.bf16 %v1745_v11, %v1744_v52 }
 0x294   : > { %v1794_v36 = vpack.c.bf16 %v1743_v29, %v1742_v37  ;;  %v6805_v51 = vpop.f32.mrb[60].mxu1 }
 0x295   : > { %v1859_v10 = vadd.bf16 %v1827_v39, %v1795_v15  ;;  %v1584_v1 = vadd.f32 %v6805_v51, %v8276_v13  ;;  %v1575_v38 = vpop.f32.mrb[61].mxu1 }
 0x296   : > { %v1858_v57 = vadd.bf16 %v1826_v6, %v1794_v36  ;;  %v1576_v5 = vadd.f32 %v8276_v13, %v1575_v38  ;;  %v6806_v58 = vpop.f32.mrb[62].mxu1  ;;  %6879 = vmatprep.mubr.bf16.mxu0 %v1794_v36  ;;  %v1829_v36 = vadd.bf16 %v8181_v14, %v7948_v56 }
 0x297   : > { %v6025_v55 = vcombine.low %v1859_v10, %v1859_v10  ;;  %v6026_v62 = vcombine.high %v1859_v10, %v1859_v10  ;;  %v1587_v18 = vadd.f32 %v6806_v58, %v8276_v13  ;;  %v1578_v26 = vpop.f32.mrb[63].mxu1  ;;  %6880 = vmatmul.mubr.bf16.gmra.mrb[56].mxu0 %v1795_v15  ;;  %v1748_v37 = vmax.f32 %v1584_v1, 0.0 }
 0x298   : > { %v6023_v27 = vcombine.low %v1858_v57, %v1858_v57  ;;  %v6024_v52 = vcombine.high %v1858_v57, %v1858_v57  ;;  %v1579_v11 = vadd.f32 %v8276_v13, %v1578_v26  ;;  %v1746_v39 = vmax.f32 %v1576_v5, 0.0 }
 0x299   : > { %2128 = vst [vmem:[%s8305_s15 + $0x68] sm:$0xf] %v6025_v55  ;;  %2129 = vst [vmem:[%s8305_s15 + $0x6c] sm:$0xf] %v6026_v62  ;;  %v1749_v29 = vmax.f32 %v1587_v18, 0.0  ;;  %v1828_v15 = vadd.bf16 %v8184_v19, %v7941_v45 }
 0x29a   : > { %2126 = vst [vmem:[%s8305_s15 + $0x60] sm:$0xf] %v6023_v27  ;;  %2127 = vst [vmem:[%s8305_s15 + $0x64] sm:$0xf] %v6024_v52  ;;  %v1747_v6 = vmax.f32 %v1579_v11, 0.0 }
 0x29b   : > { %v1797_v51 = vpack.c.bf16 %v1749_v29, %v1748_v37 }
 0x29c   : > { %v1796_v10 = vpack.c.bf16 %v1747_v6, %v1746_v39  ;;  %v6809_v38 = vpop.f32.mrb[64].mxu1 }
 0x29d   : > { %v1861_v57 = vadd.bf16 %v1829_v36, %v1797_v51  ;;  %v1600_v58 = vadd.f32 %v6809_v38, %v8276_v13  ;;  %v1591_v1 = vpop.f32.mrb[65].mxu1 }
 0x29e   : > { %v1860_v55 = vadd.bf16 %v1828_v15, %v1796_v10  ;;  %v1592_v5 = vadd.f32 %v8276_v13, %v1591_v1  ;;  %v6810_v62 = vpop.f32.mrb[66].mxu1  ;;  %6883 = vmatprep.mubr.bf16.mxu0 %v1796_v10  ;;  %v1831_v10 = vadd.bf16 %v8191_v54, %v7962_v17 }
 0x29f   : > { %v6029_v18 = vcombine.low %v1861_v57, %v1861_v57  ;;  %v6030_v26 = vcombine.high %v1861_v57, %v1861_v57  ;;  %v1603_v27 = vadd.f32 %v6810_v62, %v8276_v13  ;;  %v1594_v52 = vpop.f32.mrb[67].mxu1  ;;  %6884 = vmatmul.mubr.bf16.gmra.mrb[60].mxu0 %v1797_v51  ;;  %v1752_v39 = vmax.f32 %v1600_v58, 0.0 }
 0x2a0   : > { %v6027_v11 = vcombine.low %v1860_v55, %v1860_v55  ;;  %v6028_v37 = vcombine.high %v1860_v55, %v1860_v55  ;;  %v1595_v29 = vadd.f32 %v8276_v13, %v1594_v52  ;;  %v1750_v36 = vmax.f32 %v1592_v5, 0.0 }
 0x2a1   : > { %2132 = vst [vmem:[%s8305_s15 + $0x78] sm:$0xf] %v6029_v18  ;;  %2133 = vst [vmem:[%s8305_s15 + $0x7c] sm:$0xf] %v6030_v26  ;;  %v1753_v6 = vmax.f32 %v1603_v27, 0.0  ;;  %v1830_v51 = vadd.bf16 %v8193_v0, %v7955_v4 }
 0x2a2   : > { %2130 = vst [vmem:[%s8305_s15 + $0x70] sm:$0xf] %v6027_v11  ;;  %2131 = vst [vmem:[%s8305_s15 + $0x74] sm:$0xf] %v6028_v37  ;;  %v1751_v15 = vmax.f32 %v1595_v29, 0.0 }
 0x2a3   : > { %v1799_v38 = vpack.c.bf16 %v1753_v6, %v1752_v39 }
 0x2a4   : > { %v1798_v57 = vpack.c.bf16 %v1751_v15, %v1750_v36  ;;  %v6813_v1 = vpop.f32.mrb[68].mxu1 }
 0x2a5   : > { %v1863_v55 = vadd.bf16 %v1831_v10, %v1799_v38  ;;  %v1616_v62 = vadd.f32 %v6813_v1, %v8276_v13  ;;  %v1607_v58 = vpop.f32.mrb[69].mxu1 }
 0x2a6   : > { %v1862_v18 = vadd.bf16 %v1830_v51, %v1798_v57  ;;  %v1608_v5 = vadd.f32 %v8276_v13, %v1607_v58  ;;  %v6814_v26 = vpop.f32.mrb[70].mxu1  ;;  %6887 = vmatprep.mubr.bf16.mxu0 %v1798_v57  ;;  %v1833_v57 = vadd.bf16 %v8201_v47, %v7983_v44 }
 0x2a7   : > { %v6033_v27 = vcombine.low %v1863_v55, %v1863_v55  ;;  %v6034_v52 = vcombine.high %v1863_v55, %v1863_v55  ;;  %v1619_v11 = vadd.f32 %v6814_v26, %v8276_v13  ;;  %v1610_v37 = vpop.f32.mrb[71].mxu1  ;;  %6888 = vmatmul.mubr.bf16.gmra.mrb[64].mxu0 %v1799_v38  ;;  %v1756_v36 = vmax.f32 %v1616_v62, 0.0 }
 0x2a8   : > { %v6031_v29 = vcombine.low %v1862_v18, %v1862_v18  ;;  %v6032_v39 = vcombine.high %v1862_v18, %v1862_v18  ;;  %v1611_v6 = vadd.f32 %v8276_v13, %v1610_v37  ;;  %v1754_v10 = vmax.f32 %v1608_v5, 0.0 }
 0x2a9   : > { %2136 = vst [vmem:[%s8305_s15 + $0x88] sm:$0xf] %v6033_v27  ;;  %2137 = vst [vmem:[%s8305_s15 + $0x8c] sm:$0xf] %v6034_v52  ;;  %v1757_v15 = vmax.f32 %v1619_v11, 0.0  ;;  %v1832_v38 = vadd.bf16 %v8203_v50, %v7973_v30  ;;  %v9912_v30 = vld [vmem:[#allocation33_spill] sm:$0xff] }
 0x2aa   : > { %2134 = vst [vmem:[%s8305_s15 + $0x80] sm:$0xf] %v6031_v29  ;;  %2135 = vst [vmem:[%s8305_s15 + $0x84] sm:$0xf] %v6032_v39  ;;  %v1755_v51 = vmax.f32 %v1611_v6, 0.0 }
 0x2ab   : > { %v1801_v1 = vpack.c.bf16 %v1757_v15, %v1756_v36 }
 0x2ac   : > { %v1800_v55 = vpack.c.bf16 %v1755_v51, %v1754_v10  ;;  %v6817_v58 = vpop.f32.mrb[72].mxu1 }
 0x2ad   : > { %v1865_v18 = vadd.bf16 %v1833_v57, %v1801_v1  ;;  %v1632_v26 = vadd.f32 %v6817_v58, %v8276_v13  ;;  %v1623_v62 = vpop.f32.mrb[73].mxu1 }
 0x2ae   : > { %v1864_v27 = vadd.bf16 %v1832_v38, %v1800_v55  ;;  %v1624_v5 = vadd.f32 %v8276_v13, %v1623_v62  ;;  %v6818_v52 = vpop.f32.mrb[74].mxu1  ;;  %6891 = vmatprep.mubr.bf16.mxu0 %v1800_v55  ;;  %v1835_v55 = vadd.bf16 %v8211_v42, %v8003_v8 }
 0x2af   : > { %v6037_v11 = vcombine.low %v1865_v18, %v1865_v18  ;;  %v6038_v37 = vcombine.high %v1865_v18, %v1865_v18  ;;  %v1635_v29 = vadd.f32 %v6818_v52, %v8276_v13  ;;  %v1626_v39 = vpop.f32.mrb[75].mxu1  ;;  %6892 = vmatmul.mubr.bf16.gmra.mrb[68].mxu0 %v1801_v1  ;;  %v1760_v10 = vmax.f32 %v1632_v26, 0.0 }
 0x2b0   : > { %v6035_v6 = vcombine.low %v1864_v27, %v1864_v27  ;;  %v6036_v36 = vcombine.high %v1864_v27, %v1864_v27  ;;  %v1627_v15 = vadd.f32 %v8276_v13, %v1626_v39  ;;  %v1758_v57 = vmax.f32 %v1624_v5, 0.0 }
 0x2b1   : > { %2140 = vst [vmem:[%s8305_s15 + $0x98] sm:$0xf] %v6037_v11  ;;  %2141 = vst [vmem:[%s8305_s15 + $0x9c] sm:$0xf] %v6038_v37  ;;  %v1761_v51 = vmax.f32 %v1635_v29, 0.0  ;;  %v1834_v1 = vadd.bf16 %v8213_v25, %v7993_v59  ;;  %v9908_v59 = vld [vmem:[#allocation31_spill] sm:$0xff] }
 0x2b2   : > { %2138 = vst [vmem:[%s8305_s15 + $0x90] sm:$0xf] %v6035_v6  ;;  %2139 = vst [vmem:[%s8305_s15 + $0x94] sm:$0xf] %v6036_v36  ;;  %v1759_v38 = vmax.f32 %v1627_v15, 0.0 }
 0x2b3   : > { %v1803_v58 = vpack.c.bf16 %v1761_v51, %v1760_v10 }
 0x2b4   : > { %v1802_v18 = vpack.c.bf16 %v1759_v38, %v1758_v57  ;;  %v6821_v62 = vpop.f32.mrb[76].mxu1 }
 0x2b5   : > { %v1867_v27 = vadd.bf16 %v1835_v55, %v1803_v58  ;;  %v1648_v52 = vadd.f32 %v6821_v62, %v8276_v13  ;;  %v1639_v26 = vpop.f32.mrb[77].mxu1 }
 0x2b6   : > { %v1866_v11 = vadd.bf16 %v1834_v1, %v1802_v18  ;;  %v1640_v5 = vadd.f32 %v8276_v13, %v1639_v26  ;;  %v6822_v37 = vpop.f32.mrb[78].mxu1  ;;  %6895 = vmatprep.mubr.bf16.mxu0 %v1802_v18  ;;  %v1837_v18 = vadd.bf16 %v8221_v24, %v8023_v41  ;;  %v9903_v26 = vld [vmem:[#allocation17_spill] sm:$0xff]  ;;  %v9906_v41 = vld [vmem:[#allocation30_spill] sm:$0xff] }
 0x2b7   : > { %v6041_v29 = vcombine.low %v1867_v27, %v1867_v27  ;;  %v6042_v39 = vcombine.high %v1867_v27, %v1867_v27  ;;  %v1651_v6 = vadd.f32 %v6822_v37, %v8276_v13  ;;  %v1642_v36 = vpop.f32.mrb[79].mxu1  ;;  %6896 = vmatmul.mubr.bf16.gmra.mrb[72].mxu0 %v1803_v58  ;;  %v1764_v57 = vmax.f32 %v1648_v52, 0.0  ;;  %v9904_v37 = vld [vmem:[#allocation29_spill] sm:$0xff] }
 0x2b8   : > { %v6039_v15 = vcombine.low %v1866_v11, %v1866_v11  ;;  %v6040_v10 = vcombine.high %v1866_v11, %v1866_v11  ;;  %v1643_v51 = vadd.f32 %v8276_v13, %v1642_v36  ;;  %v1762_v55 = vmax.f32 %v1640_v5, 0.0 }
 0x2b9   : > { %2144 = vst [vmem:[%s8305_s15 + $0xa8] sm:$0xf] %v6041_v29  ;;  %2145 = vst [vmem:[%s8305_s15 + $0xac] sm:$0xf] %v6042_v39  ;;  %v1765_v38 = vmax.f32 %v1651_v6, 0.0  ;;  %v1836_v58 = vadd.bf16 %v9904_v37, %v9903_v26 }
 0x2ba   : > { %2142 = vst [vmem:[%s8305_s15 + $0xa0] sm:$0xf] %v6039_v15  ;;  %2143 = vst [vmem:[%s8305_s15 + $0xa4] sm:$0xf] %v6040_v10  ;;  %v1763_v1 = vmax.f32 %v1643_v51, 0.0 }
 0x2bb   : > { %v1805_v62 = vpack.c.bf16 %v1765_v38, %v1764_v57 }
 0x2bc   : > { %v1804_v27 = vpack.c.bf16 %v1763_v1, %v1762_v55  ;;  %v6825_v8 = vpop.f32.mrb[80].mxu1 }
 0x2bd   : > { %v1869_v11 = vadd.bf16 %v1837_v18, %v1805_v62  ;;  %v1664_v29 = vadd.f32 %v6825_v8, %v8276_v13  ;;  %v1655_v52 = vpop.f32.mrb[81].mxu1 }
 0x2be   : > { %v1868_v39 = vadd.bf16 %v1836_v58, %v1804_v27  ;;  %v1656_v5 = vadd.f32 %v8276_v13, %v1655_v52  ;;  %v6826_v6 = vpop.f32.mrb[82].mxu1  ;;  %6899 = vmatprep.mubr.bf16.mxu0 %v1804_v27  ;;  %v9905_v27 = vld [vmem:[#allocation20_spill] sm:$0xff] }
 0x2bf   : > { %v6045_v36 = vcombine.low %v1869_v11, %v1869_v11  ;;  %v6046_v15 = vcombine.high %v1869_v11, %v1869_v11  ;;  %v1667_v10 = vadd.f32 %v6826_v6, %v8276_v13  ;;  %v1658_v51 = vpop.f32.mrb[83].mxu1  ;;  %6900 = vmatmul.mubr.bf16.gmra.mrb[76].mxu0 %v1805_v62  ;;  %v1768_v8 = vmax.f32 %v1664_v29, 0.0  ;;  %v9907_v6 = vld [vmem:[#allocation19_spill] sm:$0xff] }
 0x2c0   : > { %v6043_v57 = vcombine.low %v1868_v39, %v1868_v39  ;;  %v6044_v38 = vcombine.high %v1868_v39, %v1868_v39  ;;  %v1659_v55 = vadd.f32 %v8276_v13, %v1658_v51  ;;  %v1766_v18 = vmax.f32 %v1656_v5, 0.0 }
 0x2c1   : > { %2148 = vst [vmem:[%s8305_s15 + $0xb8] sm:$0xf] %v6045_v36  ;;  %2149 = vst [vmem:[%s8305_s15 + $0xbc] sm:$0xf] %v6046_v15  ;;  %v1769_v1 = vmax.f32 %v1667_v10, 0.0  ;;  %v1839_v11 = vadd.bf16 %v9906_v41, %v9905_v27  ;;  %v1838_v62 = vadd.bf16 %v9908_v59, %v9907_v6  ;;  %v9910_v27 = vld [vmem:[#allocation32_spill] sm:$0xff] }
 0x2c2   : > { %2146 = vst [vmem:[%s8305_s15 + $0xb0] sm:$0xf] %v6043_v57  ;;  %2147 = vst [vmem:[%s8305_s15 + $0xb4] sm:$0xf] %v6044_v38  ;;  %v1767_v58 = vmax.f32 %v1659_v55, 0.0 }
 0x2c3   : > { %v1807_v52 = vpack.c.bf16 %v1769_v1, %v1768_v8 }
 0x2c4   : > { %v1806_v26 = vpack.c.bf16 %v1767_v58, %v1766_v18  ;;  %v6829_v44 = vpop.f32.mrb[84].mxu1 }
 0x2c5   : > { %v1871_v39 = vadd.bf16 %v1839_v11, %v1807_v52  ;;  %v1680_v36 = vadd.f32 %v6829_v44, %v8276_v13  ;;  %v1671_v29 = vpop.f32.mrb[85].mxu1 }
 0x2c6   : > { %v1870_v15 = vadd.bf16 %v1838_v62, %v1806_v26  ;;  %v1672_v5 = vadd.f32 %v8276_v13, %v1671_v29  ;;  %v6830_v10 = vpop.f32.mrb[86].mxu1  ;;  %6903 = vmatprep.mubr.bf16.mxu0 %v1806_v26  ;;  %v9909_v26 = vld [vmem:[#allocation22_spill] sm:$0xff] }
 0x2c7   : > { %v6049_v51 = vcombine.low %v1871_v39, %v1871_v39  ;;  %v6050_v57 = vcombine.high %v1871_v39, %v1871_v39  ;;  %v1683_v38 = vadd.f32 %v6830_v10, %v8276_v13  ;;  %v1674_v55 = vpop.f32.mrb[87].mxu1  ;;  %6904 = vmatmul.mubr.bf16.gmra.mrb[80].mxu0 %v1807_v52  ;;  %v1772_v44 = vmax.f32 %v1680_v36, 0.0  ;;  %v9911_v10 = vld [vmem:[#allocation21_spill] sm:$0xff] }
 0x2c8   : > { %v6047_v8 = vcombine.low %v1870_v15, %v1870_v15  ;;  %v6048_v1 = vcombine.high %v1870_v15, %v1870_v15  ;;  %v1675_v18 = vadd.f32 %v8276_v13, %v1674_v55  ;;  %v1770_v11 = vmax.f32 %v1672_v5, 0.0 }
 0x2c9   : > { %2152 = vst [vmem:[%s8305_s15 + $0xc8] sm:$0xf] %v6049_v51  ;;  %2153 = vst [vmem:[%s8305_s15 + $0xcc] sm:$0xf] %v6050_v57  ;;  %v1773_v58 = vmax.f32 %v1683_v38, 0.0  ;;  %v1841_v39 = vadd.bf16 %v9910_v27, %v9909_v26  ;;  %v1840_v52 = vadd.bf16 %v9912_v30, %v9911_v10 }
 0x2ca   : > { %2150 = vst [vmem:[%s8305_s15 + $0xc0] sm:$0xf] %v6047_v8  ;;  %2151 = vst [vmem:[%s8305_s15 + $0xc4] sm:$0xf] %v6048_v1  ;;  %v1771_v62 = vmax.f32 %v1675_v18, 0.0 }
 0x2cb   : > { %v1809_v29 = vpack.c.bf16 %v1773_v58, %v1772_v44 }
 0x2cc   : > { %v1808_v6 = vpack.c.bf16 %v1771_v62, %v1770_v11  ;;  %v6833_v17 = vpop.f32.mrb[88].mxu1 }
 0x2cd   : > { %v1873_v15 = vadd.bf16 %v1841_v39, %v1809_v29  ;;  %v1696_v51 = vadd.f32 %v6833_v17, %v8276_v13  ;;  %v1687_v36 = vpop.f32.mrb[89].mxu1 }
 0x2ce   : > { %v1872_v57 = vadd.bf16 %v1840_v52, %v1808_v6  ;;  %v1688_v5 = vadd.f32 %v8276_v13, %v1687_v36  ;;  %v6834_v38 = vpop.f32.mrb[90].mxu1  ;;  %6907 = vmatprep.mubr.bf16.mxu0 %v1808_v6  ;;  %v9913_v6 = vld [vmem:[#allocation24_spill] sm:$0xff] }
 0x2cf   : > { %v6053_v55 = vcombine.low %v1873_v15, %v1873_v15  ;;  %v6054_v8 = vcombine.high %v1873_v15, %v1873_v15  ;;  %v1699_v1 = vadd.f32 %v6834_v38, %v8276_v13  ;;  %v1690_v18 = vpop.f32.mrb[91].mxu1  ;;  %6908 = vmatmul.mubr.bf16.gmra.mrb[84].mxu0 %v1809_v29  ;;  %v1776_v17 = vmax.f32 %v1696_v51, 0.0  ;;  %v9914_v38 = vld [vmem:[#allocation23_spill] sm:$0xff] }
 0x2d0   : > { %v6051_v44 = vcombine.low %v1872_v57, %v1872_v57  ;;  %v6052_v58 = vcombine.high %v1872_v57, %v1872_v57  ;;  %v1691_v11 = vadd.f32 %v8276_v13, %v1690_v18  ;;  %v1774_v39 = vmax.f32 %v1688_v5, 0.0 }
 0x2d1   : > { %2156 = vst [vmem:[%s8305_s15 + $0xd8] sm:$0xf] %v6053_v55  ;;  %2157 = vst [vmem:[%s8305_s15 + $0xdc] sm:$0xf] %v6054_v8  ;;  %v1777_v62 = vmax.f32 %v1699_v1, 0.0  ;;  %v1843_v15 = vadd.bf16 %v8254_v23, %v9913_v6  ;;  %v1842_v29 = vadd.bf16 %v8256_v60, %v9914_v38 }
 0x2d2   : > { %2154 = vst [vmem:[%s8305_s15 + $0xd0] sm:$0xf] %v6051_v44  ;;  %2155 = vst [vmem:[%s8305_s15 + $0xd4] sm:$0xf] %v6052_v58  ;;  %v1775_v52 = vmax.f32 %v1691_v11, 0.0 }
 0x2d3   : > { %v1811_v36 = vpack.c.bf16 %v1777_v62, %v1776_v17 }
 0x2d4   : > { %v1810_v26 = vpack.c.bf16 %v1775_v52, %v1774_v39  ;;  %v6837_v10 = vpop.f32.mrb[92].mxu1 }
 0x2d5   : > { %v1875_v57 = vadd.bf16 %v1843_v15, %v1811_v36  ;;  %v1712_v55 = vadd.f32 %v6837_v10, %v8276_v13  ;;  %v1703_v51 = vpop.f32.mrb[93].mxu1 }
 0x2d6   : > { %v1874_v8 = vadd.bf16 %v1842_v29, %v1810_v26  ;;  %v1704_v5 = vadd.f32 %v8276_v13, %v1703_v51  ;;  %v6838_v1 = vpop.f32.mrb[94].mxu1  ;;  %6911 = vmatprep.mubr.bf16.mxu0 %v1810_v26 }
 0x2d7   : > { %v6057_v18 = vcombine.low %v1875_v57, %v1875_v57  ;;  %v6058_v44 = vcombine.high %v1875_v57, %v1875_v57  ;;  %v1715_v58 = vadd.f32 %v6838_v1, %v8276_v13  ;;  %v1706_v11 = vpop.f32.mrb[95].mxu1  ;;  %6912 = vmatmul.mubr.bf16.gmra.mrb[88].mxu0 %v1811_v36  ;;  %v1780_v10 = vmax.f32 %v1712_v55, 0.0  ;;  %v9915_v57 = vld [vmem:[#allocation26_spill] sm:$0xff] }
 0x2d8   : > { %v6055_v17 = vcombine.low %v1874_v8, %v1874_v8  ;;  %v6056_v62 = vcombine.high %v1874_v8, %v1874_v8  ;;  %v1707_v39 = vadd.f32 %v8276_v13, %v1706_v11  ;;  %v1778_v15 = vmax.f32 %v1704_v5, 0.0  ;;  %v9916_v8 = vld [vmem:[#allocation25_spill] sm:$0xff]  ;;  %v9917_v1 = vld [vmem:[#allocation34_spill] sm:$0xff]  ;;  %v7496_v5 = vld [vmem:[%s9815_s2 + $0xc0] sm:$0xff]  }
 0x2d9   : > { %2160 = vst [vmem:[%s8305_s15 + $0xe8] sm:$0xf] %v6057_v18  ;;  %2161 = vst [vmem:[%s8305_s15 + $0xec] sm:$0xf] %v6058_v44  ;;  %v1781_v52 = vmax.f32 %v1715_v58, 0.0  ;;  %v1845_v36 = vadd.bf16 %v8264_v34, %v9915_v57  ;;  %v1844_v13 = vadd.bf16 %v9917_v1, %v9916_v8  ;;  %6999 = vmatprep.subr.bf16.mxu0 %v7496_v5  ;;  %v9918_v57 = vld [vmem:[#allocation28_spill] sm:$0xff] }
 0x2da   : > { %2158 = vst [vmem:[%s8305_s15 + $0xe0] sm:$0xf] %v6055_v17  ;;  %2159 = vst [vmem:[%s8305_s15 + $0xe4] sm:$0xf] %v6056_v62  ;;  %v1779_v26 = vmax.f32 %v1707_v39, 0.0  ;;  %7000 = vmatpush3.bf16.msra.mxu0 %v7496_v5  ;;  %v7497_v39 = vld [vmem:[%s9815_s2 + $0xc8] sm:$0xff]  }
 0x2db   : > { %v1813_v29 = vpack.c.bf16 %v1781_v52, %v1780_v10  ;;  %v8505_v62 = vld [vmem:[%s9816_s3 + $0x3] ss:$0 sm:$0xff]  ;;  %7001 = vmatprep.subr.bf16.mxu0 %v7497_v39 }
 0x2dc   : > { %v1812_v51 = vpack.c.bf16 %v1779_v26, %v1778_v15 }
 0x2dd   : > { %v1877_v18 = vadd.bf16 %v1845_v36, %v1813_v29 }
 0x2de   : > { %v1876_v44 = vadd.bf16 %v1844_v13, %v1812_v51  ;;  %6915 = vmatprep.mubr.bf16.mxu0 %v1812_v51  ;;  %7002 = vmatpush3.bf16.msra.mxu0 %v7497_v39 }
 0x2df   : > { %v6061_v55 = vcombine.low %v1877_v18, %v1877_v18  ;;  %v6062_v58 = vcombine.high %v1877_v18, %v1877_v18  ;;  %6916 = vmatmul.mubr.bf16.gmra.mrb[92].mxu0 %v1813_v29 }
 0x2e0   : > { %v6059_v11 = vcombine.low %v1876_v44, %v1876_v44  ;;  %v6060_v17 = vcombine.high %v1876_v44, %v1876_v44 }
 0x2e1   : > { %2164 = vst [vmem:[%s8305_s15 + $0xf8] sm:$0xf] %v6061_v55  ;;  %2165 = vst [vmem:[%s8305_s15 + $0xfc] sm:$0xf] %v6062_v58  ;;  %v7498_v55 = vld [vmem:[%s9815_s2 + $0xd0] sm:$0xff]   ;;  %v7499_v58 = vld [vmem:[%s9815_s2 + $0xd8] sm:$0xff]  }
 0x2e2   : > { %2162 = vst [vmem:[%s8305_s15 + $0xf0] sm:$0xf] %v6059_v11  ;;  %2163 = vst [vmem:[%s8305_s15 + $0xf4] sm:$0xf] %v6060_v17  ;;  %7003 = vmatprep.subr.bf16.mxu0 %v7498_v55  ;;  %s7633_s15 = smov [#allocation2]  }
 0x2e3   : > { %7004 = vmatpush3.bf16.msra.mxu0 %v7498_v55  ;;  %s7540_s11 = sshll.u32 %s7633_s15, 4  ;;  %s7541_s11 = int_to_ptr.vmem [resolvable:$false] %s7540_s11 }
 0x2e4   : > { %7005 = vmatprep.subr.bf16.mxu0 %v7499_v58  ;;  %s7542_s17 = scalar_lea.vmem %s7541_s11, 8192  ;;  %p7543_p0 = scmp.lt.s32.totalorder %s9538_s13, %s7541_s11 }
 0x2e5   : > { %p7544_p1 = scmp.lt.s32.totalorder %s7542_s17, %s7536_s14 }
 0x2e7   : > { %7006 = vmatpush3.bf16.msra.mxu0 %v7499_v58  ;;  %p7545_p2 = por %p7544_p1, %p7543_p0 }
 0x2e9   : > { %p7546_p3 = pnand %p7545_p2, %p7539_p13 }
 0x33a   : > { %v6857_v10 = vpop.f32.mrb[32].mxu0 }
 0x33b   : > { %v2282_v52 = vadd.f32 %v6857_v10, %v8505_v62  ;;  %v2273_v15 = vpop.f32.mrb[33].mxu0 }
 0x33c   : > { %v2274_v26 = vadd.f32 %v8505_v62, %v2273_v15  ;;  %v6858_v29 = vpop.f32.mrb[34].mxu0 }
 0x33d   : > { %v2285_v36 = vadd.f32 %v6858_v29, %v8505_v62  ;;  %v2276_v51 = vpop.f32.mrb[35].mxu0  ;;  %v2530_v18 = vmax.f32 %v2282_v52, 0.0  ;;  %v7500_v52 = vld [vmem:[%s9815_s2 + $0xe0] sm:$0xff]  }
 0x33e   : > { %v2277_v13 = vadd.f32 %v8505_v62, %v2276_v51  ;;  %v2528_v11 = vmax.f32 %v2274_v26, 0.0  ;;  %v9919_v26 = vld [vmem:[#allocation27_spill] sm:$0xff]  ;;  %7007 = vmatprep.subr.bf16.mxu0 %v7500_v52 }
 0x33f   : > { %v2531_v44 = vmax.f32 %v2285_v36, 0.0  ;;  %7008 = vmatpush3.bf16.msra.mxu0 %v7500_v52 }
 0x340   : > { %v2529_v17 = vmax.f32 %v2277_v13, 0.0 }
 0x341   : > { %v2593_v5 = vpack.c.bf16 %v2531_v44, %v2530_v18 }
 0x342   : > { %v2592_v39 = vpack.c.bf16 %v2529_v17, %v2528_v11  ;;  %v6861_v10 = vpop.f32.mrb[36].mxu0 }
 0x343   : > { %v2298_v15 = vadd.f32 %v6861_v10, %v8505_v62  ;;  %v2289_v29 = vpop.f32.mrb[37].mxu0  ;;  %v2625_v13 = vadd.bf16 %v2593_v5, %v9919_v26  ;;  %v7501_v10 = vld [vmem:[%s9815_s2 + $0xe8] sm:$0xff]  }
 0x344   : > { %v2290_v36 = vadd.f32 %v8505_v62, %v2289_v29  ;;  %v6862_v51 = vpop.f32.mrb[38].mxu0  ;;  %v2624_v8 = vadd.bf16 %v2592_v39, %v9918_v57  ;;  %7009 = vmatprep.subr.bf16.mxu0 %v7501_v10 }
 0x345   : > { %v2301_v18 = vadd.f32 %v6862_v51, %v8505_v62  ;;  %v2292_v44 = vpop.f32.mrb[39].mxu0  ;;  %v2534_v11 = vmax.f32 %v2298_v15, 0.0  ;;  %7010 = vmatpush3.bf16.msra.mxu0 %v7501_v10 }
 0x346   : > { %v2293_v55 = vadd.f32 %v8505_v62, %v2292_v44  ;;  %6935 = vmatprep.mubr.bf16.mxu1 %v2624_v8  ;;  %v2532_v29 = vmax.f32 %v2290_v36, 0.0  ;;  %v7502_v8 = vld [vmem:[%s9815_s2 + $0xf0] sm:$0xff]  }
 0x347   : > { %v2535_v17 = vmax.f32 %v2301_v18, 0.0  ;;  %6936 = vmatmul.mubr.bf16.vlgmr.msra.gmra.mrb[96].mxu1 %v2625_v13  ;;  %7011 = vmatprep.subr.bf16.mxu0 %v7502_v8 }
 0x348   : > { %v2533_v6 = vmax.f32 %v2293_v55, 0.0 }
 0x349   : > { %v2595_v57 = vpack.c.bf16 %v2535_v17, %v2534_v11  ;;  %v7503_v11 = vld [vmem:[%s9815_s2 + $0xf8] sm:$0xff]   ;;  %7012 = vmatpush3.bf16.msra.mxu0 %v7502_v8 }
 0x34a   : > { %v2594_v39 = vpack.c.bf16 %v2533_v6, %v2532_v29  ;;  %v6865_v5 = vpop.f32.mrb[40].mxu0  ;;  %7013 = vmatprep.subr.bf16.mxu0 %v7503_v11 }
 0x34b   : > { %v2314_v51 = vadd.f32 %v6865_v5, %v8505_v62  ;;  %v2305_v26 = vpop.f32.mrb[41].mxu0  ;;  %v2627_v6 = vadd.bf16 %v2595_v57, %v8112_v28 }
 0x34c   : > { %v2306_v58 = vadd.f32 %v8505_v62, %v2305_v26  ;;  %v6866_v15 = vpop.f32.mrb[42].mxu0  ;;  %v2626_v13 = vadd.bf16 %v2594_v39, %v8117_v35 }
 0x34d   : > { %v2317_v36 = vadd.f32 %v6866_v15, %v8505_v62  ;;  %v2308_v18 = vpop.f32.mrb[43].mxu0  ;;  %v2538_v44 = vmax.f32 %v2314_v51, 0.0  ;;  %7014 = vmatpush3.bf16.msra.mxu0 %v7503_v11 }
 0x34e   : > { %v2309_v52 = vadd.f32 %v8505_v62, %v2308_v18  ;;  %6939 = vmatprep.mubr.bf16.mxu1 %v2626_v13  ;;  %v2536_v17 = vmax.f32 %v2306_v58, 0.0 }
 0x34f   : > { %v2539_v55 = vmax.f32 %v2317_v36, 0.0  ;;  %6940 = vmatmul.mubr.bf16.gmra.mrb[100].mxu1 %v2627_v6 }
 0x350   : > { %v2537_v29 = vmax.f32 %v2309_v52, 0.0 }
 0x351   : > { %v2597_v35 = vpack.c.bf16 %v2539_v55, %v2538_v44 }
 0x352   : > { %v2596_v39 = vpack.c.bf16 %v2537_v29, %v2536_v17  ;;  %v6869_v5 = vpop.f32.mrb[44].mxu0 }
 0x353   : > { %v2330_v28 = vadd.f32 %v6869_v5, %v8505_v62  ;;  %v2321_v57 = vpop.f32.mrb[45].mxu0  ;;  %v2629_v36 = vadd.bf16 %v2597_v35, %v8128_v61 }
 0x354   : > { %v2322_v10 = vadd.f32 %v8505_v62, %v2321_v57  ;;  %v6870_v51 = vpop.f32.mrb[46].mxu0  ;;  %v2628_v26 = vadd.bf16 %v2596_v39, %v8133_v3 }
 0x355   : > { %v2333_v15 = vadd.f32 %v6870_v51, %v8505_v62  ;;  %v2324_v13 = vpop.f32.mrb[47].mxu0  ;;  %v2542_v18 = vmax.f32 %v2330_v28, 0.0 }
 0x356   : > { %v2325_v58 = vadd.f32 %v8505_v62, %v2324_v13  ;;  %6943 = vmatprep.mubr.bf16.mxu1 %v2628_v26  ;;  %v2540_v6 = vmax.f32 %v2322_v10, 0.0 }
 0x357   : > { %v2543_v8 = vmax.f32 %v2333_v15, 0.0  ;;  %6944 = vmatmul.mubr.bf16.gmra.mrb[104].mxu1 %v2629_v36 }
 0x358   : > { %v2541_v52 = vmax.f32 %v2325_v58, 0.0 }
 0x359   : > { %v2599_v44 = vpack.c.bf16 %v2543_v8, %v2542_v18 }
 0x35a   : > { %v2598_v55 = vpack.c.bf16 %v2541_v52, %v2540_v6  ;;  %v6873_v17 = vpop.f32.mrb[48].mxu0 }
 0x35b   : > { %v2346_v29 = vadd.f32 %v6873_v17, %v8505_v62  ;;  %v2337_v3 = vpop.f32.mrb[49].mxu0  ;;  %v2631_v11 = vadd.bf16 %v2599_v44, %v8141_v16 }
 0x35c   : > { %v2338_v39 = vadd.f32 %v8505_v62, %v2337_v3  ;;  %v6874_v5 = vpop.f32.mrb[50].mxu0  ;;  %v2630_v61 = vadd.bf16 %v2598_v55, %v8143_v40 }
 0x35d   : > { %v2349_v35 = vadd.f32 %v6874_v5, %v8505_v62  ;;  %v2340_v57 = vpop.f32.mrb[51].mxu0  ;;  %v2546_v10 = vmax.f32 %v2346_v29, 0.0 }
 0x35e   : > { %v2341_v28 = vadd.f32 %v8505_v62, %v2340_v57  ;;  %6947 = vmatprep.mubr.bf16.mxu1 %v2630_v61  ;;  %v2544_v26 = vmax.f32 %v2338_v39, 0.0 }
 0x35f   : > { %v2547_v51 = vmax.f32 %v2349_v35, 0.0  ;;  %6948 = vmatmul.mubr.bf16.gmra.mrb[108].mxu1 %v2631_v11 }
 0x360   : > { %v2545_v15 = vmax.f32 %v2341_v28, 0.0 }
 0x361   : > { %v2601_v13 = vpack.c.bf16 %v2547_v51, %v2546_v10 }
 0x362   : > { %v2600_v36 = vpack.c.bf16 %v2545_v15, %v2544_v26  ;;  %v6877_v58 = vpop.f32.mrb[52].mxu0 }
 0x363   : > { %v2362_v18 = vadd.f32 %v6877_v58, %v8505_v62  ;;  %v2353_v8 = vpop.f32.mrb[53].mxu0  ;;  %v2633_v55 = vadd.bf16 %v2601_v13, %v8151_v7 }
 0x364   : > { %v2354_v40 = vadd.f32 %v8505_v62, %v2353_v8  ;;  %v6878_v6 = vpop.f32.mrb[54].mxu0  ;;  %v2632_v52 = vadd.bf16 %v2600_v36, %v8153_v12 }
 0x365   : > { %v2365_v16 = vadd.f32 %v6878_v6, %v8505_v62  ;;  %v2356_v44 = vpop.f32.mrb[55].mxu0  ;;  %v2550_v29 = vmax.f32 %v2362_v18, 0.0 }
 0x366   : > { %v2357_v17 = vadd.f32 %v8505_v62, %v2356_v44  ;;  %6951 = vmatprep.mubr.bf16.mxu1 %v2632_v52  ;;  %v2548_v39 = vmax.f32 %v2354_v40, 0.0 }
 0x367   : > { %v2551_v3 = vmax.f32 %v2365_v16, 0.0  ;;  %6952 = vmatmul.mubr.bf16.gmra.mrb[112].mxu1 %v2633_v55 }
 0x368   : > { %v2549_v5 = vmax.f32 %v2357_v17, 0.0 }
 0x369   : > { %v2603_v61 = vpack.c.bf16 %v2551_v3, %v2550_v29 }
 0x36a   : > { %v2602_v35 = vpack.c.bf16 %v2549_v5, %v2548_v39  ;;  %v6881_v57 = vpop.f32.mrb[56].mxu0 }
 0x36b   : > { %v2378_v11 = vadd.f32 %v6881_v57, %v8505_v62  ;;  %v2369_v28 = vpop.f32.mrb[57].mxu0  ;;  %v2635_v15 = vadd.bf16 %v2603_v61, %v8161_v46 }
 0x36c   : > { %v2370_v12 = vadd.f32 %v8505_v62, %v2369_v28  ;;  %v6882_v10 = vpop.f32.mrb[58].mxu0  ;;  %v2634_v51 = vadd.bf16 %v2602_v35, %v8163_v49 }
 0x36d   : > { %v2381_v7 = vadd.f32 %v6882_v10, %v8505_v62  ;;  %v2372_v26 = vpop.f32.mrb[59].mxu0  ;;  %v2554_v36 = vmax.f32 %v2378_v11, 0.0 }
 0x36e   : > { %v2373_v13 = vadd.f32 %v8505_v62, %v2372_v26  ;;  %6955 = vmatprep.mubr.bf16.mxu1 %v2634_v51  ;;  %v2552_v18 = vmax.f32 %v2370_v12, 0.0 }
 0x36f   : > { %v2555_v58 = vmax.f32 %v2381_v7, 0.0  ;;  %6956 = vmatmul.mubr.bf16.gmra.mrb[116].mxu1 %v2635_v15 }
 0x370   : > { %v2553_v8 = vmax.f32 %v2373_v13, 0.0 }
 0x371   : > { %v2605_v40 = vpack.c.bf16 %v2555_v58, %v2554_v36 }
 0x372   : > { %v2604_v6 = vpack.c.bf16 %v2553_v8, %v2552_v18  ;;  %v6885_v52 = vpop.f32.mrb[60].mxu0 }
 0x373   : > { %v2394_v16 = vadd.f32 %v6885_v52, %v8505_v62  ;;  %v2385_v44 = vpop.f32.mrb[61].mxu0  ;;  %v2637_v3 = vadd.bf16 %v2605_v40, %v8171_v20 }
 0x374   : > { %v2386_v49 = vadd.f32 %v8505_v62, %v2385_v44  ;;  %v6886_v55 = vpop.f32.mrb[62].mxu0  ;;  %v2636_v17 = vadd.bf16 %v2604_v6, %v8173_v31 }
 0x375   : > { %v2397_v46 = vadd.f32 %v6886_v55, %v8505_v62  ;;  %v2388_v29 = vpop.f32.mrb[63].mxu0  ;;  %v2558_v5 = vmax.f32 %v2394_v16, 0.0 }
 0x376   : > { %v2389_v39 = vadd.f32 %v8505_v62, %v2388_v29  ;;  %6959 = vmatprep.mubr.bf16.mxu1 %v2636_v17  ;;  %v2556_v35 = vmax.f32 %v2386_v49, 0.0 }
 0x377   : > { %v2559_v61 = vmax.f32 %v2397_v46, 0.0  ;;  %6960 = vmatmul.mubr.bf16.gmra.mrb[120].mxu1 %v2637_v3 }
 0x378   : > { %v2557_v57 = vmax.f32 %v2389_v39, 0.0 }
 0x379   : > { %v2607_v11 = vpack.c.bf16 %v2559_v61, %v2558_v5 }
 0x37a   : > { %v2606_v28 = vpack.c.bf16 %v2557_v57, %v2556_v35  ;;  %v6889_v12 = vpop.f32.mrb[64].mxu0 }
 0x37b   : > { %v2410_v10 = vadd.f32 %v6889_v12, %v8505_v62  ;;  %v2401_v51 = vpop.f32.mrb[65].mxu0  ;;  %v2639_v13 = vadd.bf16 %v2607_v11, %v8181_v14 }
 0x37c   : > { %v2402_v31 = vadd.f32 %v8505_v62, %v2401_v51  ;;  %v6890_v7 = vpop.f32.mrb[66].mxu0  ;;  %v2638_v26 = vadd.bf16 %v2606_v28, %v8184_v19 }
 0x37d   : > { %v2413_v20 = vadd.f32 %v6890_v7, %v8505_v62  ;;  %v2404_v15 = vpop.f32.mrb[67].mxu0  ;;  %v2562_v58 = vmax.f32 %v2410_v10, 0.0 }
 0x37e   : > { %v2405_v36 = vadd.f32 %v8505_v62, %v2404_v15  ;;  %6963 = vmatprep.mubr.bf16.mxu1 %v2638_v26  ;;  %v2560_v8 = vmax.f32 %v2402_v31, 0.0 }
 0x37f   : > { %v2563_v18 = vmax.f32 %v2413_v20, 0.0  ;;  %6964 = vmatmul.mubr.bf16.gmra.mrb[124].mxu1 %v2639_v13 }
 0x380   : > { %v2561_v40 = vmax.f32 %v2405_v36, 0.0 }
 0x381   : > { %v2609_v6 = vpack.c.bf16 %v2563_v18, %v2562_v58 }
 0x382   : > { %v2608_v52 = vpack.c.bf16 %v2561_v40, %v2560_v8  ;;  %v6893_v16 = vpop.f32.mrb[68].mxu0 }
 0x383   : > { %v2426_v44 = vadd.f32 %v6893_v16, %v8505_v62  ;;  %v2417_v49 = vpop.f32.mrb[69].mxu0  ;;  %v2641_v29 = vadd.bf16 %v2609_v6, %v8191_v54 }
 0x384   : > { %v2418_v19 = vadd.f32 %v8505_v62, %v2417_v49  ;;  %v6894_v55 = vpop.f32.mrb[70].mxu0  ;;  %v2640_v17 = vadd.bf16 %v2608_v52, %v8193_v0 }
 0x385   : > { %v2429_v14 = vadd.f32 %v6894_v55, %v8505_v62  ;;  %v2420_v46 = vpop.f32.mrb[71].mxu0  ;;  %v2566_v39 = vmax.f32 %v2426_v44, 0.0 }
 0x386   : > { %v2421_v3 = vadd.f32 %v8505_v62, %v2420_v46  ;;  %6967 = vmatprep.mubr.bf16.mxu1 %v2640_v17  ;;  %v2564_v61 = vmax.f32 %v2418_v19, 0.0 }
 0x387   : > { %v2567_v5 = vmax.f32 %v2429_v14, 0.0  ;;  %6968 = vmatmul.mubr.bf16.gmra.mrb[128].mxu1 %v2641_v29 }
 0x388   : > { %v2565_v35 = vmax.f32 %v2421_v3, 0.0 }
 0x389   : > { %v2611_v57 = vpack.c.bf16 %v2567_v5, %v2566_v39 }
 0x38a   : > { %v2610_v11 = vpack.c.bf16 %v2565_v35, %v2564_v61  ;;  %v6897_v28 = vpop.f32.mrb[72].mxu0 }
 0x38b   : > { %v2442_v12 = vadd.f32 %v6897_v28, %v8505_v62  ;;  %v2433_v10 = vpop.f32.mrb[73].mxu0  ;;  %v2643_v26 = vadd.bf16 %v2611_v57, %v8201_v47 }
 0x38c   : > { %v2434_v0 = vadd.f32 %v8505_v62, %v2433_v10  ;;  %v6898_v51 = vpop.f32.mrb[74].mxu0  ;;  %v2642_v31 = vadd.bf16 %v2610_v11, %v8203_v50 }
 0x38d   : > { %v2445_v54 = vadd.f32 %v6898_v51, %v8505_v62  ;;  %v2436_v7 = vpop.f32.mrb[75].mxu0  ;;  %v2570_v15 = vmax.f32 %v2442_v12, 0.0 }
 0x38e   : > { %v2437_v20 = vadd.f32 %v8505_v62, %v2436_v7  ;;  %6971 = vmatprep.mubr.bf16.mxu1 %v2642_v31  ;;  %v2568_v36 = vmax.f32 %v2434_v0, 0.0 }
 0x38f   : > { %v2571_v13 = vmax.f32 %v2445_v54, 0.0  ;;  %6972 = vmatmul.mubr.bf16.gmra.mrb[132].mxu1 %v2643_v26 }
 0x390   : > { %v2569_v58 = vmax.f32 %v2437_v20, 0.0 }
 0x391   : > { %v2613_v18 = vpack.c.bf16 %v2571_v13, %v2570_v15 }
 0x392   : > { %v2612_v8 = vpack.c.bf16 %v2569_v58, %v2568_v36  ;;  %v6901_v40 = vpop.f32.mrb[76].mxu0 }
 0x393   : > { %v2458_v6 = vadd.f32 %v6901_v40, %v8505_v62  ;;  %v2449_v52 = vpop.f32.mrb[77].mxu0  ;;  %v2645_v19 = vadd.bf16 %v2613_v18, %v8211_v42 }
 0x394   : > { %v2450_v50 = vadd.f32 %v8505_v62, %v2449_v52  ;;  %v6902_v16 = vpop.f32.mrb[78].mxu0  ;;  %v2644_v44 = vadd.bf16 %v2612_v8, %v8213_v25 }
 0x395   : > { %v2461_v47 = vadd.f32 %v6902_v16, %v8505_v62  ;;  %v2452_v49 = vpop.f32.mrb[79].mxu0  ;;  %v2574_v17 = vmax.f32 %v2458_v6, 0.0 }
 0x396   : > { %v2453_v55 = vadd.f32 %v8505_v62, %v2452_v49  ;;  %6975 = vmatprep.mubr.bf16.mxu1 %v2644_v44  ;;  %v2572_v46 = vmax.f32 %v2450_v50, 0.0 }
 0x397   : > { %v2575_v14 = vmax.f32 %v2461_v47, 0.0  ;;  %6976 = vmatmul.mubr.bf16.gmra.mrb[136].mxu1 %v2645_v19 }
 0x398   : > { %v2573_v29 = vmax.f32 %v2453_v55, 0.0 }
 0x399   : > { %v2615_v3 = vpack.c.bf16 %v2575_v14, %v2574_v17 }
 0x39a   : > { %v2614_v39 = vpack.c.bf16 %v2573_v29, %v2572_v46  ;;  %v6905_v5 = vpop.f32.mrb[80].mxu0 }
 0x39b   : > { %v2474_v61 = vadd.f32 %v6905_v5, %v8505_v62  ;;  %v2465_v35 = vpop.f32.mrb[81].mxu0  ;;  %v2647_v12 = vadd.bf16 %v2615_v3, %v8221_v24 }
 0x39c   : > { %v2466_v25 = vadd.f32 %v8505_v62, %v2465_v35  ;;  %v6906_v57 = vpop.f32.mrb[82].mxu0  ;;  %v2646_v11 = vadd.bf16 %v2614_v39, %v9904_v37 }
 0x39d   : > { %v2477_v42 = vadd.f32 %v6906_v57, %v8505_v62  ;;  %v2468_v28 = vpop.f32.mrb[83].mxu0  ;;  %v2578_v0 = vmax.f32 %v2474_v61, 0.0 }
 0x39e   : > { %v2469_v10 = vadd.f32 %v8505_v62, %v2468_v28  ;;  %6979 = vmatprep.mubr.bf16.mxu1 %v2646_v11  ;;  %v2576_v31 = vmax.f32 %v2466_v25, 0.0 }
 0x39f   : > { %v2579_v51 = vmax.f32 %v2477_v42, 0.0  ;;  %6980 = vmatmul.mubr.bf16.gmra.mrb[140].mxu1 %v2647_v12 }
 0x3a0   : > { %v2577_v54 = vmax.f32 %v2469_v10, 0.0 }
 0x3a1   : > { %v2617_v7 = vpack.c.bf16 %v2579_v51, %v2578_v0 }
 0x3a2   : > { %v2616_v26 = vpack.c.bf16 %v2577_v54, %v2576_v31  ;;  %v6909_v20 = vpop.f32.mrb[84].mxu0 }
 0x3a3   : > { %v2490_v15 = vadd.f32 %v6909_v20, %v8505_v62  ;;  %v2481_v13 = vpop.f32.mrb[85].mxu0  ;;  %v2649_v8 = vadd.bf16 %v2617_v7, %v9906_v41 }
 0x3a4   : > { %v2482_v37 = vadd.f32 %v8505_v62, %v2481_v13  ;;  %v6910_v36 = vpop.f32.mrb[86].mxu0  ;;  %v2648_v58 = vadd.bf16 %v2616_v26, %v9908_v59 }
 0x3a5   : > { %v2493_v24 = vadd.f32 %v6910_v36, %v8505_v62  ;;  %v2484_v18 = vpop.f32.mrb[87].mxu0  ;;  %v2582_v6 = vmax.f32 %v2490_v15, 0.0 }
 0x3a6   : > { %v2485_v40 = vadd.f32 %v8505_v62, %v2484_v18  ;;  %6983 = vmatprep.mubr.bf16.mxu1 %v2648_v58  ;;  %v2580_v50 = vmax.f32 %v2482_v37, 0.0 }
 0x3a7   : > { %v2583_v52 = vmax.f32 %v2493_v24, 0.0  ;;  %6984 = vmatmul.mubr.bf16.gmra.mrb[144].mxu1 %v2649_v8 }
 0x3a8   : > { %v2581_v16 = vmax.f32 %v2485_v40, 0.0 }
 0x3a9   : > { %v2619_v44 = vpack.c.bf16 %v2583_v52, %v2582_v6 }
 0x3aa   : > { %v2618_v47 = vpack.c.bf16 %v2581_v16, %v2580_v50  ;;  %v6913_v49 = vpop.f32.mrb[88].mxu0  ;;  %v7514_v50 = vld [vmem:[%s9815_s2 + $0x150] sm:$0xff]  }
 0x3ab   : > { %v2506_v19 = vadd.f32 %v6913_v49, %v8505_v62  ;;  %v2497_v55 = vpop.f32.mrb[89].mxu0  ;;  %v2651_v29 = vadd.bf16 %v2619_v44, %v9910_v27 }
 0x3ac   : > { %v2498_v59 = vadd.f32 %v8505_v62, %v2497_v55  ;;  %v6914_v17 = vpop.f32.mrb[90].mxu0  ;;  %v2650_v14 = vadd.bf16 %v2618_v47, %v9912_v30 }
 0x3ad   : > { %v2509_v41 = vadd.f32 %v6914_v17, %v8505_v62  ;;  %v2500_v46 = vpop.f32.mrb[91].mxu0  ;;  %v2586_v39 = vmax.f32 %v2506_v19, 0.0 }
 0x3ae   : > { %v2501_v3 = vadd.f32 %v8505_v62, %v2500_v46  ;;  %6987 = vmatprep.mubr.bf16.mxu1 %v2650_v14  ;;  %v2584_v61 = vmax.f32 %v2498_v59, 0.0 }
 0x3af   : > { %v2587_v5 = vmax.f32 %v2509_v41, 0.0  ;;  %6988 = vmatmul.mubr.bf16.gmra.mrb[148].mxu1 %v2651_v29  ;;  %v7506_v41 = vld [vmem:[%s9815_s2 + $0x188] sm:$0xff]  }
 0x3b0   : > { %v2585_v35 = vmax.f32 %v2501_v3, 0.0 }
 0x3b1   : > { %v2621_v25 = vpack.c.bf16 %v2587_v5, %v2586_v39 }
 0x3b2   : > { %v2620_v57 = vpack.c.bf16 %v2585_v35, %v2584_v61  ;;  %v6917_v11 = vpop.f32.mrb[92].mxu0 }
 0x3b3   : > { %v2522_v42 = vadd.f32 %v6917_v11, %v8505_v62  ;;  %v2513_v28 = vpop.f32.mrb[93].mxu0  ;;  %v2653_v51 = vadd.bf16 %v2621_v25, %v8254_v23  ;;  %v7505_v23 = vld [vmem:[%s9815_s2 + $0x180] sm:$0xff]   ;;  %v7507_v25 = vld [vmem:[%s9815_s2 + $0x190] sm:$0xff]  }
 0x3b4   : > { %v2514_v30 = vadd.f32 %v8505_v62, %v2513_v28  ;;  %v6918_v12 = vpop.f32.mrb[94].mxu0  ;;  %v2652_v10 = vadd.bf16 %v2620_v57, %v8256_v60  ;;  %7159 = vmatprep.subr.bf16.mxu0 %v7505_v23  ;;  %v7504_v60 = vld [vmem:[%s9815_s2 + $0x140] sm:$0xff]  }
 0x3b5   : > { %v2525_v27 = vadd.f32 %v6918_v12, %v8505_v62  ;;  %v2516_v0 = vpop.f32.mrb[95].mxu0  ;;  %v2590_v54 = vmax.f32 %v2522_v42, 0.0  ;;  %7079 = vmatprep.subr.bf16.mxu1 %v7504_v60 }
 0x3b6   : > { %v2517_v31 = vadd.f32 %v8505_v62, %v2516_v0  ;;  %6991 = vmatprep.mubr.bf16.mxu1 %v2652_v10  ;;  %v2588_v26 = vmax.f32 %v2514_v30, 0.0  ;;  %7080 = vmatpush3.bf16.msra.mxu1 %v7504_v60  ;;  %v8633_v62 = vld [vmem:[%s9816_s3 + $0x5] ss:$0 sm:$0xff] }
 0x3b7   : > { %v2591_v7 = vmax.f32 %v2525_v27, 0.0  ;;  %6992 = vmatmul.mubr.bf16.gmra.mrb[152].mxu1 %v2653_v51  ;;  %v7508_v27 = vld [vmem:[%s9815_s2 + $0x198] sm:$0xff]  }
 0x3b8   : > { %v2589_v20 = vmax.f32 %v2517_v31, 0.0 }
 0x3b9   : > { %v2623_v15 = vpack.c.bf16 %v2591_v7, %v2590_v54 }
 0x3ba   : > { %v2622_v13 = vpack.c.bf16 %v2589_v20, %v2588_v26  ;;  %v7515_v26 = vld [vmem:[%s9815_s2 + $0x158] sm:$0xff]  }
 0x3bb   : > { %v2655_v36 = vadd.bf16 %v2623_v15, %v8264_v34  ;;  %v7509_v34 = vld [vmem:[%s9815_s2 + $0x148] sm:$0xff]  }
 0x3bc   : > { %v2654_v37 = vadd.bf16 %v2622_v13, %v9917_v1  ;;  %7081 = vmatprep.subr.bf16.mxu1 %v7509_v34  ;;  %v7510_v13 = vld [vmem:[%s9815_s2 + $0x1a0] sm:$0xff]  }
 0x3bd   : > { %7082 = vmatpush3.bf16.msra.mxu1 %v7509_v34 }
 0x3be   : > { %6995 = vmatprep.mubr.bf16.mxu1 %v2654_v37  ;;  %7083 = vmatprep.subr.bf16.mxu1 %v7514_v50 }
 0x3bf   : > { %6996 = vmatmul.mubr.bf16.gmra.mrb[156].mxu1 %v2655_v36 }
 0x3c1   : > { %7084 = vmatpush3.bf16.msra.mxu1 %v7514_v50 }
 0x3c2   : > { %7085 = vmatprep.subr.bf16.mxu1 %v7515_v26 }
 0x3c5   : > { %7086 = vmatpush3.bf16.msra.mxu1 %v7515_v26 }
 0x41a   : > { %v6937_v1 = vpop.f32.mrb[96].mxu1 }
 0x41b   : > { %v2772_v58 = vadd.f32 %v6937_v1, %v8633_v62  ;;  %v2763_v24 = vpop.f32.mrb[97].mxu1 }
 0x41c   : > { %v2764_v18 = vadd.f32 %v8633_v62, %v2763_v24  ;;  %v6938_v8 = vpop.f32.mrb[98].mxu1  ;;  %v7511_v24 = vld [vmem:[%s9815_s2 + $0x1a8] sm:$0xff]  }
 0x41d   : > { %v2775_v40 = vadd.f32 %v6938_v8, %v8633_v62  ;;  %v2766_v6 = vpop.f32.mrb[99].mxu1  ;;  %v3020_v16 = vmax.f32 %v2772_v58, 0.0 }
 0x41e   : > { %v2767_v52 = vadd.f32 %v8633_v62, %v2766_v6  ;;  %v3018_v47 = vmax.f32 %v2764_v18, 0.0 }
 0x41f   : > { %v3021_v44 = vmax.f32 %v2775_v40, 0.0 }
 0x420   : > { %v3019_v49 = vmax.f32 %v2767_v52, 0.0 }
 0x421   : > { %v8645_v19 = vpack.c.bf16 %v3021_v44, %v3020_v16  ;;  %v7512_v44 = vld [vmem:[%s9815_s2 + $0x1b0] sm:$0xff]  }
 0x422   : > { %v8647_v55 = vpack.c.bf16 %v3019_v49, %v3018_v47  ;;  %v6941_v59 = vpop.f32.mrb[100].mxu1 }
 0x423   : > { %v2788_v17 = vadd.f32 %v6941_v59, %v8633_v62  ;;  %v2779_v14 = vpop.f32.mrb[101].mxu1 }
 0x424   : > { %v2780_v46 = vadd.f32 %v8633_v62, %v2779_v14  ;;  %v6942_v29 = vpop.f32.mrb[102].mxu1  ;;  %7015 = vmatprep.mubr.bf16.mxu0 %v8647_v55 }
 0x425   : > { %v2791_v3 = vadd.f32 %v6942_v29, %v8633_v62  ;;  %v2782_v39 = vpop.f32.mrb[103].mxu1  ;;  %7016 = vmatmul.mubr.bf16.vlgmr.msra.gmra.mrb[96].mxu0 %v8645_v19  ;;  %v3024_v61 = vmax.f32 %v2788_v17, 0.0  ;;  %v7513_v29 = vld [vmem:[%s9815_s2 + $0x1b8] sm:$0xff]  }
 0x426   : > { %v2783_v5 = vadd.f32 %v8633_v62, %v2782_v39  ;;  %7160 = vmatpush3.bf16.msra.mxu0 %v7505_v23  ;;  %v3022_v57 = vmax.f32 %v2780_v46, 0.0 }
 0x427   : > { %v3025_v35 = vmax.f32 %v2791_v3, 0.0  ;;  %7161 = vmatprep.subr.bf16.mxu0 %v7506_v41 }
 0x428   : > { %v3023_v11 = vmax.f32 %v2783_v5, 0.0 }
 0x429   : > { %v8661_v42 = vpack.c.bf16 %v3025_v35, %v3024_v61 }
 0x42a   : > { %v8663_v28 = vpack.c.bf16 %v3023_v11, %v3022_v57  ;;  %v6945_v30 = vpop.f32.mrb[104].mxu1  ;;  %7162 = vmatpush3.bf16.msra.mxu0 %v7506_v41 }
 0x42b   : > { %v2804_v12 = vadd.f32 %v6945_v30, %v8633_v62  ;;  %v2795_v10 = vpop.f32.mrb[105].mxu1  ;;  %7163 = vmatprep.subr.bf16.mxu0 %v7507_v25 }
 0x42c   : > { %v2796_v0 = vadd.f32 %v8633_v62, %v2795_v10  ;;  %v6946_v51 = vpop.f32.mrb[106].mxu1  ;;  %7019 = vmatprep.mubr.bf16.mxu0 %v8663_v28 }
 0x42d   : > { %v2807_v31 = vadd.f32 %v6946_v51, %v8633_v62  ;;  %v2798_v54 = vpop.f32.mrb[107].mxu1  ;;  %7020 = vmatmul.mubr.bf16.gmra.mrb[100].mxu0 %v8661_v42  ;;  %v3028_v20 = vmax.f32 %v2804_v12, 0.0 }
 0x42e   : > { %v2799_v7 = vadd.f32 %v8633_v62, %v2798_v54  ;;  %7164 = vmatpush3.bf16.msra.mxu0 %v7507_v25  ;;  %v3026_v37 = vmax.f32 %v2796_v0, 0.0  ;;  %v7516_v25 = vld [vmem:[%s9815_s2 + $0x160] sm:$0xff]  }
 0x42f   : > { %v3029_v15 = vmax.f32 %v2807_v31, 0.0  ;;  %7165 = vmatprep.subr.bf16.mxu0 %v7508_v27  ;;  %7087 = vmatprep.subr.bf16.mxu1 %v7516_v25 }
 0x430   : > { %v3027_v36 = vmax.f32 %v2799_v7, 0.0  ;;  %7088 = vmatpush3.bf16.msra.mxu1 %v7516_v25 }
 0x431   : > { %v8680_v23 = vpack.c.bf16 %v3029_v15, %v3028_v20 }
 0x432   : > { %v8682_v60 = vpack.c.bf16 %v3027_v36, %v3026_v37  ;;  %v6949_v34 = vpop.f32.mrb[108].mxu1  ;;  %7166 = vmatpush3.bf16.msra.mxu0 %v7508_v27 }
 0x433   : > { %v2820_v1 = vadd.f32 %v6949_v34, %v8633_v62  ;;  %v2811_v58 = vpop.f32.mrb[109].mxu1  ;;  %7167 = vmatprep.subr.bf16.mxu0 %v7510_v13 }
 0x434   : > { %v2812_v18 = vadd.f32 %v8633_v62, %v2811_v58  ;;  %v6950_v8 = vpop.f32.mrb[110].mxu1  ;;  %7023 = vmatprep.mubr.bf16.mxu0 %v8682_v60 }
 0x435   : > { %v2823_v40 = vadd.f32 %v6950_v8, %v8633_v62  ;;  %v2814_v6 = vpop.f32.mrb[111].mxu1  ;;  %7024 = vmatmul.mubr.bf16.gmra.mrb[104].mxu0 %v8680_v23  ;;  %v3032_v50 = vmax.f32 %v2820_v1, 0.0 }
 0x436   : > { %v2815_v52 = vadd.f32 %v8633_v62, %v2814_v6  ;;  %7168 = vmatpush3.bf16.msra.mxu0 %v7510_v13  ;;  %v3030_v47 = vmax.f32 %v2812_v18, 0.0 }
 0x437   : > { %v3033_v16 = vmax.f32 %v2823_v40, 0.0  ;;  %7169 = vmatprep.subr.bf16.mxu0 %v7511_v24 }
 0x438   : > { %v3031_v49 = vmax.f32 %v2815_v52, 0.0 }
 0x439   : > { %v8696_v59 = vpack.c.bf16 %v3033_v16, %v3032_v50 }
 0x43a   : > { %v8698_v17 = vpack.c.bf16 %v3031_v49, %v3030_v47  ;;  %v6953_v14 = vpop.f32.mrb[112].mxu1  ;;  %7170 = vmatpush3.bf16.msra.mxu0 %v7511_v24 }
 0x43b   : > { %v2836_v41 = vadd.f32 %v6953_v14, %v8633_v62  ;;  %v2827_v46 = vpop.f32.mrb[113].mxu1  ;;  %7171 = vmatprep.subr.bf16.mxu0 %v7512_v44 }
 0x43c   : > { %v2828_v3 = vadd.f32 %v8633_v62, %v2827_v46  ;;  %v6954_v39 = vpop.f32.mrb[114].mxu1  ;;  %7027 = vmatprep.mubr.bf16.mxu0 %v8698_v17 }
 0x43d   : > { %v2839_v5 = vadd.f32 %v6954_v39, %v8633_v62  ;;  %v2830_v61 = vpop.f32.mrb[115].mxu1  ;;  %7028 = vmatmul.mubr.bf16.gmra.mrb[108].mxu0 %v8696_v59  ;;  %v3036_v57 = vmax.f32 %v2836_v41, 0.0 }
 0x43e   : > { %v2831_v35 = vadd.f32 %v8633_v62, %v2830_v61  ;;  %7172 = vmatpush3.bf16.msra.mxu0 %v7512_v44  ;;  %v3034_v30 = vmax.f32 %v2828_v3, 0.0  ;;  %v7517_v44 = vld [vmem:[%s9815_s2 + $0x168] sm:$0xff]  }
 0x43f   : > { %v3037_v11 = vmax.f32 %v2839_v5, 0.0  ;;  %7173 = vmatprep.subr.bf16.mxu0 %v7513_v29  ;;  %7089 = vmatprep.subr.bf16.mxu1 %v7517_v44 }
 0x440   : > { %v3035_v12 = vmax.f32 %v2831_v35, 0.0  ;;  %7090 = vmatpush3.bf16.msra.mxu1 %v7517_v44 }
 0x441   : > { %v8712_v10 = vpack.c.bf16 %v3037_v11, %v3036_v57 }
 0x442   : > { %v8714_v27 = vpack.c.bf16 %v3035_v12, %v3034_v30  ;;  %v6957_v0 = vpop.f32.mrb[116].mxu1  ;;  %7174 = vmatpush3.bf16.msra.mxu0 %v7513_v29 }
 0x443   : > { %v2852_v51 = vadd.f32 %v6957_v0, %v8633_v62  ;;  %v2843_v31 = vpop.f32.mrb[117].mxu1 }
 0x444   : > { %v2844_v54 = vadd.f32 %v8633_v62, %v2843_v31  ;;  %v6958_v7 = vpop.f32.mrb[118].mxu1  ;;  %7031 = vmatprep.mubr.bf16.mxu0 %v8714_v27 }
 0x445   : > { %v2855_v26 = vadd.f32 %v6958_v7, %v8633_v62  ;;  %v2846_v20 = vpop.f32.mrb[119].mxu1  ;;  %7032 = vmatmul.mubr.bf16.gmra.mrb[112].mxu0 %v8712_v10  ;;  %v3040_v13 = vmax.f32 %v2852_v51, 0.0 }
 0x446   : > { %v2847_v15 = vadd.f32 %v8633_v62, %v2846_v20  ;;  %v3038_v36 = vmax.f32 %v2844_v54, 0.0 }
 0x447   : > { %v3041_v37 = vmax.f32 %v2855_v26, 0.0 }
 0x448   : > { %v3039_v34 = vmax.f32 %v2847_v15, 0.0 }
 0x449   : > { %v8722_v1 = vpack.c.bf16 %v3041_v37, %v3040_v13 }
 0x44a   : > { %v8724_v58 = vpack.c.bf16 %v3039_v34, %v3038_v36  ;;  %v6961_v24 = vpop.f32.mrb[120].mxu1 }
 0x44b   : > { %v2868_v18 = vadd.f32 %v6961_v24, %v8633_v62  ;;  %v2859_v8 = vpop.f32.mrb[121].mxu1  ;;  %v7518_v24 = vld [vmem:[%s9815_s2 + $0x170] sm:$0xff]  }
 0x44c   : > { %v2860_v40 = vadd.f32 %v8633_v62, %v2859_v8  ;;  %v6962_v6 = vpop.f32.mrb[122].mxu1  ;;  %7035 = vmatprep.mubr.bf16.mxu0 %v8724_v58  ;;  %7091 = vmatprep.subr.bf16.mxu1 %v7518_v24 }
 0x44d   : > { %v2871_v52 = vadd.f32 %v6962_v6, %v8633_v62  ;;  %v2862_v50 = vpop.f32.mrb[123].mxu1  ;;  %7036 = vmatmul.mubr.bf16.gmra.mrb[116].mxu0 %v8722_v1  ;;  %v3044_v47 = vmax.f32 %v2868_v18, 0.0  ;;  %7092 = vmatpush3.bf16.msra.mxu1 %v7518_v24 }
 0x44e   : > { %v2863_v16 = vadd.f32 %v8633_v62, %v2862_v50  ;;  %v3042_v14 = vmax.f32 %v2860_v40, 0.0 }
 0x44f   : > { %v3045_v49 = vmax.f32 %v2871_v52, 0.0 }
 0x450   : > { %v3043_v41 = vmax.f32 %v2863_v16, 0.0 }
 0x451   : > { %v8735_v46 = vpack.c.bf16 %v3045_v49, %v3044_v47 }
 0x452   : > { %v8737_v29 = vpack.c.bf16 %v3043_v41, %v3042_v14  ;;  %v6965_v3 = vpop.f32.mrb[124].mxu1 }
 0x453   : > { %v2884_v39 = vadd.f32 %v6965_v3, %v8633_v62  ;;  %v2875_v5 = vpop.f32.mrb[125].mxu1 }
 0x454   : > { %v2876_v61 = vadd.f32 %v8633_v62, %v2875_v5  ;;  %v6966_v35 = vpop.f32.mrb[126].mxu1  ;;  %7039 = vmatprep.mubr.bf16.mxu0 %v8737_v29 }
 0x455   : > { %v2887_v25 = vadd.f32 %v6966_v35, %v8633_v62  ;;  %v2878_v57 = vpop.f32.mrb[127].mxu1  ;;  %7040 = vmatmul.mubr.bf16.gmra.mrb[120].mxu0 %v8735_v46  ;;  %v3048_v30 = vmax.f32 %v2884_v39, 0.0 }
 0x456   : > { %v2879_v11 = vadd.f32 %v8633_v62, %v2878_v57  ;;  %v3046_v0 = vmax.f32 %v2876_v61, 0.0 }
 0x457   : > { %v3049_v12 = vmax.f32 %v2887_v25, 0.0 }
 0x458   : > { %v3047_v51 = vmax.f32 %v2879_v11, 0.0 }
 0x459   : > { %v8745_v31 = vpack.c.bf16 %v3049_v12, %v3048_v30 }
 0x45a   : > { %v8747_v54 = vpack.c.bf16 %v3047_v51, %v3046_v0  ;;  %v6969_v7 = vpop.f32.mrb[128].mxu1 }
 0x45b   : > { %v2900_v26 = vadd.f32 %v6969_v7, %v8633_v62  ;;  %v2891_v20 = vpop.f32.mrb[129].mxu1 }
 0x45c   : > { %v2892_v15 = vadd.f32 %v8633_v62, %v2891_v20  ;;  %v6970_v13 = vpop.f32.mrb[130].mxu1  ;;  %7043 = vmatprep.mubr.bf16.mxu0 %v8747_v54 }
 0x45d   : > { %v2903_v37 = vadd.f32 %v6970_v13, %v8633_v62  ;;  %v2894_v36 = vpop.f32.mrb[131].mxu1  ;;  %7044 = vmatmul.mubr.bf16.gmra.mrb[124].mxu0 %v8745_v31  ;;  %v3052_v18 = vmax.f32 %v2900_v26, 0.0  ;;  %v7519_v13 = vld [vmem:[%s9815_s2 + $0x178] sm:$0xff]  }
 0x45e   : > { %v2895_v34 = vadd.f32 %v8633_v62, %v2894_v36  ;;  %v3050_v40 = vmax.f32 %v2892_v15, 0.0  ;;  %7093 = vmatprep.subr.bf16.mxu1 %v7519_v13 }
 0x45f   : > { %v3053_v8 = vmax.f32 %v2903_v37, 0.0  ;;  %7094 = vmatpush3.bf16.msra.mxu1 %v7519_v13 }
 0x460   : > { %v3051_v6 = vmax.f32 %v2895_v34, 0.0 }
 0x461   : > { %v8758_v52 = vpack.c.bf16 %v3053_v8, %v3052_v18 }
 0x462   : > { %v8760_v50 = vpack.c.bf16 %v3051_v6, %v3050_v40  ;;  %v6973_v16 = vpop.f32.mrb[132].mxu1 }
 0x463   : > { %v2916_v44 = vadd.f32 %v6973_v16, %v8633_v62  ;;  %v2907_v47 = vpop.f32.mrb[133].mxu1 }
 0x464   : > { %v2908_v49 = vadd.f32 %v8633_v62, %v2907_v47  ;;  %v6974_v14 = vpop.f32.mrb[134].mxu1  ;;  %7047 = vmatprep.mubr.bf16.mxu0 %v8760_v50 }
 0x465   : > { %v2919_v41 = vadd.f32 %v6974_v14, %v8633_v62  ;;  %v2910_v3 = vpop.f32.mrb[135].mxu1  ;;  %7048 = vmatmul.mubr.bf16.gmra.mrb[128].mxu0 %v8758_v52  ;;  %v3056_v5 = vmax.f32 %v2916_v44, 0.0 }
 0x466   : > { %v2911_v39 = vadd.f32 %v8633_v62, %v2910_v3  ;;  %v3054_v35 = vmax.f32 %v2908_v49, 0.0 }
 0x467   : > { %v3057_v61 = vmax.f32 %v2919_v41, 0.0 }
 0x468   : > { %v3055_v25 = vmax.f32 %v2911_v39, 0.0 }
 0x469   : > { %v8768_v57 = vpack.c.bf16 %v3057_v61, %v3056_v5 }
 0x46a   : > { %v8770_v11 = vpack.c.bf16 %v3055_v25, %v3054_v35  ;;  %v6977_v30 = vpop.f32.mrb[136].mxu1 }
 0x46b   : > { %v2932_v12 = vadd.f32 %v6977_v30, %v8633_v62  ;;  %v2923_v0 = vpop.f32.mrb[137].mxu1 }
 0x46c   : > { %v2924_v51 = vadd.f32 %v8633_v62, %v2923_v0  ;;  %v6978_v7 = vpop.f32.mrb[138].mxu1  ;;  %7051 = vmatprep.mubr.bf16.mxu0 %v8770_v11 }
 0x46d   : > { %v2935_v26 = vadd.f32 %v6978_v7, %v8633_v62  ;;  %v2926_v20 = vpop.f32.mrb[139].mxu1  ;;  %7052 = vmatmul.mubr.bf16.gmra.mrb[132].mxu0 %v8768_v57  ;;  %v3060_v37 = vmax.f32 %v2932_v12, 0.0 }
 0x46e   : > { %v2927_v15 = vadd.f32 %v8633_v62, %v2926_v20  ;;  %v3058_v34 = vmax.f32 %v2924_v51, 0.0 }
 0x46f   : > { %v3061_v36 = vmax.f32 %v2935_v26, 0.0 }
 0x470   : > { %v3059_v24 = vmax.f32 %v2927_v15, 0.0 }
 0x471   : > { %v8781_v18 = vpack.c.bf16 %v3061_v36, %v3060_v37 }
 0x472   : > { %v8783_v8 = vpack.c.bf16 %v3059_v24, %v3058_v34  ;;  %v6981_v40 = vpop.f32.mrb[140].mxu1 }
 0x473   : > { %9920 = vst [vmem:[#allocation29_spill] sm:$0xff] %v8781_v18  ;;  %v2948_v6 = vadd.f32 %v6981_v40, %v8633_v62  ;;  %v2939_v16 = vpop.f32.mrb[141].mxu1 }
 0x474   : > { %9921 = vst [vmem:[#allocation30_spill] sm:$0xff] %v8783_v8  ;;  %v2940_v44 = vadd.f32 %v8633_v62, %v2939_v16  ;;  %v6982_v47 = vpop.f32.mrb[142].mxu1  ;;  %7055 = vmatprep.mubr.bf16.mxu0 %v8783_v8 }
 0x475   : > { %v2951_v49 = vadd.f32 %v6982_v47, %v8633_v62  ;;  %v2942_v14 = vpop.f32.mrb[143].mxu1  ;;  %7056 = vmatmul.mubr.bf16.gmra.mrb[136].mxu0 %v8781_v18  ;;  %v3064_v3 = vmax.f32 %v2948_v6, 0.0 }
 0x476   : > { %v2943_v41 = vadd.f32 %v8633_v62, %v2942_v14  ;;  %v3062_v5 = vmax.f32 %v2940_v44, 0.0 }
 0x477   : > { %v3065_v39 = vmax.f32 %v2951_v49, 0.0 }
 0x478   : > { %v3063_v61 = vmax.f32 %v2943_v41, 0.0 }
 0x479   : > { %v8791_v35 = vpack.c.bf16 %v3065_v39, %v3064_v3 }
 0x47a   : > { %v8793_v25 = vpack.c.bf16 %v3063_v61, %v3062_v5  ;;  %v6985_v30 = vpop.f32.mrb[144].mxu1 }
 0x47b   : > { %9922 = vst [vmem:[#allocation31_spill] sm:$0xff] %v8791_v35  ;;  %v2964_v12 = vadd.f32 %v6985_v30, %v8633_v62  ;;  %v2955_v0 = vpop.f32.mrb[145].mxu1 }
 0x47c   : > { %9923 = vst [vmem:[#allocation32_spill] sm:$0xff] %v8793_v25  ;;  %v2956_v51 = vadd.f32 %v8633_v62, %v2955_v0  ;;  %v6986_v7 = vpop.f32.mrb[146].mxu1  ;;  %7059 = vmatprep.mubr.bf16.mxu0 %v8793_v25 }
 0x47d   : > { %v2967_v26 = vadd.f32 %v6986_v7, %v8633_v62  ;;  %v2958_v20 = vpop.f32.mrb[147].mxu1  ;;  %7060 = vmatmul.mubr.bf16.gmra.mrb[140].mxu0 %v8791_v35  ;;  %v3068_v13 = vmax.f32 %v2964_v12, 0.0 }
 0x47e   : > { %v2959_v15 = vadd.f32 %v8633_v62, %v2958_v20  ;;  %v3066_v36 = vmax.f32 %v2956_v51, 0.0 }
 0x47f   : > { %v3069_v37 = vmax.f32 %v2967_v26, 0.0 }
 0x480   : > { %v3067_v34 = vmax.f32 %v2959_v15, 0.0 }
 0x481   : > { %v8801_v24 = vpack.c.bf16 %v3069_v37, %v3068_v13 }
 0x482   : > { %v8803_v40 = vpack.c.bf16 %v3067_v34, %v3066_v36  ;;  %v6989_v6 = vpop.f32.mrb[148].mxu1 }
 0x483   : > { %9924 = vst [vmem:[#allocation33_spill] sm:$0xff] %v8801_v24  ;;  %v2980_v16 = vadd.f32 %v6989_v6, %v8633_v62  ;;  %v2971_v44 = vpop.f32.mrb[149].mxu1 }
 0x484   : > { %9925 = vst [vmem:[#allocation23_spill] sm:$0xff] %v8803_v40  ;;  %v2972_v47 = vadd.f32 %v8633_v62, %v2971_v44  ;;  %v6990_v49 = vpop.f32.mrb[150].mxu1  ;;  %7063 = vmatprep.mubr.bf16.mxu0 %v8803_v40 }
 0x485   : > { %v2983_v14 = vadd.f32 %v6990_v49, %v8633_v62  ;;  %v2974_v41 = vpop.f32.mrb[151].mxu1  ;;  %7064 = vmatmul.mubr.bf16.gmra.mrb[144].mxu0 %v8801_v24  ;;  %v3072_v39 = vmax.f32 %v2980_v16, 0.0 }
 0x486   : > { %v2975_v3 = vadd.f32 %v8633_v62, %v2974_v41  ;;  %v3070_v61 = vmax.f32 %v2972_v47, 0.0 }
 0x487   : > { %v3073_v5 = vmax.f32 %v2983_v14, 0.0 }
 0x488   : > { %v3071_v30 = vmax.f32 %v2975_v3, 0.0 }
 0x489   : > { %v8811_v12 = vpack.c.bf16 %v3073_v5, %v3072_v39 }
 0x48a   : > { %v8813_v0 = vpack.c.bf16 %v3071_v30, %v3070_v61  ;;  %v6993_v51 = vpop.f32.mrb[152].mxu1 }
 0x48b   : > { %9926 = vst [vmem:[#allocation34_spill] sm:$0xff] %v8811_v12  ;;  %v2996_v7 = vadd.f32 %v6993_v51, %v8633_v62  ;;  %v2987_v26 = vpop.f32.mrb[153].mxu1 }
 0x48c   : > { %9927 = vst [vmem:[#allocation28_spill] sm:$0xff] %v8813_v0  ;;  %v2988_v20 = vadd.f32 %v8633_v62, %v2987_v26  ;;  %v6994_v15 = vpop.f32.mrb[154].mxu1  ;;  %7067 = vmatprep.mubr.bf16.mxu0 %v8813_v0 }
 0x48d   : > { %v2999_v13 = vadd.f32 %v6994_v15, %v8633_v62  ;;  %v2990_v37 = vpop.f32.mrb[155].mxu1  ;;  %7068 = vmatmul.mubr.bf16.gmra.mrb[148].mxu0 %v8811_v12  ;;  %v3076_v34 = vmax.f32 %v2996_v7, 0.0 }
 0x48e   : > { %v2991_v36 = vadd.f32 %v8633_v62, %v2990_v37  ;;  %v3074_v16 = vmax.f32 %v2988_v20, 0.0 }
 0x48f   : > { %v3077_v6 = vmax.f32 %v2999_v13, 0.0 }
 0x490   : > { %v3075_v44 = vmax.f32 %v2991_v36, 0.0  ;;  %v8866_v36 = vld [vmem:[%s9816_s3 + $0x4] ss:$0 sm:$0xff] }
 0x491   : > { %v8821_v47 = vpack.c.bf16 %v3077_v6, %v3076_v34 }
 0x492   : > { %v8823_v49 = vpack.c.bf16 %v3075_v44, %v3074_v16  ;;  %v6997_v14 = vpop.f32.mrb[156].mxu1 }
 0x493   : > { %9928 = vst [vmem:[#allocation27_spill] sm:$0xff] %v8821_v47  ;;  %v3012_v41 = vadd.f32 %v6997_v14, %v8633_v62  ;;  %v3003_v3 = vpop.f32.mrb[157].mxu1 }
 0x494   : > { %9929 = vst [vmem:[#allocation35_spill] sm:$0xff] %v8823_v49  ;;  %v3004_v39 = vadd.f32 %v8633_v62, %v3003_v3  ;;  %v6998_v5 = vpop.f32.mrb[158].mxu1  ;;  %7071 = vmatprep.mubr.bf16.mxu0 %v8823_v49 }
 0x495   : > { %v3015_v61 = vadd.f32 %v6998_v5, %v8633_v62  ;;  %v3006_v30 = vpop.f32.mrb[159].mxu1  ;;  %7072 = vmatmul.mubr.bf16.gmra.mrb[152].mxu0 %v8821_v47  ;;  %v3080_v7 = vmax.f32 %v3012_v41, 0.0 }
 0x496   : > { %v3007_v51 = vadd.f32 %v8633_v62, %v3006_v30  ;;  %v3078_v20 = vmax.f32 %v3004_v39, 0.0  ;;  %v7520_v62 = vld [vmem:[%s9815_s2 + $0x1c0] sm:$0xff]  }
 0x497   : > { %v3081_v26 = vmax.f32 %v3015_v61, 0.0  ;;  %7239 = vmatprep.subr.bf16.mxu1 %v7520_v62 }
 0x498   : > { %v3079_v15 = vmax.f32 %v3007_v51, 0.0 }
 0x499   : > { %v8831_v13 = vpack.c.bf16 %v3081_v26, %v3080_v7 }
 0x49a   : > { %v8833_v37 = vpack.c.bf16 %v3079_v15, %v3078_v20 }
 0x49b   : > { %9930 = vst [vmem:[#allocation36_spill] sm:$0xff] %v8831_v13 }
 0x49c   : > { %9931 = vst [vmem:[#allocation37_spill] sm:$0xff] %v8833_v37  ;;  %7075 = vmatprep.mubr.bf16.mxu0 %v8833_v37 }
 0x49d   : > { %7076 = vmatmul.mubr.bf16.gmra.mrb[156].mxu0 %v8831_v13 }
 0x49e   : > { %7175 = vmatprep.mubr.bf16.mxu0 %v8647_v55 }
 0x4a5   : > { %7176 = vmatmul.mubr.bf16.vlgmr.msra.gmra.mrb[160].mxu0 %v8645_v19 }
 0x4a6   : > { %7179 = vmatprep.mubr.bf16.mxu0 %v8663_v28 }
 0x4ad   : > { %7180 = vmatmul.mubr.bf16.gmra.mrb[164].mxu0 %v8661_v42 }
 0x4ae   : > { %7183 = vmatprep.mubr.bf16.mxu0 %v8682_v60 }
 0x4b5   : > { %7184 = vmatmul.mubr.bf16.gmra.mrb[168].mxu0 %v8680_v23 }
 0x4b6   : > { %7187 = vmatprep.mubr.bf16.mxu0 %v8698_v17 }
 0x4bd   : > { %7188 = vmatmul.mubr.bf16.gmra.mrb[172].mxu0 %v8696_v59 }
 0x4be   : > { %7191 = vmatprep.mubr.bf16.mxu0 %v8714_v27 }
 0x4c5   : > { %7192 = vmatmul.mubr.bf16.gmra.mrb[176].mxu0 %v8712_v10 }
 0x4c6   : > { %7195 = vmatprep.mubr.bf16.mxu0 %v8724_v58 }
 0x4cd   : > { %7196 = vmatmul.mubr.bf16.gmra.mrb[180].mxu0 %v8722_v1 }
 0x4ce   : > { %7199 = vmatprep.mubr.bf16.mxu0 %v8737_v29 }
 0x4d5   : > { %7200 = vmatmul.mubr.bf16.gmra.mrb[184].mxu0 %v8735_v46 }
 0x4d6   : > { %7203 = vmatprep.mubr.bf16.mxu0 %v8747_v54 }
 0x4dd   : > { %7204 = vmatmul.mubr.bf16.gmra.mrb[188].mxu0 %v8745_v31 }
 0x4de   : > { %7207 = vmatprep.mubr.bf16.mxu0 %v8760_v50 }
 0x4e5   : > { %7208 = vmatmul.mubr.bf16.gmra.mrb[192].mxu0 %v8758_v52 }
 0x4e6   : > { %7211 = vmatprep.mubr.bf16.mxu0 %v8770_v11 }
 0x4ed   : > { %7212 = vmatmul.mubr.bf16.gmra.mrb[196].mxu0 %v8768_v57 }
 0x4ee   : > { %7215 = vmatprep.mubr.bf16.mxu0 %v8783_v8 }
 0x4f5   : > { %7216 = vmatmul.mubr.bf16.gmra.mrb[200].mxu0 %v8781_v18 }
 0x4f6   : > { %7219 = vmatprep.mubr.bf16.mxu0 %v8793_v25  ;;  %v9932_v25 = vld [vmem:[#allocation8_spill] sm:$0xff] }
 0x4f8   : > { %v7017_v34 = vpop.f32.mrb[96].mxu0 }
 0x4f9   : > { %v3230_v6 = vadd.f32 %v7017_v34, %v8866_v36  ;;  %v3221_v16 = vpop.f32.mrb[97].mxu0 }
 0x4fa   : > { %v3222_v44 = vadd.f32 %v8866_v36, %v3221_v16  ;;  %v7018_v14 = vpop.f32.mrb[98].mxu0 }
 0x4fb   : > { %v3233_v41 = vadd.f32 %v7018_v14, %v8866_v36  ;;  %v3224_v3 = vpop.f32.mrb[99].mxu0  ;;  %v3478_v5 = vmax.f32 %v3230_v6, 0.0 }
 0x4fc   : > { %v3225_v39 = vadd.f32 %v8866_v36, %v3224_v3  ;;  %v3476_v30 = vmax.f32 %v3222_v44, 0.0  ;;  %v9933_v3 = vld [vmem:[#allocation9_spill] sm:$0xff] }
 0x4fd   : > { %v3479_v61 = vmax.f32 %v3233_v41, 0.0  ;;  %7220 = vmatmul.mubr.bf16.gmra.mrb[204].mxu0 %v8791_v35  ;;  %v7521_v44 = vld [vmem:[%s9815_s2 + $0x1c8] sm:$0xff]  }
 0x4fe   : > { %v3477_v51 = vmax.f32 %v3225_v39, 0.0  ;;  %7223 = vmatprep.mubr.bf16.mxu0 %v8803_v40 }
 0x4ff   : > { %v3541_v7 = vpack.c.bf16 %v3479_v61, %v3478_v5 }
 0x500   : > { %v3540_v26 = vpack.c.bf16 %v3477_v51, %v3476_v30  ;;  %v7021_v20 = vpop.f32.mrb[100].mxu0 }
 0x501   : > { %v3246_v15 = vadd.f32 %v7021_v20, %v8866_v36  ;;  %v3237_v34 = vpop.f32.mrb[101].mxu0  ;;  %v3573_v6 = vadd.bf16 %v3541_v7, %v9933_v3  ;;  %v7522_v7 = vld [vmem:[%s9815_s2 + $0x1d0] sm:$0xff]  }
 0x502   : > { %v3238_v16 = vadd.f32 %v8866_v36, %v3237_v34  ;;  %v7022_v14 = vpop.f32.mrb[102].mxu0  ;;  %v3572_v8 = vadd.bf16 %v3540_v26, %v9932_v25  ;;  %v9934_v3 = vld [vmem:[#allocation10_spill] sm:$0xff] }
 0x503   : > { %v3249_v41 = vadd.f32 %v7022_v14, %v8866_v36  ;;  %v3240_v35 = vpop.f32.mrb[103].mxu0  ;;  %v3482_v5 = vmax.f32 %v3246_v15, 0.0 }
 0x504   : > { %v3241_v39 = vadd.f32 %v8866_v36, %v3240_v35  ;;  %7095 = vmatprep.mubr.bf16.mxu1 %v3572_v8  ;;  %v3480_v30 = vmax.f32 %v3238_v16, 0.0 }
 0x505   : > { %v3483_v61 = vmax.f32 %v3249_v41, 0.0  ;;  %7096 = vmatmul.mubr.bf16.vlgmr.msra.gmra.mrb[160].mxu1 %v3573_v6  ;;  %7224 = vmatmul.mubr.bf16.gmra.mrb[208].mxu0 %v8801_v24 }
 0x506   : > { %v3481_v51 = vmax.f32 %v3241_v39, 0.0  ;;  %7227 = vmatprep.mubr.bf16.mxu0 %v8813_v0  ;;  %7240 = vmatpush3.bf16.msra.mxu1 %v7520_v62 }
 0x507   : > { %v3543_v25 = vpack.c.bf16 %v3483_v61, %v3482_v5  ;;  %7241 = vmatprep.subr.bf16.mxu1 %v7521_v44 }
 0x508   : > { %v3542_v26 = vpack.c.bf16 %v3481_v51, %v3480_v30  ;;  %v7025_v20 = vpop.f32.mrb[104].mxu0 }
 0x509   : > { %v3262_v8 = vadd.f32 %v7025_v20, %v8866_v36  ;;  %v3253_v35 = vpop.f32.mrb[105].mxu0  ;;  %v3575_v6 = vadd.bf16 %v3543_v25, %v9934_v3 }
 0x50a   : > { %v3254_v15 = vadd.f32 %v8866_v36, %v3253_v35  ;;  %v7026_v34 = vpop.f32.mrb[106].mxu0  ;;  %v3574_v16 = vadd.bf16 %v3542_v26, %v7857_v48  ;;  %7242 = vmatpush3.bf16.msra.mxu1 %v7521_v44 }
 0x50b   : > { %v3265_v14 = vadd.f32 %v7026_v34, %v8866_v36  ;;  %v3256_v62 = vpop.f32.mrb[107].mxu0  ;;  %7243 = vmatprep.subr.bf16.mxu1 %v7522_v7  ;;  %v3486_v39 = vmax.f32 %v3262_v8, 0.0 }
 0x50c   : > { %v3257_v41 = vadd.f32 %v8866_v36, %v3256_v62  ;;  %7099 = vmatprep.mubr.bf16.mxu1 %v3574_v16  ;;  %v3484_v61 = vmax.f32 %v3254_v15, 0.0 }
 0x50d   : > { %v3487_v5 = vmax.f32 %v3265_v14, 0.0  ;;  %7100 = vmatmul.mubr.bf16.gmra.mrb[164].mxu1 %v3575_v6  ;;  %7228 = vmatmul.mubr.bf16.gmra.mrb[212].mxu0 %v8811_v12  ;;  %v9935_v14 = vld [vmem:[#allocation11_spill] sm:$0xff] }
 0x50e   : > { %v3485_v30 = vmax.f32 %v3257_v41, 0.0  ;;  %7231 = vmatprep.mubr.bf16.mxu0 %v8823_v49  ;;  %7244 = vmatpush3.bf16.msra.mxu1 %v7522_v7 }
 0x50f   : > { %v3545_v48 = vpack.c.bf16 %v3487_v5, %v3486_v39 }
 0x510   : > { %v3544_v44 = vpack.c.bf16 %v3485_v30, %v3484_v61  ;;  %v7029_v51 = vpop.f32.mrb[108].mxu0 }
 0x511   : > { %v3278_v26 = vadd.f32 %v7029_v51, %v8866_v36  ;;  %v3269_v25 = vpop.f32.mrb[109].mxu0  ;;  %v3577_v15 = vadd.bf16 %v3545_v48, %v9935_v14 }
 0x512   : > { %v3270_v20 = vadd.f32 %v8866_v36, %v3269_v25  ;;  %v7030_v35 = vpop.f32.mrb[110].mxu0  ;;  %v3576_v8 = vadd.bf16 %v3544_v44, %v7871_v2  ;;  %v7523_v2 = vld [vmem:[%s9815_s2 + $0x1d8] sm:$0xff]  }
 0x513   : > { %v3281_v34 = vadd.f32 %v7030_v35, %v8866_v36  ;;  %v3272_v16 = vpop.f32.mrb[111].mxu0  ;;  %v3490_v7 = vmax.f32 %v3278_v26, 0.0  ;;  %7245 = vmatprep.subr.bf16.mxu1 %v7523_v2 }
 0x514   : > { %v3273_v62 = vadd.f32 %v8866_v36, %v3272_v16  ;;  %7103 = vmatprep.mubr.bf16.mxu1 %v3576_v8  ;;  %v3488_v6 = vmax.f32 %v3270_v20, 0.0  ;;  %7246 = vmatpush3.bf16.msra.mxu1 %v7523_v2 }
 0x515   : > { %v3491_v3 = vmax.f32 %v3281_v34, 0.0  ;;  %7104 = vmatmul.mubr.bf16.gmra.mrb[168].mxu1 %v3577_v15  ;;  %7232 = vmatmul.mubr.bf16.gmra.mrb[216].mxu0 %v8821_v47 }
 0x516   : > { %v3489_v41 = vmax.f32 %v3273_v62, 0.0  ;;  %7235 = vmatprep.mubr.bf16.mxu0 %v8833_v37 }
 0x517   : > { %v3547_v39 = vpack.c.bf16 %v3491_v3, %v3490_v7 }
 0x518   : > { %v3546_v5 = vpack.c.bf16 %v3489_v41, %v3488_v6  ;;  %v7033_v61 = vpop.f32.mrb[112].mxu0 }
 0x519   : > { %v3294_v30 = vadd.f32 %v7033_v61, %v8866_v36  ;;  %v3285_v48 = vpop.f32.mrb[113].mxu0  ;;  %v3579_v35 = vadd.bf16 %v3547_v39, %v7892_v32 }
 0x51a   : > { %v3286_v44 = vadd.f32 %v8866_v36, %v3285_v48  ;;  %v7034_v51 = vpop.f32.mrb[114].mxu0  ;;  %v3578_v26 = vadd.bf16 %v3546_v5, %v7885_v22 }
 0x51b   : > { %v3297_v25 = vadd.f32 %v7034_v51, %v8866_v36  ;;  %v3288_v20 = vpop.f32.mrb[115].mxu0  ;;  %v3494_v34 = vmax.f32 %v3294_v30, 0.0 }
 0x51c   : > { %v3289_v8 = vadd.f32 %v8866_v36, %v3288_v20  ;;  %7107 = vmatprep.mubr.bf16.mxu1 %v3578_v26  ;;  %v3492_v14 = vmax.f32 %v3286_v44, 0.0  ;;  %v7524_v20 = vld [vmem:[%s9815_s2 + $0x1e0] sm:$0xff]  }
 0x51d   : > { %v3495_v16 = vmax.f32 %v3297_v25, 0.0  ;;  %7108 = vmatmul.mubr.bf16.gmra.mrb[172].mxu1 %v3579_v35  ;;  %7236 = vmatmul.mubr.bf16.gmra.mrb[220].mxu0 %v8831_v13 }
 0x51e   : > { %v3493_v15 = vmax.f32 %v3289_v8, 0.0  ;;  %7247 = vmatprep.subr.bf16.mxu1 %v7524_v20 }
 0x51f   : > { %v3549_v62 = vpack.c.bf16 %v3495_v16, %v3494_v34  ;;  %7248 = vmatpush3.bf16.msra.mxu1 %v7524_v20 }
 0x520   : > { %v3548_v7 = vpack.c.bf16 %v3493_v15, %v3492_v14  ;;  %v7037_v3 = vpop.f32.mrb[116].mxu0 }
 0x521   : > { %v3310_v22 = vadd.f32 %v7037_v3, %v8866_v36  ;;  %v3301_v6 = vpop.f32.mrb[117].mxu0  ;;  %v3581_v61 = vadd.bf16 %v3549_v62, %v7906_v53 }
 0x522   : > { %v3302_v41 = vadd.f32 %v8866_v36, %v3301_v6  ;;  %v7038_v2 = vpop.f32.mrb[118].mxu0  ;;  %v3580_v32 = vadd.bf16 %v3548_v7, %v7899_v43 }
 0x523   : > { %v3313_v39 = vadd.f32 %v7038_v2, %v8866_v36  ;;  %v3304_v5 = vpop.f32.mrb[119].mxu0  ;;  %v3498_v48 = vmax.f32 %v3310_v22, 0.0 }
 0x524   : > { %v3305_v30 = vadd.f32 %v8866_v36, %v3304_v5  ;;  %7111 = vmatprep.mubr.bf16.mxu1 %v3580_v32  ;;  %v3496_v51 = vmax.f32 %v3302_v41, 0.0 }
 0x525   : > { %v3499_v44 = vmax.f32 %v3313_v39, 0.0  ;;  %7112 = vmatmul.mubr.bf16.gmra.mrb[176].mxu1 %v3581_v61 }
 0x526   : > { %v3497_v26 = vmax.f32 %v3305_v30, 0.0 }
 0x527   : > { %v3551_v25 = vpack.c.bf16 %v3499_v44, %v3498_v48 }
 0x528   : > { %v3550_v35 = vpack.c.bf16 %v3497_v26, %v3496_v51  ;;  %v7041_v43 = vpop.f32.mrb[120].mxu0 }
 0x529   : > { %v3326_v8 = vadd.f32 %v7041_v43, %v8866_v36  ;;  %v3317_v34 = vpop.f32.mrb[121].mxu0  ;;  %v3583_v7 = vadd.bf16 %v3551_v25, %v7920_v9 }
 0x52a   : > { %v3318_v53 = vadd.f32 %v8866_v36, %v3317_v34  ;;  %v7042_v16 = vpop.f32.mrb[122].mxu0  ;;  %v3582_v14 = vadd.bf16 %v3550_v35, %v7913_v63 }
 0x52b   : > { %v3329_v15 = vadd.f32 %v7042_v16, %v8866_v36  ;;  %v3320_v62 = vpop.f32.mrb[123].mxu0  ;;  %v3502_v22 = vmax.f32 %v3326_v8, 0.0 }
 0x52c   : > { %v3321_v3 = vadd.f32 %v8866_v36, %v3320_v62  ;;  %7115 = vmatprep.mubr.bf16.mxu1 %v3582_v14  ;;  %v3500_v41 = vmax.f32 %v3318_v53, 0.0  ;;  %v7525_v53 = vld [vmem:[%s9815_s2 + $0x1e8] sm:$0xff]  }
 0x52d   : > { %v3503_v6 = vmax.f32 %v3329_v15, 0.0  ;;  %7116 = vmatmul.mubr.bf16.gmra.mrb[180].mxu1 %v3583_v7  ;;  %7249 = vmatprep.subr.bf16.mxu1 %v7525_v53 }
 0x52e   : > { %v3501_v2 = vmax.f32 %v3321_v3, 0.0  ;;  %7250 = vmatpush3.bf16.msra.mxu1 %v7525_v53 }
 0x52f   : > { %v3553_v32 = vpack.c.bf16 %v3503_v6, %v3502_v22 }
 0x530   : > { %v3552_v39 = vpack.c.bf16 %v3501_v2, %v3500_v41  ;;  %v7045_v5 = vpop.f32.mrb[124].mxu0 }
 0x531   : > { %v3342_v61 = vadd.f32 %v7045_v5, %v8866_v36  ;;  %v3333_v63 = vpop.f32.mrb[125].mxu0  ;;  %v3585_v26 = vadd.bf16 %v3553_v32, %v7934_v33 }
 0x532   : > { %v3334_v30 = vadd.f32 %v8866_v36, %v3333_v63  ;;  %v7046_v48 = vpop.f32.mrb[126].mxu0  ;;  %v3584_v44 = vadd.bf16 %v3552_v39, %v7927_v21 }
 0x533   : > { %v3345_v9 = vadd.f32 %v7046_v48, %v8866_v36  ;;  %v3336_v51 = vpop.f32.mrb[127].mxu0  ;;  %v3506_v20 = vmax.f32 %v3342_v61, 0.0 }
 0x534   : > { %v3337_v25 = vadd.f32 %v8866_v36, %v3336_v51  ;;  %7119 = vmatprep.mubr.bf16.mxu1 %v3584_v44  ;;  %v3504_v43 = vmax.f32 %v3334_v30, 0.0 }
 0x535   : > { %v3507_v35 = vmax.f32 %v3345_v9, 0.0  ;;  %7120 = vmatmul.mubr.bf16.gmra.mrb[184].mxu1 %v3585_v26 }
 0x536   : > { %v3505_v8 = vmax.f32 %v3337_v25, 0.0  ;;  %v9936_v25 = vld [vmem:[#allocation12_spill] sm:$0xff] }
 0x537   : > { %v3555_v34 = vpack.c.bf16 %v3507_v35, %v3506_v20 }
 0x538   : > { %v3554_v16 = vpack.c.bf16 %v3505_v8, %v3504_v43  ;;  %v7049_v21 = vpop.f32.mrb[128].mxu0 }
 0x539   : > { %v3358_v14 = vadd.f32 %v7049_v21, %v8866_v36  ;;  %v3349_v15 = vpop.f32.mrb[129].mxu0  ;;  %v3587_v6 = vadd.bf16 %v3555_v34, %v7948_v56  ;;  %v7526_v21 = vld [vmem:[%s9815_s2 + $0x1f0] sm:$0xff]  }
 0x53a   : > { %v3350_v33 = vadd.f32 %v8866_v36, %v3349_v15  ;;  %v7050_v62 = vpop.f32.mrb[130].mxu0  ;;  %v3586_v7 = vadd.bf16 %v3554_v16, %v7941_v45  ;;  %7251 = vmatprep.subr.bf16.mxu1 %v7526_v21 }
 0x53b   : > { %v3361_v3 = vadd.f32 %v7050_v62, %v8866_v36  ;;  %v3352_v22 = vpop.f32.mrb[131].mxu0  ;;  %v3510_v2 = vmax.f32 %v3358_v14, 0.0  ;;  %7252 = vmatpush3.bf16.msra.mxu1 %v7526_v21 }
 0x53c   : > { %v3353_v41 = vadd.f32 %v8866_v36, %v3352_v22  ;;  %7123 = vmatprep.mubr.bf16.mxu1 %v3586_v7  ;;  %v3508_v39 = vmax.f32 %v3350_v33, 0.0 }
 0x53d   : > { %v3511_v32 = vmax.f32 %v3361_v3, 0.0  ;;  %7124 = vmatmul.mubr.bf16.gmra.mrb[188].mxu1 %v3587_v6  ;;  %v9937_v3 = vld [vmem:[#allocation13_spill] sm:$0xff] }
 0x53e   : > { %v3509_v5 = vmax.f32 %v3353_v41, 0.0 }
 0x53f   : > { %v3557_v61 = vpack.c.bf16 %v3511_v32, %v3510_v2  ;;  %v9938_v2 = vld [vmem:[#allocation14_spill] sm:$0xff] }
 0x540   : > { %v3556_v63 = vpack.c.bf16 %v3509_v5, %v3508_v39  ;;  %v7053_v30 = vpop.f32.mrb[132].mxu0 }
 0x541   : > { %v3374_v48 = vadd.f32 %v7053_v30, %v8866_v36  ;;  %v3365_v45 = vpop.f32.mrb[133].mxu0  ;;  %v3589_v20 = vadd.bf16 %v3557_v61, %v9936_v25  ;;  %v9939_v25 = vld [vmem:[#allocation15_spill] sm:$0xff] }
 0x542   : > { %v3366_v44 = vadd.f32 %v8866_v36, %v3365_v45  ;;  %v7054_v9 = vpop.f32.mrb[134].mxu0  ;;  %v3588_v51 = vadd.bf16 %v3556_v63, %v7955_v4 }
 0x543   : > { %v3377_v56 = vadd.f32 %v7054_v9, %v8866_v36  ;;  %v3368_v26 = vpop.f32.mrb[135].mxu0  ;;  %v3514_v43 = vmax.f32 %v3374_v48, 0.0 }
 0x544   : > { %v3369_v35 = vadd.f32 %v8866_v36, %v3368_v26  ;;  %7127 = vmatprep.mubr.bf16.mxu1 %v3588_v51  ;;  %v3512_v34 = vmax.f32 %v3366_v44, 0.0 }
 0x545   : > { %v3515_v8 = vmax.f32 %v3377_v56, 0.0  ;;  %7128 = vmatmul.mubr.bf16.gmra.mrb[192].mxu1 %v3589_v20 }
 0x546   : > { %v3513_v53 = vmax.f32 %v3369_v35, 0.0 }
 0x547   : > { %v3559_v16 = vpack.c.bf16 %v3515_v8, %v3514_v43  ;;  %v9940_v8 = vld [vmem:[#allocation16_spill] sm:$0xff] }
 0x548   : > { %v3558_v14 = vpack.c.bf16 %v3513_v53, %v3512_v34  ;;  %v7057_v4 = vpop.f32.mrb[136].mxu0 }
 0x549   : > { %v3390_v15 = vadd.f32 %v7057_v4, %v8866_v36  ;;  %v3381_v33 = vpop.f32.mrb[137].mxu0  ;;  %v3591_v32 = vadd.bf16 %v3559_v16, %v9938_v2  ;;  %v9941_v2 = vld [vmem:[#allocation17_spill] sm:$0xff] }
 0x54a   : > { %v3382_v62 = vadd.f32 %v8866_v36, %v3381_v33  ;;  %v7058_v7 = vpop.f32.mrb[138].mxu0  ;;  %v3590_v22 = vadd.bf16 %v3558_v14, %v9937_v3  ;;  %v7527_v33 = vld [vmem:[%s9815_s2 + $0x1f8] sm:$0xff]  }
 0x54b   : > { %v3393_v6 = vadd.f32 %v7058_v7, %v8866_v36  ;;  %v3384_v41 = vpop.f32.mrb[139].mxu0  ;;  %v3518_v5 = vmax.f32 %v3390_v15, 0.0  ;;  %7253 = vmatprep.subr.bf16.mxu1 %v7527_v33 }
 0x54c   : > { %v3385_v39 = vadd.f32 %v8866_v36, %v3384_v41  ;;  %7131 = vmatprep.mubr.bf16.mxu1 %v3590_v22  ;;  %v3516_v63 = vmax.f32 %v3382_v62, 0.0  ;;  %7254 = vmatpush3.bf16.msra.mxu1 %v7527_v33 }
 0x54d   : > { %v3519_v61 = vmax.f32 %v3393_v6, 0.0  ;;  %7132 = vmatmul.mubr.bf16.gmra.mrb[196].mxu1 %v3591_v32 }
 0x54e   : > { %v3517_v30 = vmax.f32 %v3385_v39, 0.0 }
 0x54f   : > { %v3561_v48 = vpack.c.bf16 %v3519_v61, %v3518_v5  ;;  %v9942_v61 = vld [vmem:[#allocation18_spill] sm:$0xff] }
 0x550   : > { %v3560_v45 = vpack.c.bf16 %v3517_v30, %v3516_v63  ;;  %v7061_v44 = vpop.f32.mrb[140].mxu0 }
 0x551   : > { %v3406_v9 = vadd.f32 %v7061_v44, %v8866_v36  ;;  %v3397_v51 = vpop.f32.mrb[141].mxu0  ;;  %v3593_v34 = vadd.bf16 %v3561_v48, %v9940_v8  ;;  %v9943_v8 = vld [vmem:[#allocation19_spill] sm:$0xff] }
 0x552   : > { %v3398_v56 = vadd.f32 %v8866_v36, %v3397_v51  ;;  %v7062_v26 = vpop.f32.mrb[142].mxu0  ;;  %v3592_v20 = vadd.bf16 %v3560_v45, %v9939_v25 }
 0x553   : > { %v3409_v35 = vadd.f32 %v7062_v26, %v8866_v36  ;;  %v3400_v43 = vpop.f32.mrb[143].mxu0  ;;  %v3522_v16 = vmax.f32 %v3406_v9, 0.0 }
 0x554   : > { %v3401_v53 = vadd.f32 %v8866_v36, %v3400_v43  ;;  %7135 = vmatprep.mubr.bf16.mxu1 %v3592_v20  ;;  %v3520_v14 = vmax.f32 %v3398_v56, 0.0 }
 0x555   : > { %v3523_v21 = vmax.f32 %v3409_v35, 0.0  ;;  %7136 = vmatmul.mubr.bf16.gmra.mrb[200].mxu1 %v3593_v34 }
 0x556   : > { %v3521_v4 = vmax.f32 %v3401_v53, 0.0 }
 0x557   : > { %v3563_v15 = vpack.c.bf16 %v3523_v21, %v3522_v16  ;;  %v9944_v21 = vld [vmem:[#allocation20_spill] sm:$0xff] }
 0x558   : > { %v3562_v62 = vpack.c.bf16 %v3521_v4, %v3520_v14  ;;  %v7065_v7 = vpop.f32.mrb[144].mxu0 }
 0x559   : > { %v3422_v3 = vadd.f32 %v7065_v7, %v8866_v36  ;;  %v3413_v22 = vpop.f32.mrb[145].mxu0  ;;  %v3595_v63 = vadd.bf16 %v3563_v15, %v9942_v61 }
 0x55a   : > { %v3414_v6 = vadd.f32 %v8866_v36, %v3413_v22  ;;  %v7066_v41 = vpop.f32.mrb[146].mxu0  ;;  %v3594_v32 = vadd.bf16 %v3562_v62, %v9941_v2 }
 0x55b   : > { %v3425_v39 = vadd.f32 %v7066_v41, %v8866_v36  ;;  %v3416_v5 = vpop.f32.mrb[147].mxu0  ;;  %v3526_v48 = vmax.f32 %v3422_v3, 0.0 }
 0x55c   : > { %v3417_v30 = vadd.f32 %v8866_v36, %v3416_v5  ;;  %7139 = vmatprep.mubr.bf16.mxu1 %v3594_v32  ;;  %v3524_v44 = vmax.f32 %v3414_v6, 0.0  ;;  %v9945_v5 = vld [vmem:[#allocation21_spill] sm:$0xff] }
 0x55d   : > { %v3527_v45 = vmax.f32 %v3425_v39, 0.0  ;;  %7140 = vmatmul.mubr.bf16.gmra.mrb[204].mxu1 %v3595_v63 }
 0x55e   : > { %v3525_v9 = vmax.f32 %v3417_v30, 0.0 }
 0x55f   : > { %v3565_v51 = vpack.c.bf16 %v3527_v45, %v3526_v48  ;;  %v9946_v48 = vld [vmem:[#allocation22_spill] sm:$0xff] }
 0x560   : > { %v3564_v56 = vpack.c.bf16 %v3525_v9, %v3524_v44  ;;  %v7069_v26 = vpop.f32.mrb[148].mxu0 }
 0x561   : > { %v3438_v25 = vadd.f32 %v7069_v26, %v8866_v36  ;;  %v3429_v20 = vpop.f32.mrb[149].mxu0  ;;  %v3597_v14 = vadd.bf16 %v3565_v51, %v9944_v21 }
 0x562   : > { %v3430_v35 = vadd.f32 %v8866_v36, %v3429_v20  ;;  %v7070_v43 = vpop.f32.mrb[150].mxu0  ;;  %v3596_v34 = vadd.bf16 %v3564_v56, %v9943_v8 }
 0x563   : > { %v3441_v53 = vadd.f32 %v7070_v43, %v8866_v36  ;;  %v3432_v16 = vpop.f32.mrb[151].mxu0  ;;  %v3530_v15 = vmax.f32 %v3438_v25, 0.0 }
 0x564   : > { %v3433_v4 = vadd.f32 %v8866_v36, %v3432_v16  ;;  %7143 = vmatprep.mubr.bf16.mxu1 %v3596_v34  ;;  %v3528_v62 = vmax.f32 %v3430_v35, 0.0 }
 0x565   : > { %v3531_v33 = vmax.f32 %v3441_v53, 0.0  ;;  %7144 = vmatmul.mubr.bf16.gmra.mrb[208].mxu1 %v3597_v14 }
 0x566   : > { %v3529_v7 = vmax.f32 %v3433_v4, 0.0  ;;  %v9947_v4 = vld [vmem:[#allocation24_spill] sm:$0xff] }
 0x567   : > { %v3567_v3 = vpack.c.bf16 %v3531_v33, %v3530_v15 }
 0x568   : > { %v3566_v22 = vpack.c.bf16 %v3529_v7, %v3528_v62  ;;  %v7073_v6 = vpop.f32.mrb[152].mxu0 }
 0x569   : > { %v3454_v41 = vadd.f32 %v7073_v6, %v8866_v36  ;;  %v3445_v2 = vpop.f32.mrb[153].mxu0  ;;  %v3599_v45 = vadd.bf16 %v3567_v3, %v9946_v48  ;;  %v8995_v6 = vld [vmem:[%s9816_s3 + $0x7] ss:$0 sm:$0xff] }
 0x56a   : > { %v3446_v32 = vadd.f32 %v8866_v36, %v3445_v2  ;;  %v7074_v39 = vpop.f32.mrb[154].mxu0  ;;  %v3598_v61 = vadd.bf16 %v3566_v22, %v9945_v5 }
 0x56b   : > { %v3457_v63 = vadd.f32 %v7074_v39, %v8866_v36  ;;  %v3448_v30 = vpop.f32.mrb[155].mxu0  ;;  %v3534_v9 = vmax.f32 %v3454_v41, 0.0 }
 0x56c   : > { %v3449_v44 = vadd.f32 %v8866_v36, %v3448_v30  ;;  %7147 = vmatprep.mubr.bf16.mxu1 %v3598_v61  ;;  %v3532_v56 = vmax.f32 %v3446_v32, 0.0  ;;  %v9948_v61 = vld [vmem:[#allocation25_spill] sm:$0xff] }
 0x56d   : > { %v3535_v51 = vmax.f32 %v3457_v63, 0.0  ;;  %7148 = vmatmul.mubr.bf16.gmra.mrb[212].mxu1 %v3599_v45  ;;  %v9949_v45 = vld [vmem:[#allocation26_spill] sm:$0xff] }
 0x56e   : > { %v3533_v26 = vmax.f32 %v3449_v44, 0.0 }
 0x56f   : > { %v3569_v25 = vpack.c.bf16 %v3535_v51, %v3534_v9 }
 0x570   : > { %v3568_v20 = vpack.c.bf16 %v3533_v26, %v3532_v56  ;;  %v7077_v35 = vpop.f32.mrb[156].mxu0 }
 0x571   : > { %v3470_v43 = vadd.f32 %v7077_v35, %v8866_v36  ;;  %v3461_v8 = vpop.f32.mrb[157].mxu0  ;;  %v3601_v15 = vadd.bf16 %v3569_v25, %v9947_v4 }
 0x572   : > { %v3462_v34 = vadd.f32 %v8866_v36, %v3461_v8  ;;  %v7078_v53 = vpop.f32.mrb[158].mxu0  ;;  %v3600_v16 = vadd.bf16 %v3568_v20, %v9914_v38 }
 0x573   : > { %v3473_v21 = vadd.f32 %v7078_v53, %v8866_v36  ;;  %v3464_v14 = vpop.f32.mrb[159].mxu0  ;;  %v3538_v62 = vmax.f32 %v3470_v43, 0.0 }
 0x574   : > { %v3465_v33 = vadd.f32 %v8866_v36, %v3464_v14  ;;  %7151 = vmatprep.mubr.bf16.mxu1 %v3600_v16  ;;  %v3536_v3 = vmax.f32 %v3462_v34, 0.0 }
 0x575   : > { %v3539_v7 = vmax.f32 %v3473_v21, 0.0  ;;  %7152 = vmatmul.mubr.bf16.gmra.mrb[216].mxu1 %v3601_v15 }
 0x576   : > { %v3537_v22 = vmax.f32 %v3465_v33, 0.0 }
 0x577   : > { %v3571_v41 = vpack.c.bf16 %v3539_v7, %v3538_v62 }
 0x578   : > { %v3570_v38 = vpack.c.bf16 %v3537_v22, %v3536_v3  ;;  %v7177_v2 = vpop.f32.mrb[160].mxu0 }
 0x579   : > { %v4210_v32 = vadd.f32 %v7177_v2, %v8995_v6  ;;  %v4201_v39 = vpop.f32.mrb[161].mxu0  ;;  %v3603_v44 = vadd.bf16 %v3571_v41, %v9949_v45 }
 0x57a   : > { %v4202_v5 = vadd.f32 %v8995_v6, %v4201_v39  ;;  %v7178_v36 = vpop.f32.mrb[162].mxu0  ;;  %v3602_v63 = vadd.bf16 %v3570_v38, %v9948_v61 }
 0x57b   : > { %v4213_v30 = vadd.f32 %v7178_v36, %v8995_v6  ;;  %v4204_v48 = vpop.f32.mrb[163].mxu0  ;;  %v4458_v51 = vmax.f32 %v4210_v32, 0.0 }
 0x57c   : > { %v4205_v9 = vadd.f32 %v8995_v6, %v4204_v48  ;;  %7155 = vmatprep.mubr.bf16.mxu1 %v3602_v63  ;;  %v4456_v26 = vmax.f32 %v4202_v5, 0.0 }
 0x57d   : > { %v4459_v56 = vmax.f32 %v4213_v30, 0.0  ;;  %7156 = vmatmul.mubr.bf16.gmra.mrb[220].mxu1 %v3603_v44 }
 0x57e   : > { %v4457_v25 = vmax.f32 %v4205_v9, 0.0 }
 0x57f   : > { %v9003_v20 = vpack.c.bf16 %v4459_v56, %v4458_v51 }
 0x580   : > { %v9005_v35 = vpack.c.bf16 %v4457_v25, %v4456_v26  ;;  %v7181_v43 = vpop.f32.mrb[164].mxu0 }
 0x581   : > { %v4226_v8 = vadd.f32 %v7181_v43, %v8995_v6  ;;  %v4217_v34 = vpop.f32.mrb[165].mxu0 }
 0x582   : > { %v4218_v53 = vadd.f32 %v8995_v6, %v4217_v34  ;;  %v7182_v16 = vpop.f32.mrb[166].mxu0 }
 0x583   : > { %v4229_v21 = vadd.f32 %v7182_v16, %v8995_v6  ;;  %v4220_v14 = vpop.f32.mrb[167].mxu0  ;;  %v4462_v15 = vmax.f32 %v4226_v8, 0.0 }
 0x584   : > { %v4221_v4 = vadd.f32 %v8995_v6, %v4220_v14  ;;  %v4460_v62 = vmax.f32 %v4218_v53, 0.0 }
 0x585   : > { %v4463_v33 = vmax.f32 %v4229_v21, 0.0 }
 0x586   : > { %v4461_v7 = vmax.f32 %v4221_v4, 0.0 }
 0x587   : > { %v9011_v3 = vpack.c.bf16 %v4463_v33, %v4462_v15 }
 0x588   : > { %v9013_v22 = vpack.c.bf16 %v4461_v7, %v4460_v62  ;;  %v7185_v41 = vpop.f32.mrb[168].mxu0 }
 0x589   : > { %v4242_v38 = vadd.f32 %v7185_v41, %v8995_v6  ;;  %v4233_v2 = vpop.f32.mrb[169].mxu0 }
 0x58a   : > { %v4234_v32 = vadd.f32 %v8995_v6, %v4233_v2  ;;  %v7186_v39 = vpop.f32.mrb[170].mxu0 }
 0x58b   : > { %v4245_v5 = vadd.f32 %v7186_v39, %v8995_v6  ;;  %v4236_v36 = vpop.f32.mrb[171].mxu0  ;;  %v4466_v63 = vmax.f32 %v4242_v38, 0.0 }
 0x58c   : > { %v4237_v61 = vadd.f32 %v8995_v6, %v4236_v36  ;;  %v4464_v48 = vmax.f32 %v4234_v32, 0.0 }
 0x58d   : > { %v4467_v30 = vmax.f32 %v4245_v5, 0.0 }
 0x58e   : > { %v4465_v45 = vmax.f32 %v4237_v61, 0.0 }
 0x58f   : > { %v9019_v44 = vpack.c.bf16 %v4467_v30, %v4466_v63 }
 0x590   : > { %v9021_v9 = vpack.c.bf16 %v4465_v45, %v4464_v48  ;;  %v7189_v51 = vpop.f32.mrb[172].mxu0 }
 0x591   : > { %v4258_v56 = vadd.f32 %v7189_v51, %v8995_v6  ;;  %v4249_v26 = vpop.f32.mrb[173].mxu0 }
 0x592   : > { %v4250_v25 = vadd.f32 %v8995_v6, %v4249_v26  ;;  %v7190_v43 = vpop.f32.mrb[174].mxu0 }
 0x593   : > { %v4261_v8 = vadd.f32 %v7190_v43, %v8995_v6  ;;  %v4252_v34 = vpop.f32.mrb[175].mxu0  ;;  %v4470_v16 = vmax.f32 %v4258_v56, 0.0 }
 0x594   : > { %v4253_v53 = vadd.f32 %v8995_v6, %v4252_v34  ;;  %v4468_v14 = vmax.f32 %v4250_v25, 0.0 }
 0x595   : > { %v4471_v21 = vmax.f32 %v4261_v8, 0.0 }
 0x596   : > { %v4469_v4 = vmax.f32 %v4253_v53, 0.0 }
 0x597   : > { %v9027_v15 = vpack.c.bf16 %v4471_v21, %v4470_v16 }
 0x598   : > { %v9029_v33 = vpack.c.bf16 %v4469_v4, %v4468_v14  ;;  %v7193_v62 = vpop.f32.mrb[176].mxu0 }
 0x599   : > { %v4274_v7 = vadd.f32 %v7193_v62, %v8995_v6  ;;  %v4265_v41 = vpop.f32.mrb[177].mxu0 }
 0x59a   : > { %v4266_v38 = vadd.f32 %v8995_v6, %v4265_v41  ;;  %v7194_v2 = vpop.f32.mrb[178].mxu0 }
 0x59b   : > { %v4277_v32 = vadd.f32 %v7194_v2, %v8995_v6  ;;  %v4268_v39 = vpop.f32.mrb[179].mxu0  ;;  %v4474_v36 = vmax.f32 %v4274_v7, 0.0 }
 0x59c   : > { %v4269_v5 = vadd.f32 %v8995_v6, %v4268_v39  ;;  %v4472_v63 = vmax.f32 %v4266_v38, 0.0 }
 0x59d   : > { %v4475_v61 = vmax.f32 %v4277_v32, 0.0 }
 0x59e   : > { %v4473_v30 = vmax.f32 %v4269_v5, 0.0 }
 0x59f   : > { %v9035_v48 = vpack.c.bf16 %v4475_v61, %v4474_v36 }
 0x5a0   : > { %v9037_v45 = vpack.c.bf16 %v4473_v30, %v4472_v63  ;;  %v7197_v51 = vpop.f32.mrb[180].mxu0 }
 0x5a1   : > { %v4290_v56 = vadd.f32 %v7197_v51, %v8995_v6  ;;  %v4281_v26 = vpop.f32.mrb[181].mxu0 }
 0x5a2   : > { %v4282_v25 = vadd.f32 %v8995_v6, %v4281_v26  ;;  %v7198_v43 = vpop.f32.mrb[182].mxu0 }
 0x5a3   : > { %v4293_v8 = vadd.f32 %v7198_v43, %v8995_v6  ;;  %v4284_v34 = vpop.f32.mrb[183].mxu0  ;;  %v4478_v16 = vmax.f32 %v4290_v56, 0.0 }
 0x5a4   : > { %v4285_v53 = vadd.f32 %v8995_v6, %v4284_v34  ;;  %v4476_v14 = vmax.f32 %v4282_v25, 0.0 }
 0x5a5   : > { %v4479_v21 = vmax.f32 %v4293_v8, 0.0 }
 0x5a6   : > { %v4477_v4 = vmax.f32 %v4285_v53, 0.0 }
 0x5a7   : > { %v9043_v62 = vpack.c.bf16 %v4479_v21, %v4478_v16 }
 0x5a8   : > { %v9045_v7 = vpack.c.bf16 %v4477_v4, %v4476_v14  ;;  %v7201_v41 = vpop.f32.mrb[184].mxu0 }
 0x5a9   : > { %v4306_v38 = vadd.f32 %v7201_v41, %v8995_v6  ;;  %v4297_v2 = vpop.f32.mrb[185].mxu0 }
 0x5aa   : > { %v4298_v32 = vadd.f32 %v8995_v6, %v4297_v2  ;;  %v7202_v39 = vpop.f32.mrb[186].mxu0 }
 0x5ab   : > { %v4309_v5 = vadd.f32 %v7202_v39, %v8995_v6  ;;  %v4300_v36 = vpop.f32.mrb[187].mxu0  ;;  %v4482_v63 = vmax.f32 %v4306_v38, 0.0 }
 0x5ac   : > { %v4301_v61 = vadd.f32 %v8995_v6, %v4300_v36  ;;  %v4480_v51 = vmax.f32 %v4298_v32, 0.0 }
 0x5ad   : > { %v4483_v30 = vmax.f32 %v4309_v5, 0.0 }
 0x5ae   : > { %v4481_v56 = vmax.f32 %v4301_v61, 0.0 }
 0x5af   : > { %v9051_v26 = vpack.c.bf16 %v4483_v30, %v4482_v63 }
 0x5b0   : > { %v9053_v25 = vpack.c.bf16 %v4481_v56, %v4480_v51  ;;  %v7205_v43 = vpop.f32.mrb[188].mxu0 }
 0x5b1   : > { %v4322_v8 = vadd.f32 %v7205_v43, %v8995_v6  ;;  %v4313_v34 = vpop.f32.mrb[189].mxu0 }
 0x5b2   : > { %v4314_v53 = vadd.f32 %v8995_v6, %v4313_v34  ;;  %v7206_v16 = vpop.f32.mrb[190].mxu0 }
 0x5b3   : > { %v4325_v21 = vadd.f32 %v7206_v16, %v8995_v6  ;;  %v4316_v14 = vpop.f32.mrb[191].mxu0  ;;  %v4486_v41 = vmax.f32 %v4322_v8, 0.0 }
 0x5b4   : > { %v4317_v4 = vadd.f32 %v8995_v6, %v4316_v14  ;;  %v4484_v2 = vmax.f32 %v4314_v53, 0.0 }
 0x5b5   : > { %v4487_v38 = vmax.f32 %v4325_v21, 0.0 }
 0x5b6   : > { %v4485_v32 = vmax.f32 %v4317_v4, 0.0 }
 0x5b7   : > { %v9059_v39 = vpack.c.bf16 %v4487_v38, %v4486_v41 }
 0x5b8   : > { %v9061_v5 = vpack.c.bf16 %v4485_v32, %v4484_v2  ;;  %v7209_v36 = vpop.f32.mrb[192].mxu0 }
 0x5b9   : > { %v4338_v61 = vadd.f32 %v7209_v36, %v8995_v6  ;;  %v4329_v63 = vpop.f32.mrb[193].mxu0 }
 0x5ba   : > { %v4330_v30 = vadd.f32 %v8995_v6, %v4329_v63  ;;  %v7210_v51 = vpop.f32.mrb[194].mxu0 }
 0x5bb   : > { %v4341_v56 = vadd.f32 %v7210_v51, %v8995_v6  ;;  %v4332_v43 = vpop.f32.mrb[195].mxu0  ;;  %v4490_v8 = vmax.f32 %v4338_v61, 0.0 }
 0x5bc   : > { %v4333_v34 = vadd.f32 %v8995_v6, %v4332_v43  ;;  %v4488_v53 = vmax.f32 %v4330_v30, 0.0 }
 0x5bd   : > { %v4491_v16 = vmax.f32 %v4341_v56, 0.0 }
 0x5be   : > { %v4489_v21 = vmax.f32 %v4333_v34, 0.0 }
 0x5bf   : > { %v9067_v14 = vpack.c.bf16 %v4491_v16, %v4490_v8 }
 0x5c0   : > { %v9069_v4 = vpack.c.bf16 %v4489_v21, %v4488_v53  ;;  %v7213_v41 = vpop.f32.mrb[196].mxu0 }
 0x5c1   : > { %v4354_v38 = vadd.f32 %v7213_v41, %v8995_v6  ;;  %v4345_v2 = vpop.f32.mrb[197].mxu0 }
 0x5c2   : > { %v4346_v32 = vadd.f32 %v8995_v6, %v4345_v2  ;;  %v7214_v36 = vpop.f32.mrb[198].mxu0  ;;  %v7528_v2 = vld [vmem:[%s9815_s2 + $0x200] sm:$0xff]  }
 0x5c3   : > { %v4357_v63 = vadd.f32 %v7214_v36, %v8995_v6  ;;  %v4348_v51 = vpop.f32.mrb[199].mxu0  ;;  %v4494_v61 = vmax.f32 %v4354_v38, 0.0  ;;  %7319 = vmatprep.subr.bf16.mxu0 %v7528_v2 }
 0x5c4   : > { %v4349_v43 = vadd.f32 %v8995_v6, %v4348_v51  ;;  %v4492_v30 = vmax.f32 %v4346_v32, 0.0  ;;  %7320 = vmatpush3.bf16.msra.mxu0 %v7528_v2 }
 0x5c5   : > { %v4495_v56 = vmax.f32 %v4357_v63, 0.0 }
 0x5c6   : > { %v4493_v34 = vmax.f32 %v4349_v43, 0.0 }
 0x5c7   : > { %v9075_v8 = vpack.c.bf16 %v4495_v56, %v4494_v61 }
 0x5c8   : > { %v9077_v16 = vpack.c.bf16 %v4493_v34, %v4492_v30  ;;  %v7217_v53 = vpop.f32.mrb[200].mxu0 }
 0x5c9   : > { %9950 = vst [vmem:[#allocation8_spill] sm:$0xff] %v9075_v8  ;;  %v4370_v21 = vadd.f32 %v7217_v53, %v8995_v6  ;;  %v4361_v41 = vpop.f32.mrb[201].mxu0 }
 0x5ca   : > { %9951 = vst [vmem:[#allocation9_spill] sm:$0xff] %v9077_v16  ;;  %v4362_v36 = vadd.f32 %v8995_v6, %v4361_v41  ;;  %v7218_v37 = vpop.f32.mrb[202].mxu0 }
 0x5cb   : > { %v4373_v38 = vadd.f32 %v7218_v37, %v8995_v6  ;;  %v4364_v63 = vpop.f32.mrb[203].mxu0  ;;  %v4498_v51 = vmax.f32 %v4370_v21, 0.0 }
 0x5cc   : > { %v4365_v32 = vadd.f32 %v8995_v6, %v4364_v63  ;;  %v4496_v61 = vmax.f32 %v4362_v36, 0.0 }
 0x5cd   : > { %v4499_v43 = vmax.f32 %v4373_v38, 0.0 }
 0x5ce   : > { %v4497_v56 = vmax.f32 %v4365_v32, 0.0  ;;  %v9097_v32 = vld [vmem:[%s9816_s3 + $0x6] ss:$0 sm:$0xff] }
 0x5cf   : > { %v9086_v30 = vpack.c.bf16 %v4499_v43, %v4498_v51 }
 0x5d0   : > { %v9088_v34 = vpack.c.bf16 %v4497_v56, %v4496_v61  ;;  %v7221_v53 = vpop.f32.mrb[204].mxu0 }
 0x5d1   : > { %9952 = vst [vmem:[#allocation10_spill] sm:$0xff] %v9086_v30  ;;  %v4386_v13 = vadd.f32 %v7221_v53, %v8995_v6  ;;  %v4377_v41 = vpop.f32.mrb[205].mxu0 }
 0x5d2   : > { %9953 = vst [vmem:[#allocation11_spill] sm:$0xff] %v9088_v34  ;;  %v4378_v49 = vadd.f32 %v8995_v6, %v4377_v41  ;;  %v7222_v37 = vpop.f32.mrb[206].mxu0 }
 0x5d3   : > { %v4389_v47 = vadd.f32 %v7222_v37, %v8995_v6  ;;  %v4380_v0 = vpop.f32.mrb[207].mxu0  ;;  %v4502_v21 = vmax.f32 %v4386_v13, 0.0 }
 0x5d4   : > { %v4381_v2 = vadd.f32 %v8995_v6, %v4380_v0  ;;  %v4500_v36 = vmax.f32 %v4378_v49, 0.0 }
 0x5d5   : > { %v4503_v38 = vmax.f32 %v4389_v47, 0.0  ;;  %v7529_v47 = vld [vmem:[%s9815_s2 + $0x208] sm:$0xff]  }
 0x5d6   : > { %v4501_v63 = vmax.f32 %v4381_v2, 0.0  ;;  %7321 = vmatprep.subr.bf16.mxu0 %v7529_v47 }
 0x5d7   : > { %v9099_v51 = vpack.c.bf16 %v4503_v38, %v4502_v21  ;;  %7322 = vmatpush3.bf16.msra.mxu0 %v7529_v47 }
 0x5d8   : > { %v9101_v43 = vpack.c.bf16 %v4501_v63, %v4500_v36  ;;  %v7097_v61 = vpop.f32.mrb[160].mxu1  ;;  %v7225_v56 = vpop.f32.mrb[208].mxu0 }
 0x5d9   : > { %9954 = vst [vmem:[#allocation12_spill] sm:$0xff] %v9099_v51  ;;  %v3720_v53 = vadd.f32 %v7097_v61, %v9097_v32  ;;  %v4402_v41 = vadd.f32 %v7225_v56, %v8995_v6  ;;  %v3711_v0 = vpop.f32.mrb[161].mxu1  ;;  %v4393_v13 = vpop.f32.mrb[209].mxu0  ;;  %v7530_v56 = vld [vmem:[%s9815_s2 + $0x210] sm:$0xff]  }
 0x5da   : > { %9955 = vst [vmem:[#allocation13_spill] sm:$0xff] %v9101_v43  ;;  %v3712_v49 = vadd.f32 %v9097_v32, %v3711_v0  ;;  %v4394_v37 = vadd.f32 %v8995_v6, %v4393_v13  ;;  %v7098_v2 = vpop.f32.mrb[162].mxu1  ;;  %v7226_v21 = vpop.f32.mrb[210].mxu0  ;;  %7323 = vmatprep.subr.bf16.mxu0 %v7530_v56 }
 0x5db   : > { %v3723_v38 = vadd.f32 %v7098_v2, %v9097_v32  ;;  %v4405_v36 = vadd.f32 %v7226_v21, %v8995_v6  ;;  %v3714_v63 = vpop.f32.mrb[163].mxu1  ;;  %v4396_v61 = vpop.f32.mrb[211].mxu0  ;;  %v3968_v0 = vmax.f32 %v3720_v53, 0.0  ;;  %v4506_v13 = vmax.f32 %v4402_v41, 0.0  ;;  %v7531_v2 = vld [vmem:[%s9815_s2 + $0x218] sm:$0xff]   ;;  %7324 = vmatpush3.bf16.msra.mxu0 %v7530_v56 }
 0x5dc   : > { %v3715_v12 = vadd.f32 %v9097_v32, %v3714_v63  ;;  %v4397_v40 = vadd.f32 %v8995_v6, %v4396_v61  ;;  %v3966_v21 = vmax.f32 %v3712_v49, 0.0  ;;  %v4504_v51 = vmax.f32 %v4394_v37, 0.0  ;;  %7325 = vmatprep.subr.bf16.mxu0 %v7531_v2 }
 0x5dd   : > { %v3969_v24 = vmax.f32 %v3723_v38, 0.0  ;;  %v4507_v43 = vmax.f32 %v4405_v36, 0.0 }
 0x5de   : > { %v3967_v34 = vmax.f32 %v3715_v12, 0.0  ;;  %v4505_v30 = vmax.f32 %v4397_v40, 0.0 }
 0x5df   : > { %v4031_v18 = vpack.c.bf16 %v3969_v24, %v3968_v0  ;;  %v9120_v16 = vpack.c.bf16 %v4507_v43, %v4506_v13  ;;  %v7532_v24 = vld [vmem:[%s9815_s2 + $0x220] sm:$0xff]   ;;  %7326 = vmatpush3.bf16.msra.mxu0 %v7531_v2 }
 0x5e0   : > { %v4030_v63 = vpack.c.bf16 %v3967_v34, %v3966_v21  ;;  %v9122_v8 = vpack.c.bf16 %v4505_v30, %v4504_v51  ;;  %v7101_v47 = vpop.f32.mrb[164].mxu1  ;;  %v7229_v53 = vpop.f32.mrb[212].mxu0  ;;  %7327 = vmatprep.subr.bf16.mxu0 %v7532_v24 }
 0x5e1   : > { %v4063_v41 = vadd.bf16 %v4031_v18, %v8645_v19  ;;  %v3736_v38 = vadd.f32 %v7101_v47, %v9097_v32  ;;  %v4418_v36 = vadd.f32 %v7229_v53, %v8995_v6  ;;  %v3727_v61 = vpop.f32.mrb[165].mxu1  ;;  %v4409_v49 = vpop.f32.mrb[213].mxu0 }
 0x5e2   : > { %9956 = vst [vmem:[#allocation14_spill] sm:$0xff] %v9122_v8  ;;  %v4062_v40 = vadd.bf16 %v4030_v63, %v8647_v55  ;;  %v3728_v12 = vadd.f32 %v9097_v32, %v3727_v61  ;;  %v4410_v30 = vadd.f32 %v8995_v6, %v4409_v49  ;;  %v7102_v34 = vpop.f32.mrb[166].mxu1  ;;  %v7230_v51 = vpop.f32.mrb[214].mxu0  ;;  %7255 = vmatprep.mubr.bf16.mxu1 %v4030_v63  ;;  %v7533_v63 = vld [vmem:[%s9815_s2 + $0x228] sm:$0xff]  }
 0x5e3   : > { %v3739_v19 = vadd.f32 %v7102_v34, %v9097_v32  ;;  %v4421_v43 = vadd.f32 %v7230_v51, %v8995_v6  ;;  %v3730_v37 = vpop.f32.mrb[167].mxu1  ;;  %v4412_v56 = vpop.f32.mrb[215].mxu0  ;;  %7256 = vmatmul.mubr.bf16.vlgmr.msra.gmra.mrb[224].mxu1 %v4031_v18  ;;  %v3972_v0 = vmax.f32 %v3736_v38, 0.0  ;;  %v4510_v13 = vmax.f32 %v4418_v36, 0.0  ;;  %7328 = vmatpush3.bf16.msra.mxu0 %v7532_v24 }
 0x5e4   : > { %v3731_v21 = vadd.f32 %v9097_v32, %v3730_v37  ;;  %v4413_v55 = vadd.f32 %v8995_v6, %v4412_v56  ;;  %v9141_v61 = vadd.bf16 %v9003_v20, %v4063_v41  ;;  %v9144_v49 = vadd.bf16 %v9005_v35, %v4062_v40  ;;  %7329 = vmatprep.subr.bf16.mxu0 %v7533_v63 }
 0x5e5   : > { %v3973_v47 = vmax.f32 %v3739_v19, 0.0  ;;  %v4511_v53 = vmax.f32 %v4421_v43, 0.0  ;;  %v3970_v18 = vmax.f32 %v3728_v12, 0.0  ;;  %v4508_v38 = vmax.f32 %v4410_v30, 0.0  ;;  %v7534_v12 = vld [vmem:[%s9815_s2 + $0x230] sm:$0xff]  }
 0x5e6   : > { %v3971_v36 = vmax.f32 %v3731_v21, 0.0  ;;  %v4509_v34 = vmax.f32 %v4413_v55, 0.0 }
 0x5e7   : > { %v4033_v51 = vpack.c.bf16 %v3973_v47, %v3972_v0  ;;  %v9146_v37 = vpack.c.bf16 %v4511_v53, %v4510_v13  ;;  %7330 = vmatpush3.bf16.msra.mxu0 %v7533_v63 }
 0x5e8   : > { %v4032_v2 = vpack.c.bf16 %v3971_v36, %v3970_v18  ;;  %v9148_v19 = vpack.c.bf16 %v4509_v34, %v4508_v38  ;;  %v7105_v43 = vpop.f32.mrb[168].mxu1  ;;  %v7233_v56 = vpop.f32.mrb[216].mxu0  ;;  %7331 = vmatprep.subr.bf16.mxu0 %v7534_v12 }
 0x5e9   : > { %v4065_v8 = vadd.bf16 %v4033_v51, %v8661_v42  ;;  %v3752_v20 = vadd.f32 %v7105_v43, %v9097_v32  ;;  %v4434_v35 = vadd.f32 %v7233_v56, %v8995_v6  ;;  %v3743_v41 = vpop.f32.mrb[169].mxu1  ;;  %v4425_v40 = vpop.f32.mrb[217].mxu0 }
 0x5ea   : > { %v4064_v30 = vadd.bf16 %v4032_v2, %v8663_v28  ;;  %v3744_v0 = vadd.f32 %v9097_v32, %v3743_v41  ;;  %v4426_v13 = vadd.f32 %v8995_v6, %v4425_v40  ;;  %v7106_v24 = vpop.f32.mrb[170].mxu1  ;;  %v7234_v21 = vpop.f32.mrb[218].mxu0  ;;  %7259 = vmatprep.mubr.bf16.mxu1 %v4032_v2  ;;  %v7535_v2 = vld [vmem:[%s9815_s2 + $0x238] sm:$0xff]  }
 0x5eb   : > { %v3755_v42 = vadd.f32 %v7106_v24, %v9097_v32  ;;  %v4437_v55 = vadd.f32 %v7234_v21, %v8995_v6  ;;  %v3746_v47 = vpop.f32.mrb[171].mxu1  ;;  %v4428_v53 = vpop.f32.mrb[219].mxu0  ;;  %7260 = vmatmul.mubr.bf16.gmra.mrb[228].mxu1 %v4033_v51  ;;  %v3976_v18 = vmax.f32 %v3752_v20, 0.0  ;;  %v4514_v38 = vmax.f32 %v4434_v35, 0.0  ;;  %7332 = vmatpush3.bf16.msra.mxu0 %v7534_v12 }
 0x5ec   : > { %v3747_v36 = vadd.f32 %v9097_v32, %v3746_v47  ;;  %v4429_v28 = vadd.f32 %v8995_v6, %v4428_v53  ;;  %v9167_v56 = vadd.bf16 %v9013_v22, %v4064_v30  ;;  %v9170_v41 = vadd.bf16 %v9011_v3, %v4065_v8  ;;  %7333 = vmatprep.subr.bf16.mxu0 %v7535_v2 }
 0x5ed   : > { %v3977_v34 = vmax.f32 %v3755_v42, 0.0  ;;  %v4515_v43 = vmax.f32 %v4437_v55, 0.0  ;;  %v3974_v51 = vmax.f32 %v3744_v0, 0.0  ;;  %v4512_v20 = vmax.f32 %v4426_v13, 0.0 }
 0x5ee   : > { %v3975_v35 = vmax.f32 %v3747_v36, 0.0  ;;  %v4513_v40 = vmax.f32 %v4429_v28, 0.0 }
 0x5ef   : > { %v4035_v24 = vpack.c.bf16 %v3977_v34, %v3976_v18  ;;  %v9172_v21 = vpack.c.bf16 %v4515_v43, %v4514_v38  ;;  %7334 = vmatpush3.bf16.msra.mxu0 %v7535_v2 }
 0x5f0   : > { %v4034_v63 = vpack.c.bf16 %v3975_v35, %v3974_v51  ;;  %v9174_v42 = vpack.c.bf16 %v4513_v40, %v4512_v20  ;;  %v7109_v55 = vpop.f32.mrb[172].mxu1  ;;  %v7237_v47 = vpop.f32.mrb[220].mxu0 }
 0x5f1   : > { %v4067_v53 = vadd.bf16 %v4035_v24, %v8680_v23  ;;  %v3768_v22 = vadd.f32 %v7109_v55, %v9097_v32  ;;  %v4450_v3 = vadd.f32 %v7237_v47, %v8995_v6  ;;  %v3759_v8 = vpop.f32.mrb[173].mxu1  ;;  %v4441_v30 = vpop.f32.mrb[221].mxu0 }
 0x5f2   : > { %v4066_v0 = vadd.bf16 %v4034_v63, %v8682_v60  ;;  %v3760_v13 = vadd.f32 %v9097_v32, %v3759_v8  ;;  %v4442_v18 = vadd.f32 %v8995_v6, %v4441_v30  ;;  %v7110_v38 = vpop.f32.mrb[174].mxu1  ;;  %v7238_v36 = vpop.f32.mrb[222].mxu0  ;;  %7263 = vmatprep.mubr.bf16.mxu1 %v4034_v63 }
 0x5f3   : > { %v3771_v12 = vadd.f32 %v7110_v38, %v9097_v32  ;;  %v4453_v23 = vadd.f32 %v7238_v36, %v8995_v6  ;;  %v3762_v28 = vpop.f32.mrb[175].mxu1  ;;  %v4444_v34 = vpop.f32.mrb[223].mxu0  ;;  %7264 = vmatmul.mubr.bf16.gmra.mrb[232].mxu1 %v4035_v24  ;;  %v3980_v43 = vmax.f32 %v3768_v22, 0.0  ;;  %v4518_v51 = vmax.f32 %v4450_v3, 0.0 }
 0x5f4   : > { %v3763_v20 = vadd.f32 %v9097_v32, %v3762_v28  ;;  %v4445_v60 = vadd.f32 %v8995_v6, %v4444_v34  ;;  %v9187_v55 = vadd.bf16 %v9021_v9, %v4066_v0  ;;  %v9190_v63 = vadd.bf16 %v9019_v44, %v4067_v53 }
 0x5f5   : > { %v3981_v35 = vmax.f32 %v3771_v12, 0.0  ;;  %v4519_v40 = vmax.f32 %v4453_v23, 0.0  ;;  %v3978_v47 = vmax.f32 %v3760_v13, 0.0  ;;  %v4516_v8 = vmax.f32 %v4442_v18, 0.0 }
 0x5f6   : > { %v3979_v30 = vmax.f32 %v3763_v20, 0.0  ;;  %v4517_v38 = vmax.f32 %v4445_v60, 0.0 }
 0x5f7   : > { %v4037_v24 = vpack.c.bf16 %v3981_v35, %v3980_v43  ;;  %v9192_v22 = vpack.c.bf16 %v4519_v40, %v4518_v51 }
 0x5f8   : > { %v4036_v3 = vpack.c.bf16 %v3979_v30, %v3978_v47  ;;  %v9194_v36 = vpack.c.bf16 %v4517_v38, %v4516_v8  ;;  %v7113_v6 = vpop.f32.mrb[176].mxu1 }
 0x5f9   : > { %v4069_v2 = vadd.bf16 %v4037_v24, %v8696_v59  ;;  %v3784_v12 = vadd.f32 %v7113_v6, %v9097_v32  ;;  %v3775_v9 = vpop.f32.mrb[177].mxu1 }
 0x5fa   : > { %v4068_v0 = vadd.bf16 %v4036_v3, %v8698_v17  ;;  %v3776_v44 = vadd.f32 %v9097_v32, %v3775_v9  ;;  %v7114_v53 = vpop.f32.mrb[178].mxu1  ;;  %7267 = vmatprep.mubr.bf16.mxu1 %v4036_v3 }
 0x5fb   : > { %v3787_v13 = vadd.f32 %v7114_v53, %v9097_v32  ;;  %v3778_v18 = vpop.f32.mrb[179].mxu1  ;;  %7268 = vmatmul.mubr.bf16.gmra.mrb[236].mxu1 %v4037_v24  ;;  %v9202_v23 = vadd.bf16 %v9027_v15, %v4069_v2  ;;  %v3984_v34 = vmax.f32 %v3784_v12, 0.0 }
 0x5fc   : > { %v3779_v28 = vadd.f32 %v9097_v32, %v3778_v18  ;;  %v9206_v59 = vadd.bf16 %v9029_v33, %v4068_v0  ;;  %v3982_v51 = vmax.f32 %v3776_v44, 0.0 }
 0x5fd   : > { %v3985_v43 = vmax.f32 %v3787_v13, 0.0 }
 0x5fe   : > { %v3983_v17 = vmax.f32 %v3779_v28, 0.0 }
 0x5ff   : > { %v4039_v20 = vpack.c.bf16 %v3985_v43, %v3984_v34 }
 0x600   : > { %v4038_v60 = vpack.c.bf16 %v3983_v17, %v3982_v51  ;;  %v7117_v35 = vpop.f32.mrb[180].mxu1 }
 0x601   : > { %v4071_v40 = vadd.bf16 %v4039_v20, %v8712_v10  ;;  %v3800_v47 = vadd.f32 %v7117_v35, %v9097_v32  ;;  %v3791_v8 = vpop.f32.mrb[181].mxu1 }
 0x602   : > { %v4070_v15 = vadd.bf16 %v4038_v60, %v8714_v27  ;;  %v3792_v30 = vadd.f32 %v9097_v32, %v3791_v8  ;;  %v7118_v38 = vpop.f32.mrb[182].mxu1  ;;  %7271 = vmatprep.mubr.bf16.mxu1 %v4038_v60 }
 0x603   : > { %v3803_v33 = vadd.f32 %v7118_v38, %v9097_v32  ;;  %v3794_v24 = vpop.f32.mrb[183].mxu1  ;;  %7272 = vmatmul.mubr.bf16.gmra.mrb[240].mxu1 %v4039_v20  ;;  %v9214_v3 = vadd.bf16 %v9035_v48, %v4071_v40  ;;  %v3988_v2 = vmax.f32 %v3800_v47, 0.0 }
 0x604   : > { %v3795_v6 = vadd.f32 %v9097_v32, %v3794_v24  ;;  %v9218_v10 = vadd.bf16 %v9037_v45, %v4070_v15  ;;  %v3986_v9 = vmax.f32 %v3792_v30, 0.0 }
 0x605   : > { %v3989_v12 = vmax.f32 %v3803_v33, 0.0 }
 0x606   : > { %v3987_v27 = vmax.f32 %v3795_v6, 0.0 }
 0x607   : > { %v4041_v0 = vpack.c.bf16 %v3989_v12, %v3988_v2 }
 0x608   : > { %v4040_v44 = vpack.c.bf16 %v3987_v27, %v3986_v9  ;;  %v7121_v53 = vpop.f32.mrb[184].mxu1 }
 0x609   : > { %v4073_v13 = vadd.bf16 %v4041_v0, %v8722_v1  ;;  %v3816_v18 = vadd.f32 %v7121_v53, %v9097_v32  ;;  %v3807_v28 = vpop.f32.mrb[185].mxu1 }
 0x60a   : > { %v4072_v48 = vadd.bf16 %v4040_v44, %v8724_v58  ;;  %v3808_v34 = vadd.f32 %v9097_v32, %v3807_v28  ;;  %v7122_v43 = vpop.f32.mrb[186].mxu1  ;;  %7275 = vmatprep.mubr.bf16.mxu1 %v4040_v44 }
 0x60b   : > { %v3819_v45 = vadd.f32 %v7122_v43, %v9097_v32  ;;  %v3810_v51 = vpop.f32.mrb[187].mxu1  ;;  %7276 = vmatmul.mubr.bf16.gmra.mrb[244].mxu1 %v4041_v0  ;;  %v9226_v17 = vadd.bf16 %v9043_v62, %v4073_v13  ;;  %v3992_v60 = vmax.f32 %v3816_v18, 0.0 }
 0x60c   : > { %v3811_v20 = vadd.f32 %v9097_v32, %v3810_v51  ;;  %v9230_v1 = vadd.bf16 %v9045_v7, %v4072_v48  ;;  %v3990_v40 = vmax.f32 %v3808_v34, 0.0 }
 0x60d   : > { %v3993_v35 = vmax.f32 %v3819_v45, 0.0 }
 0x60e   : > { %v3991_v58 = vmax.f32 %v3811_v20, 0.0 }
 0x60f   : > { %v4043_v47 = vpack.c.bf16 %v3993_v35, %v3992_v60 }
 0x610   : > { %v4042_v8 = vpack.c.bf16 %v3991_v58, %v3990_v40  ;;  %v7125_v15 = vpop.f32.mrb[188].mxu1 }
 0x611   : > { %v4075_v30 = vadd.bf16 %v4043_v47, %v8735_v46  ;;  %v3832_v38 = vadd.f32 %v7125_v15, %v9097_v32  ;;  %v3823_v33 = vpop.f32.mrb[189].mxu1 }
 0x612   : > { %v4074_v62 = vadd.bf16 %v4042_v8, %v8737_v29  ;;  %v3824_v24 = vadd.f32 %v9097_v32, %v3823_v33  ;;  %v7126_v6 = vpop.f32.mrb[190].mxu1  ;;  %7279 = vmatprep.mubr.bf16.mxu1 %v4042_v8 }
 0x613   : > { %v3835_v7 = vadd.f32 %v7126_v6, %v9097_v32  ;;  %v3826_v2 = vpop.f32.mrb[191].mxu1  ;;  %7280 = vmatmul.mubr.bf16.gmra.mrb[248].mxu1 %v4043_v47  ;;  %v9238_v12 = vadd.bf16 %v9051_v26, %v4075_v30  ;;  %v3996_v27 = vmax.f32 %v3832_v38, 0.0 }
 0x614   : > { %v3827_v9 = vadd.f32 %v9097_v32, %v3826_v2  ;;  %v9242_v46 = vadd.bf16 %v9053_v25, %v4074_v62  ;;  %v3994_v44 = vmax.f32 %v3824_v24, 0.0 }
 0x615   : > { %v3997_v0 = vmax.f32 %v3835_v7, 0.0 }
 0x616   : > { %v3995_v29 = vmax.f32 %v3827_v9, 0.0 }
 0x617   : > { %v4045_v53 = vpack.c.bf16 %v3997_v0, %v3996_v27 }
 0x618   : > { %v4044_v13 = vpack.c.bf16 %v3995_v29, %v3994_v44  ;;  %v7129_v18 = vpop.f32.mrb[192].mxu1 }
 0x619   : > { %v4077_v28 = vadd.bf16 %v4045_v53, %v8745_v31  ;;  %v3848_v48 = vadd.f32 %v7129_v18, %v9097_v32  ;;  %v3839_v34 = vpop.f32.mrb[193].mxu1 }
 0x61a   : > { %v4076_v26 = vadd.bf16 %v4044_v13, %v8747_v54  ;;  %v3840_v43 = vadd.f32 %v9097_v32, %v3839_v34  ;;  %v7130_v45 = vpop.f32.mrb[194].mxu1  ;;  %7283 = vmatprep.mubr.bf16.mxu1 %v4044_v13 }
 0x61b   : > { %v3851_v25 = vadd.f32 %v7130_v45, %v9097_v32  ;;  %v3842_v51 = vpop.f32.mrb[195].mxu1  ;;  %7284 = vmatmul.mubr.bf16.gmra.mrb[252].mxu1 %v4045_v53  ;;  %v9250_v20 = vadd.bf16 %v9059_v39, %v4077_v28  ;;  %v4000_v35 = vmax.f32 %v3848_v48, 0.0 }
 0x61c   : > { %v3843_v60 = vadd.f32 %v9097_v32, %v3842_v51  ;;  %v9254_v31 = vadd.bf16 %v9061_v5, %v4076_v26  ;;  %v3998_v58 = vmax.f32 %v3840_v43, 0.0  ;;  %v9957_v43 = vld [vmem:[#allocation8_spill] sm:$0xff]  ;;  %v9958_v51 = vld [vmem:[#allocation9_spill] sm:$0xff] }
 0x61d   : > { %v4001_v40 = vmax.f32 %v3851_v25, 0.0 }
 0x61e   : > { %v3999_v54 = vmax.f32 %v3843_v60, 0.0 }
 0x61f   : > { %v4047_v47 = vpack.c.bf16 %v4001_v40, %v4000_v35 }
 0x620   : > { %v4046_v8 = vpack.c.bf16 %v3999_v54, %v3998_v58  ;;  %v7133_v15 = vpop.f32.mrb[196].mxu1 }
 0x621   : > { %v4079_v30 = vadd.bf16 %v4047_v47, %v8758_v52  ;;  %v3864_v38 = vadd.f32 %v7133_v15, %v9097_v32  ;;  %v3855_v33 = vpop.f32.mrb[197].mxu1 }
 0x622   : > { %v4078_v39 = vadd.bf16 %v4046_v8, %v8760_v50  ;;  %v3856_v62 = vadd.f32 %v9097_v32, %v3855_v33  ;;  %v7134_v24 = vpop.f32.mrb[198].mxu1  ;;  %7287 = vmatprep.mubr.bf16.mxu1 %v4046_v8  ;;  %v9959_v8 = vld [vmem:[#allocation29_spill] sm:$0xff]  ;;  %v9960_v33 = vld [vmem:[#allocation30_spill] sm:$0xff] }
 0x623   : > { %v3867_v5 = vadd.f32 %v7134_v24, %v9097_v32  ;;  %v3858_v6 = vpop.f32.mrb[199].mxu1  ;;  %7288 = vmatmul.mubr.bf16.gmra.mrb[0].mxu1 %v4047_v47  ;;  %v9262_v7 = vadd.bf16 %v9067_v14, %v4079_v30  ;;  %v4004_v9 = vmax.f32 %v3864_v38, 0.0 }
 0x624   : > { %v3859_v2 = vadd.f32 %v9097_v32, %v3858_v6  ;;  %v9266_v52 = vadd.bf16 %v9069_v4, %v4078_v39  ;;  %v4002_v0 = vmax.f32 %v3856_v62, 0.0 }
 0x625   : > { %v4005_v27 = vmax.f32 %v3867_v5, 0.0 }
 0x626   : > { %v4003_v50 = vmax.f32 %v3859_v2, 0.0  ;;  %v9961_v2 = vld [vmem:[#allocation10_spill] sm:$0xff] }
 0x627   : > { %v4049_v44 = vpack.c.bf16 %v4005_v27, %v4004_v9 }
 0x628   : > { %v4048_v29 = vpack.c.bf16 %v4003_v50, %v4002_v0  ;;  %v7137_v53 = vpop.f32.mrb[200].mxu1  ;;  %v9962_v0 = vld [vmem:[#allocation11_spill] sm:$0xff] }
 0x629   : > { %v4081_v13 = vadd.bf16 %v4049_v44, %v8768_v57  ;;  %v3880_v18 = vadd.f32 %v7137_v53, %v9097_v32  ;;  %v3871_v28 = vpop.f32.mrb[201].mxu1 }
 0x62a   : > { %v4080_v14 = vadd.bf16 %v4048_v29, %v8770_v11  ;;  %v3872_v48 = vadd.f32 %v9097_v32, %v3871_v28  ;;  %v7138_v34 = vpop.f32.mrb[202].mxu1  ;;  %7291 = vmatprep.mubr.bf16.mxu1 %v4048_v29 }
 0x62b   : > { %v3883_v4 = vadd.f32 %v7138_v34, %v9097_v32  ;;  %v3874_v26 = vpop.f32.mrb[203].mxu1  ;;  %7292 = vmatmul.mubr.bf16.gmra.mrb[4].mxu1 %v4049_v44  ;;  %v9274_v45 = vadd.bf16 %v9957_v43, %v4081_v13  ;;  %v4008_v60 = vmax.f32 %v3880_v18, 0.0  ;;  %v9964_v43 = vld [vmem:[#allocation32_spill] sm:$0xff] }
 0x62c   : > { %v3875_v25 = vadd.f32 %v9097_v32, %v3874_v26  ;;  %v9278_v57 = vadd.bf16 %v9958_v51, %v4080_v14  ;;  %v4006_v40 = vmax.f32 %v3872_v48, 0.0  ;;  %v9963_v48 = vld [vmem:[#allocation31_spill] sm:$0xff] }
 0x62d   : > { %v4009_v35 = vmax.f32 %v3883_v4, 0.0 }
 0x62e   : > { %v4007_v11 = vmax.f32 %v3875_v25, 0.0 }
 0x62f   : > { %v4051_v58 = vpack.c.bf16 %v4009_v35, %v4008_v60 }
 0x630   : > { %v4050_v54 = vpack.c.bf16 %v4007_v11, %v4006_v40  ;;  %v7141_v47 = vpop.f32.mrb[204].mxu1  ;;  %v9965_v11 = vld [vmem:[#allocation12_spill] sm:$0xff] }
 0x631   : > { %v4083_v15 = vadd.bf16 %v4051_v58, %v9959_v8  ;;  %v3896_v30 = vadd.f32 %v7141_v47, %v9097_v32  ;;  %v3887_v38 = vpop.f32.mrb[205].mxu1  ;;  %v9966_v47 = vld [vmem:[#allocation13_spill] sm:$0xff] }
 0x632   : > { %v4082_v39 = vadd.bf16 %v4050_v54, %v9960_v33  ;;  %v3888_v62 = vadd.f32 %v9097_v32, %v3887_v38  ;;  %v7142_v24 = vpop.f32.mrb[206].mxu1  ;;  %7295 = vmatprep.mubr.bf16.mxu1 %v4050_v54 }
 0x633   : > { %v3899_v5 = vadd.f32 %v7142_v24, %v9097_v32  ;;  %v3890_v6 = vpop.f32.mrb[207].mxu1  ;;  %7296 = vmatmul.mubr.bf16.gmra.mrb[8].mxu1 %v4051_v58  ;;  %v9286_v9 = vadd.bf16 %v9961_v2, %v4083_v15  ;;  %v4012_v44 = vmax.f32 %v3896_v30, 0.0 }
 0x634   : > { %v3891_v27 = vadd.f32 %v9097_v32, %v3890_v6  ;;  %v9290_v50 = vadd.bf16 %v9962_v0, %v4082_v39  ;;  %v4010_v53 = vmax.f32 %v3888_v62, 0.0  ;;  %v9968_v0 = vld [vmem:[#allocation23_spill] sm:$0xff] }
 0x635   : > { %v4013_v29 = vmax.f32 %v3899_v5, 0.0  ;;  %v9967_v5 = vld [vmem:[#allocation33_spill] sm:$0xff] }
 0x636   : > { %v4011_v13 = vmax.f32 %v3891_v27, 0.0 }
 0x637   : > { %v4053_v18 = vpack.c.bf16 %v4013_v29, %v4012_v44 }
 0x638   : > { %v4052_v28 = vpack.c.bf16 %v4011_v13, %v4010_v53  ;;  %v7145_v14 = vpop.f32.mrb[208].mxu1 }
 0x639   : > { %v4085_v34 = vadd.bf16 %v4053_v18, %v9963_v48  ;;  %v3912_v4 = vadd.f32 %v7145_v14, %v9097_v32  ;;  %v3903_v26 = vpop.f32.mrb[209].mxu1  ;;  %v9969_v48 = vld [vmem:[#allocation14_spill] sm:$0xff] }
 0x63a   : > { %v4084_v25 = vadd.bf16 %v4052_v28, %v9964_v43  ;;  %v3904_v51 = vadd.f32 %v9097_v32, %v3903_v26  ;;  %v7146_v60 = vpop.f32.mrb[210].mxu1  ;;  %7299 = vmatprep.mubr.bf16.mxu1 %v4052_v28 }
 0x63b   : > { %v3915_v35 = vadd.f32 %v7146_v60, %v9097_v32  ;;  %v3906_v40 = vpop.f32.mrb[211].mxu1  ;;  %7300 = vmatmul.mubr.bf16.gmra.mrb[12].mxu1 %v4053_v18  ;;  %v9298_v58 = vadd.bf16 %v9965_v11, %v4085_v34  ;;  %v4016_v15 = vmax.f32 %v3912_v4, 0.0 }
 0x63c   : > { %v3907_v54 = vadd.f32 %v9097_v32, %v3906_v40  ;;  %v9302_v8 = vadd.bf16 %v9966_v47, %v4084_v25  ;;  %v4014_v38 = vmax.f32 %v3904_v51, 0.0  ;;  %v9970_v40 = vld [vmem:[#allocation34_spill] sm:$0xff] }
 0x63d   : > { %v4017_v30 = vmax.f32 %v3915_v35, 0.0 }
 0x63e   : > { %v4015_v33 = vmax.f32 %v3907_v54, 0.0 }
 0x63f   : > { %v4055_v39 = vpack.c.bf16 %v4017_v30, %v4016_v15  ;;  %v9971_v15 = vld [vmem:[#allocation28_spill] sm:$0xff] }
 0x640   : > { %v4054_v62 = vpack.c.bf16 %v4015_v33, %v4014_v38  ;;  %v7149_v24 = vpop.f32.mrb[212].mxu1 }
 0x641   : > { %v4087_v6 = vadd.bf16 %v4055_v39, %v9967_v5  ;;  %v3928_v2 = vadd.f32 %v7149_v24, %v9097_v32  ;;  %v3919_v27 = vpop.f32.mrb[213].mxu1 }
 0x642   : > { %v4086_v44 = vadd.bf16 %v4054_v62, %v9968_v0  ;;  %v3920_v29 = vadd.f32 %v9097_v32, %v3919_v27  ;;  %v7150_v53 = vpop.f32.mrb[214].mxu1  ;;  %7303 = vmatprep.mubr.bf16.mxu1 %v4054_v62 }
 0x643   : > { %v3931_v13 = vadd.f32 %v7150_v53, %v9097_v32  ;;  %v3922_v18 = vpop.f32.mrb[215].mxu1  ;;  %7304 = vmatmul.mubr.bf16.gmra.mrb[16].mxu1 %v4055_v39  ;;  %v9310_v28 = vadd.bf16 %v9120_v16, %v4087_v6  ;;  %v4020_v4 = vmax.f32 %v3928_v2, 0.0 }
 0x644   : > { %v3923_v14 = vadd.f32 %v9097_v32, %v3922_v18  ;;  %v9314_v34 = vadd.bf16 %v9969_v48, %v4086_v44  ;;  %v4018_v43 = vmax.f32 %v3920_v29, 0.0 }
 0x645   : > { %v4021_v26 = vmax.f32 %v3931_v13, 0.0  ;;  %v9972_v13 = vld [vmem:[#allocation27_spill] sm:$0xff] }
 0x646   : > { %v4019_v25 = vmax.f32 %v3923_v14, 0.0 }
 0x647   : > { %v4057_v51 = vpack.c.bf16 %v4021_v26, %v4020_v4  ;;  %v9973_v4 = vld [vmem:[#allocation35_spill] sm:$0xff] }
 0x648   : > { %v4056_v60 = vpack.c.bf16 %v4019_v25, %v4018_v43  ;;  %v7153_v35 = vpop.f32.mrb[216].mxu1 }
 0x649   : > { %v4089_v11 = vadd.bf16 %v4057_v51, %v9970_v40  ;;  %v3944_v54 = vadd.f32 %v7153_v35, %v9097_v32  ;;  %v3935_v47 = vpop.f32.mrb[217].mxu1 }
 0x64a   : > { %v4088_v16 = vadd.bf16 %v4056_v60, %v9971_v15  ;;  %v3936_v30 = vadd.f32 %v9097_v32, %v3935_v47  ;;  %v7154_v38 = vpop.f32.mrb[218].mxu1  ;;  %7307 = vmatprep.mubr.bf16.mxu1 %v4056_v60 }
 0x64b   : > { %v3947_v33 = vadd.f32 %v7154_v38, %v9097_v32  ;;  %v3938_v39 = vpop.f32.mrb[219].mxu1  ;;  %7308 = vmatmul.mubr.bf16.gmra.mrb[20].mxu1 %v4057_v51  ;;  %v9322_v62 = vadd.bf16 %v9146_v37, %v4089_v11  ;;  %v4024_v6 = vmax.f32 %v3944_v54, 0.0 }
 0x64c   : > { %v3939_v24 = vadd.f32 %v9097_v32, %v3938_v39  ;;  %v9326_v5 = vadd.bf16 %v9148_v19, %v4088_v16  ;;  %v4022_v27 = vmax.f32 %v3936_v30, 0.0  ;;  %v9974_v30 = vld [vmem:[#allocation36_spill] sm:$0xff] }
 0x64d   : > { %v4025_v2 = vmax.f32 %v3947_v33, 0.0  ;;  %v9975_v33 = vld [vmem:[#allocation37_spill] sm:$0xff] }
 0x64e   : > { %v4023_v0 = vmax.f32 %v3939_v24, 0.0 }
 0x64f   : > { %v4059_v44 = vpack.c.bf16 %v4025_v2, %v4024_v6 }
 0x650   : > { %v4058_v29 = vpack.c.bf16 %v4023_v0, %v4022_v27  ;;  %v7157_v53 = vpop.f32.mrb[220].mxu1 }
 0x651   : > { %v4091_v18 = vadd.bf16 %v4059_v44, %v9972_v13  ;;  %v3960_v14 = vadd.f32 %v7157_v53, %v9097_v32  ;;  %v3951_v48 = vpop.f32.mrb[221].mxu1 }
 0x652   : > { %v4090_v37 = vadd.bf16 %v4058_v29, %v9973_v4  ;;  %v3952_v26 = vadd.f32 %v9097_v32, %v3951_v48  ;;  %v7158_v43 = vpop.f32.mrb[222].mxu1  ;;  %7311 = vmatprep.mubr.bf16.mxu1 %v4058_v29 }
 0x653   : > { %v3963_v19 = vadd.f32 %v7158_v43, %v9097_v32  ;;  %v3954_v25 = vpop.f32.mrb[223].mxu1  ;;  %7312 = vmatmul.mubr.bf16.gmra.mrb[24].mxu1 %v4059_v44  ;;  %v9334_v51 = vadd.bf16 %v9172_v21, %v4091_v18  ;;  %v4028_v40 = vmax.f32 %v3960_v14, 0.0 }
 0x654   : > { %v3955_v60 = vadd.f32 %v9097_v32, %v3954_v25  ;;  %v9338_v35 = vadd.bf16 %v9174_v42, %v4090_v37  ;;  %v4026_v54 = vmax.f32 %v3952_v26, 0.0  ;;  %v9351_v42 = vld [vmem:[%s9816_s3 + $0x8] ss:$0 sm:$0xff] }
 0x655   : > { %v4029_v11 = vmax.f32 %v3963_v19, 0.0 }
 0x656   : > { %v4027_v47 = vmax.f32 %v3955_v60, 0.0 }
 0x657   : > { %v4061_v15 = vpack.c.bf16 %v4029_v11, %v4028_v40 }
 0x658   : > { %v4060_v16 = vpack.c.bf16 %v4027_v47, %v4026_v54 }
 0x659   : > { %v4093_v38 = vadd.bf16 %v4061_v15, %v9974_v30 }
 0x65a   : > { %v4092_v39 = vadd.bf16 %v4060_v16, %v9975_v33  ;;  %7315 = vmatprep.mubr.bf16.mxu1 %v4060_v16 }
 0x65b   : > { %7316 = vmatmul.mubr.bf16.gmra.mrb[28].mxu1 %v4061_v15  ;;  %v9343_v21 = vadd.bf16 %v9192_v22, %v4093_v38 }
 0x65c   : > { %v9346_v32 = vadd.bf16 %v9194_v36, %v4092_v39 }
 0x6b6   : > { %v7257_v24 = vpop.f32.mrb[224].mxu1 }
 0x6b7   : > { %v4700_v6 = vadd.f32 %v7257_v24, %v9351_v42  ;;  %v4691_v2 = vpop.f32.mrb[225].mxu1 }
 0x6b8   : > { %v4692_v27 = vadd.f32 %v9351_v42, %v4691_v2  ;;  %v7258_v0 = vpop.f32.mrb[226].mxu1 }
 0x6b9   : > { %v4703_v44 = vadd.f32 %v7258_v0, %v9351_v42  ;;  %v4694_v29 = vpop.f32.mrb[227].mxu1  ;;  %v4948_v53 = vmax.f32 %v4700_v6, 0.0 }
 0x6ba   : > { %v4695_v22 = vadd.f32 %v9351_v42, %v4694_v29  ;;  %v4946_v13 = vmax.f32 %v4692_v27, 0.0 }
 0x6bb   : > { %v4949_v36 = vmax.f32 %v4703_v44, 0.0 }
 0x6bc   : > { %v4947_v18 = vmax.f32 %v4695_v22, 0.0 }
 0x6bd   : > { %v5011_v14 = vpack.c.bf16 %v4949_v36, %v4948_v53 }
 0x6be   : > { %v5010_v48 = vpack.c.bf16 %v4947_v18, %v4946_v13  ;;  %v7261_v4 = vpop.f32.mrb[228].mxu1 }
 0x6bf   : > { %v5043_v37 = vadd.bf16 %v5011_v14, %v9141_v61  ;;  %v4716_v26 = vadd.f32 %v7261_v4, %v9351_v42  ;;  %v4707_v43 = vpop.f32.mrb[229].mxu1 }
 0x6c0   : > { %v4708_v19 = vadd.f32 %v9351_v42, %v4707_v43  ;;  %v7262_v25 = vpop.f32.mrb[230].mxu1  ;;  %v5042_v60 = vadd.bf16 %v5010_v48, %v9144_v49 }
 0x6c1   : > { %v6221_v40 = vcombine.low %v5043_v37, %v5043_v37  ;;  %v6222_v11 = vcombine.high %v5043_v37, %v5043_v37  ;;  %v4719_v54 = vadd.f32 %v7262_v25, %v9351_v42  ;;  %v4710_v47 = vpop.f32.mrb[231].mxu1  ;;  %v4952_v61 = vmax.f32 %v4716_v26, 0.0 }
 0x6c2   : > { %v4711_v15 = vadd.f32 %v9351_v42, %v4710_v47  ;;  %v6219_v16 = vcombine.low %v5042_v60, %v5042_v60  ;;  %v6220_v30 = vcombine.high %v5042_v60, %v5042_v60  ;;  %7335 = vmatprep.mubr.bf16.mxu0 %v5042_v60  ;;  %v4950_v38 = vmax.f32 %v4708_v19, 0.0 }
 0x6c3   : > { %5300 = vst [vmem:[%s9365_s16 + $0x8] sm:$0xf] %v6221_v40  ;;  %5301 = vst [vmem:[%s9365_s16 + $0xc] sm:$0xf] %v6222_v11  ;;  %v4953_v49 = vmax.f32 %v4719_v54, 0.0  ;;  %7336 = vmatmul.mubr.bf16.vlgmr.msra.gmra.mrb[224].mxu0 %v5043_v37 }
 0x6c4   : > { %v4951_v33 = vmax.f32 %v4711_v15, 0.0  ;;  %5298 = vst [vmem:[%s9365_s16] sm:$0xf] %v6219_v16  ;;  %5299 = vst [vmem:[%s9365_s16 + $0x4] sm:$0xf] %v6220_v30 }
 0x6c5   : > { %v5013_v39 = vpack.c.bf16 %v4953_v49, %v4952_v61 }
 0x6c6   : > { %v5012_v24 = vpack.c.bf16 %v4951_v33, %v4950_v38  ;;  %v7265_v6 = vpop.f32.mrb[232].mxu1 }
 0x6c7   : > { %v4732_v2 = vadd.f32 %v7265_v6, %v9351_v42  ;;  %v4723_v27 = vpop.f32.mrb[233].mxu1  ;;  %v5045_v0 = vadd.bf16 %v5013_v39, %v9170_v41 }
 0x6c8   : > { %v4724_v44 = vadd.f32 %v9351_v42, %v4723_v27  ;;  %v7266_v29 = vpop.f32.mrb[234].mxu1  ;;  %v5044_v22 = vadd.bf16 %v5012_v24, %v9167_v56 }
 0x6c9   : > { %v4735_v53 = vadd.f32 %v7266_v29, %v9351_v42  ;;  %v4726_v36 = vpop.f32.mrb[235].mxu1  ;;  %v6225_v13 = vcombine.low %v5045_v0, %v5045_v0  ;;  %v6226_v18 = vcombine.high %v5045_v0, %v5045_v0  ;;  %v4956_v37 = vmax.f32 %v4732_v2, 0.0 }
 0x6ca   : > { %v4727_v14 = vadd.f32 %v9351_v42, %v4726_v36  ;;  %v6223_v48 = vcombine.low %v5044_v22, %v5044_v22  ;;  %v6224_v4 = vcombine.high %v5044_v22, %v5044_v22  ;;  %7339 = vmatprep.mubr.bf16.mxu0 %v5044_v22  ;;  %v4954_v41 = vmax.f32 %v4724_v44, 0.0 }
 0x6cb   : > { %v4957_v26 = vmax.f32 %v4735_v53, 0.0  ;;  %5304 = vst [vmem:[%s9365_s16 + $0x18] sm:$0xf] %v6225_v13  ;;  %5305 = vst [vmem:[%s9365_s16 + $0x1c] sm:$0xf] %v6226_v18  ;;  %7340 = vmatmul.mubr.bf16.gmra.mrb[228].mxu0 %v5045_v0 }
 0x6cc   : > { %v4955_v43 = vmax.f32 %v4727_v14, 0.0  ;;  %5302 = vst [vmem:[%s9365_s16 + $0x10] sm:$0xf] %v6223_v48  ;;  %5303 = vst [vmem:[%s9365_s16 + $0x14] sm:$0xf] %v6224_v4 }
 0x6cd   : > { %v5015_v56 = vpack.c.bf16 %v4957_v26, %v4956_v37 }
 0x6ce   : > { %v5014_v19 = vpack.c.bf16 %v4955_v43, %v4954_v41  ;;  %v7269_v25 = vpop.f32.mrb[236].mxu1 }
 0x6cf   : > { %v4748_v60 = vadd.f32 %v7269_v25, %v9351_v42  ;;  %v4739_v40 = vpop.f32.mrb[237].mxu1  ;;  %v5047_v11 = vadd.bf16 %v5015_v56, %v9190_v63 }
 0x6d0   : > { %v4740_v54 = vadd.f32 %v9351_v42, %v4739_v40  ;;  %v7270_v47 = vpop.f32.mrb[238].mxu1  ;;  %v5046_v15 = vadd.bf16 %v5014_v19, %v9187_v55 }
 0x6d1   : > { %v4751_v16 = vadd.f32 %v7270_v47, %v9351_v42  ;;  %v4742_v30 = vpop.f32.mrb[239].mxu1  ;;  %v6229_v61 = vcombine.low %v5047_v11, %v5047_v11  ;;  %v6230_v49 = vcombine.high %v5047_v11, %v5047_v11  ;;  %v4960_v24 = vmax.f32 %v4748_v60, 0.0 }
 0x6d2   : > { %v4743_v38 = vadd.f32 %v9351_v42, %v4742_v30  ;;  %v6227_v33 = vcombine.low %v5046_v15, %v5046_v15  ;;  %v6228_v39 = vcombine.high %v5046_v15, %v5046_v15  ;;  %7343 = vmatprep.mubr.bf16.mxu0 %v5046_v15  ;;  %v4958_v63 = vmax.f32 %v4740_v54, 0.0 }
 0x6d3   : > { %v4961_v6 = vmax.f32 %v4751_v16, 0.0  ;;  %5308 = vst [vmem:[%s9365_s16 + $0x28] sm:$0xf] %v6229_v61  ;;  %5309 = vst [vmem:[%s9365_s16 + $0x2c] sm:$0xf] %v6230_v49  ;;  %7344 = vmatmul.mubr.bf16.gmra.mrb[232].mxu0 %v5047_v11 }
 0x6d4   : > { %v4959_v2 = vmax.f32 %v4743_v38, 0.0  ;;  %5306 = vst [vmem:[%s9365_s16 + $0x20] sm:$0xf] %v6227_v33  ;;  %5307 = vst [vmem:[%s9365_s16 + $0x24] sm:$0xf] %v6228_v39 }
 0x6d5   : > { %v5017_v55 = vpack.c.bf16 %v4961_v6, %v4960_v24 }
 0x6d6   : > { %v5016_v27 = vpack.c.bf16 %v4959_v2, %v4958_v63  ;;  %v7273_v0 = vpop.f32.mrb[240].mxu1 }
 0x6d7   : > { %v4764_v44 = vadd.f32 %v7273_v0, %v9351_v42  ;;  %v4755_v29 = vpop.f32.mrb[241].mxu1  ;;  %v5049_v22 = vadd.bf16 %v5017_v55, %v9202_v23 }
 0x6d8   : > { %v4756_v53 = vadd.f32 %v9351_v42, %v4755_v29  ;;  %v7274_v36 = vpop.f32.mrb[242].mxu1  ;;  %v5048_v13 = vadd.bf16 %v5016_v27, %v9206_v59 }
 0x6d9   : > { %v4767_v18 = vadd.f32 %v7274_v36, %v9351_v42  ;;  %v4758_v14 = vpop.f32.mrb[243].mxu1  ;;  %v6233_v48 = vcombine.low %v5049_v22, %v5049_v22  ;;  %v6234_v4 = vcombine.high %v5049_v22, %v5049_v22  ;;  %v4964_v43 = vmax.f32 %v4764_v44, 0.0 }
 0x6da   : > { %v4759_v37 = vadd.f32 %v9351_v42, %v4758_v14  ;;  %v6231_v26 = vcombine.low %v5048_v13, %v5048_v13  ;;  %v6232_v41 = vcombine.high %v5048_v13, %v5048_v13  ;;  %7347 = vmatprep.mubr.bf16.mxu0 %v5048_v13  ;;  %v4962_v23 = vmax.f32 %v4756_v53, 0.0 }
 0x6db   : > { %v4965_v56 = vmax.f32 %v4767_v18, 0.0  ;;  %5312 = vst [vmem:[%s9365_s16 + $0x38] sm:$0xf] %v6233_v48  ;;  %5313 = vst [vmem:[%s9365_s16 + $0x3c] sm:$0xf] %v6234_v4  ;;  %7348 = vmatmul.mubr.bf16.gmra.mrb[236].mxu0 %v5049_v22 }
 0x6dc   : > { %v4963_v19 = vmax.f32 %v4759_v37, 0.0  ;;  %5310 = vst [vmem:[%s9365_s16 + $0x30] sm:$0xf] %v6231_v26  ;;  %5311 = vst [vmem:[%s9365_s16 + $0x34] sm:$0xf] %v6232_v41 }
 0x6dd   : > { %v5019_v59 = vpack.c.bf16 %v4965_v56, %v4964_v43 }
 0x6de   : > { %v5018_v25 = vpack.c.bf16 %v4963_v19, %v4962_v23  ;;  %v7277_v60 = vpop.f32.mrb[244].mxu1 }
 0x6df   : > { %v4780_v40 = vadd.f32 %v7277_v60, %v9351_v42  ;;  %v4771_v11 = vpop.f32.mrb[245].mxu1  ;;  %v5051_v54 = vadd.bf16 %v5019_v59, %v9214_v3 }
 0x6e0   : > { %v4772_v47 = vadd.f32 %v9351_v42, %v4771_v11  ;;  %v7278_v15 = vpop.f32.mrb[246].mxu1  ;;  %v5050_v16 = vadd.bf16 %v5018_v25, %v9218_v10 }
 0x6e1   : > { %v4783_v30 = vadd.f32 %v7278_v15, %v9351_v42  ;;  %v4774_v61 = vpop.f32.mrb[247].mxu1  ;;  %v6237_v49 = vcombine.low %v5051_v54, %v5051_v54  ;;  %v6238_v38 = vcombine.high %v5051_v54, %v5051_v54  ;;  %v4968_v6 = vmax.f32 %v4780_v40, 0.0 }
 0x6e2   : > { %v4775_v33 = vadd.f32 %v9351_v42, %v4774_v61  ;;  %v6235_v39 = vcombine.low %v5050_v16, %v5050_v16  ;;  %v6236_v24 = vcombine.high %v5050_v16, %v5050_v16  ;;  %7351 = vmatprep.mubr.bf16.mxu0 %v5050_v16  ;;  %v4966_v3 = vmax.f32 %v4772_v47, 0.0 }
 0x6e3   : > { %v4969_v63 = vmax.f32 %v4783_v30, 0.0  ;;  %5316 = vst [vmem:[%s9365_s16 + $0x48] sm:$0xf] %v6237_v49  ;;  %5317 = vst [vmem:[%s9365_s16 + $0x4c] sm:$0xf] %v6238_v38  ;;  %7352 = vmatmul.mubr.bf16.gmra.mrb[240].mxu0 %v5051_v54 }
 0x6e4   : > { %v4967_v2 = vmax.f32 %v4775_v33, 0.0  ;;  %5314 = vst [vmem:[%s9365_s16 + $0x40] sm:$0xf] %v6235_v39  ;;  %5315 = vst [vmem:[%s9365_s16 + $0x44] sm:$0xf] %v6236_v24 }
 0x6e5   : > { %v5021_v10 = vpack.c.bf16 %v4969_v63, %v4968_v6 }
 0x6e6   : > { %v5020_v55 = vpack.c.bf16 %v4967_v2, %v4966_v3  ;;  %v7281_v27 = vpop.f32.mrb[248].mxu1 }
 0x6e7   : > { %v4796_v0 = vadd.f32 %v7281_v27, %v9351_v42  ;;  %v4787_v44 = vpop.f32.mrb[249].mxu1  ;;  %v5053_v29 = vadd.bf16 %v5021_v10, %v9226_v17 }
 0x6e8   : > { %v4788_v22 = vadd.f32 %v9351_v42, %v4787_v44  ;;  %v7282_v53 = vpop.f32.mrb[250].mxu1  ;;  %v5052_v36 = vadd.bf16 %v5020_v55, %v9230_v1 }
 0x6e9   : > { %v4799_v13 = vadd.f32 %v7282_v53, %v9351_v42  ;;  %v4790_v18 = vpop.f32.mrb[251].mxu1  ;;  %v6241_v14 = vcombine.low %v5053_v29, %v5053_v29  ;;  %v6242_v48 = vcombine.high %v5053_v29, %v5053_v29  ;;  %v4972_v41 = vmax.f32 %v4796_v0, 0.0 }
 0x6ea   : > { %v4791_v4 = vadd.f32 %v9351_v42, %v4790_v18  ;;  %v6239_v37 = vcombine.low %v5052_v36, %v5052_v36  ;;  %v6240_v26 = vcombine.high %v5052_v36, %v5052_v36  ;;  %7355 = vmatprep.mubr.bf16.mxu0 %v5052_v36  ;;  %v4970_v17 = vmax.f32 %v4788_v22, 0.0 }
 0x6eb   : > { %v4973_v43 = vmax.f32 %v4799_v13, 0.0  ;;  %5320 = vst [vmem:[%s9365_s16 + $0x58] sm:$0xf] %v6241_v14  ;;  %5321 = vst [vmem:[%s9365_s16 + $0x5c] sm:$0xf] %v6242_v48  ;;  %7356 = vmatmul.mubr.bf16.gmra.mrb[244].mxu0 %v5053_v29 }
 0x6ec   : > { %v4971_v56 = vmax.f32 %v4791_v4, 0.0  ;;  %5318 = vst [vmem:[%s9365_s16 + $0x50] sm:$0xf] %v6239_v37  ;;  %5319 = vst [vmem:[%s9365_s16 + $0x54] sm:$0xf] %v6240_v26 }
 0x6ed   : > { %v5023_v1 = vpack.c.bf16 %v4973_v43, %v4972_v41 }
 0x6ee   : > { %v5022_v23 = vpack.c.bf16 %v4971_v56, %v4970_v17  ;;  %v7285_v19 = vpop.f32.mrb[252].mxu1 }
 0x6ef   : > { %v4812_v59 = vadd.f32 %v7285_v19, %v9351_v42  ;;  %v4803_v25 = vpop.f32.mrb[253].mxu1  ;;  %v5055_v60 = vadd.bf16 %v5023_v1, %v9238_v12 }
 0x6f0   : > { %v4804_v40 = vadd.f32 %v9351_v42, %v4803_v25  ;;  %v7286_v11 = vpop.f32.mrb[254].mxu1  ;;  %v5054_v54 = vadd.bf16 %v5022_v23, %v9242_v46 }
 0x6f1   : > { %v4815_v47 = vadd.f32 %v7286_v11, %v9351_v42  ;;  %v4806_v15 = vpop.f32.mrb[255].mxu1  ;;  %v6245_v16 = vcombine.low %v5055_v60, %v5055_v60  ;;  %v6246_v30 = vcombine.high %v5055_v60, %v5055_v60  ;;  %v4976_v33 = vmax.f32 %v4812_v59, 0.0 }
 0x6f2   : > { %v4807_v61 = vadd.f32 %v9351_v42, %v4806_v15  ;;  %v6243_v49 = vcombine.low %v5054_v54, %v5054_v54  ;;  %v6244_v38 = vcombine.high %v5054_v54, %v5054_v54  ;;  %7359 = vmatprep.mubr.bf16.mxu0 %v5054_v54  ;;  %v4974_v12 = vmax.f32 %v4804_v40, 0.0 }
 0x6f3   : > { %v4977_v39 = vmax.f32 %v4815_v47, 0.0  ;;  %5324 = vst [vmem:[%s9365_s16 + $0x68] sm:$0xf] %v6245_v16  ;;  %5325 = vst [vmem:[%s9365_s16 + $0x6c] sm:$0xf] %v6246_v30  ;;  %7360 = vmatmul.mubr.bf16.gmra.mrb[248].mxu0 %v5055_v60 }
 0x6f4   : > { %v4975_v24 = vmax.f32 %v4807_v61, 0.0  ;;  %5322 = vst [vmem:[%s9365_s16 + $0x60] sm:$0xf] %v6243_v49  ;;  %5323 = vst [vmem:[%s9365_s16 + $0x64] sm:$0xf] %v6244_v38 }
 0x6f5   : > { %v5025_v46 = vpack.c.bf16 %v4977_v39, %v4976_v33 }
 0x6f6   : > { %v5024_v6 = vpack.c.bf16 %v4975_v24, %v4974_v12  ;;  %v7289_v63 = vpop.f32.mrb[0].mxu1 }
 0x6f7   : > { %v4828_v3 = vadd.f32 %v7289_v63, %v9351_v42  ;;  %v4819_v2 = vpop.f32.mrb[1].mxu1  ;;  %v5057_v10 = vadd.bf16 %v5025_v46, %v9250_v20 }
 0x6f8   : > { %v4820_v55 = vadd.f32 %v9351_v42, %v4819_v2  ;;  %v7290_v27 = vpop.f32.mrb[2].mxu1  ;;  %v5056_v0 = vadd.bf16 %v5024_v6, %v9254_v31 }
 0x6f9   : > { %v4831_v44 = vadd.f32 %v7290_v27, %v9351_v42  ;;  %v4822_v29 = vpop.f32.mrb[3].mxu1  ;;  %v6249_v22 = vcombine.low %v5057_v10, %v5057_v10  ;;  %v6250_v53 = vcombine.high %v5057_v10, %v5057_v10  ;;  %v4980_v14 = vmax.f32 %v4828_v3, 0.0 }
 0x6fa   : > { %v4823_v36 = vadd.f32 %v9351_v42, %v4822_v29  ;;  %v6247_v13 = vcombine.low %v5056_v0, %v5056_v0  ;;  %v6248_v18 = vcombine.high %v5056_v0, %v5056_v0  ;;  %7363 = vmatprep.mubr.bf16.mxu0 %v5056_v0  ;;  %v4978_v20 = vmax.f32 %v4820_v55, 0.0 }
 0x6fb   : > { %v4981_v48 = vmax.f32 %v4831_v44, 0.0  ;;  %5328 = vst [vmem:[%s9365_s16 + $0x78] sm:$0xf] %v6249_v22  ;;  %5329 = vst [vmem:[%s9365_s16 + $0x7c] sm:$0xf] %v6250_v53  ;;  %7364 = vmatmul.mubr.bf16.gmra.mrb[252].mxu0 %v5057_v10 }
 0x6fc   : > { %v4979_v4 = vmax.f32 %v4823_v36, 0.0  ;;  %5326 = vst [vmem:[%s9365_s16 + $0x70] sm:$0xf] %v6247_v13  ;;  %5327 = vst [vmem:[%s9365_s16 + $0x74] sm:$0xf] %v6248_v18 }
 0x6fd   : > { %v5027_v31 = vpack.c.bf16 %v4981_v48, %v4980_v14 }
 0x6fe   : > { %v5026_v37 = vpack.c.bf16 %v4979_v4, %v4978_v20  ;;  %v7293_v26 = vpop.f32.mrb[4].mxu1 }
 0x6ff   : > { %v5059_v41 = vadd.bf16 %v5027_v31, %v9262_v7  ;;  %v4844_v43 = vadd.f32 %v7293_v26, %v9351_v42  ;;  %v4835_v17 = vpop.f32.mrb[5].mxu1 }
 0x700   : > { %v4836_v56 = vadd.f32 %v9351_v42, %v4835_v17  ;;  %v7294_v1 = vpop.f32.mrb[6].mxu1  ;;  %v5058_v23 = vadd.bf16 %v5026_v37, %v9266_v52 }
 0x701   : > { %v6253_v19 = vcombine.low %v5059_v41, %v5059_v41  ;;  %v6254_v59 = vcombine.high %v5059_v41, %v5059_v41  ;;  %v4847_v25 = vadd.f32 %v7294_v1, %v9351_v42  ;;  %v4838_v60 = vpop.f32.mrb[7].mxu1  ;;  %v4984_v7 = vmax.f32 %v4844_v43, 0.0 }
 0x702   : > { %v4839_v40 = vadd.f32 %v9351_v42, %v4838_v60  ;;  %v6251_v11 = vcombine.low %v5058_v23, %v5058_v23  ;;  %v6252_v54 = vcombine.high %v5058_v23, %v5058_v23  ;;  %7367 = vmatprep.mubr.bf16.mxu0 %v5058_v23  ;;  %v4982_v15 = vmax.f32 %v4836_v56, 0.0 }
 0x703   : > { %5332 = vst [vmem:[%s9365_s16 + $0x88] sm:$0xf] %v6253_v19  ;;  %5333 = vst [vmem:[%s9365_s16 + $0x8c] sm:$0xf] %v6254_v59  ;;  %v4985_v47 = vmax.f32 %v4847_v25, 0.0  ;;  %7368 = vmatmul.mubr.bf16.gmra.mrb[0].mxu0 %v5059_v41 }
 0x704   : > { %v4983_v16 = vmax.f32 %v4839_v40, 0.0  ;;  %5330 = vst [vmem:[%s9365_s16 + $0x80] sm:$0xf] %v6251_v11  ;;  %5331 = vst [vmem:[%s9365_s16 + $0x84] sm:$0xf] %v6252_v54 }
 0x705   : > { %v5029_v52 = vpack.c.bf16 %v4985_v47, %v4984_v7 }
 0x706   : > { %v5028_v30 = vpack.c.bf16 %v4983_v16, %v4982_v15  ;;  %v7297_v61 = vpop.f32.mrb[8].mxu1 }
 0x707   : > { %v5061_v49 = vadd.bf16 %v5029_v52, %v9274_v45  ;;  %v4860_v38 = vadd.f32 %v7297_v61, %v9351_v42  ;;  %v4851_v33 = vpop.f32.mrb[9].mxu1 }
 0x708   : > { %v4852_v39 = vadd.f32 %v9351_v42, %v4851_v33  ;;  %v7298_v12 = vpop.f32.mrb[10].mxu1  ;;  %v5060_v24 = vadd.bf16 %v5028_v30, %v9278_v57 }
 0x709   : > { %v6257_v46 = vcombine.low %v5061_v49, %v5061_v49  ;;  %v6258_v6 = vcombine.high %v5061_v49, %v5061_v49  ;;  %v4863_v63 = vadd.f32 %v7298_v12, %v9351_v42  ;;  %v4854_v3 = vpop.f32.mrb[11].mxu1  ;;  %v4988_v45 = vmax.f32 %v4860_v38, 0.0 }
 0x70a   : > { %v4855_v2 = vadd.f32 %v9351_v42, %v4854_v3  ;;  %v6255_v10 = vcombine.low %v5060_v24, %v5060_v24  ;;  %v6256_v55 = vcombine.high %v5060_v24, %v5060_v24  ;;  %7371 = vmatprep.mubr.bf16.mxu0 %v5060_v24  ;;  %v4986_v0 = vmax.f32 %v4852_v39, 0.0 }
 0x70b   : > { %5336 = vst [vmem:[%s9365_s16 + $0x98] sm:$0xf] %v6257_v46  ;;  %5337 = vst [vmem:[%s9365_s16 + $0x9c] sm:$0xf] %v6258_v6  ;;  %v4989_v27 = vmax.f32 %v4863_v63, 0.0  ;;  %7372 = vmatmul.mubr.bf16.gmra.mrb[4].mxu0 %v5061_v49 }
 0x70c   : > { %v4987_v44 = vmax.f32 %v4855_v2, 0.0  ;;  %5334 = vst [vmem:[%s9365_s16 + $0x90] sm:$0xf] %v6255_v10  ;;  %5335 = vst [vmem:[%s9365_s16 + $0x94] sm:$0xf] %v6256_v55 }
 0x70d   : > { %v5031_v57 = vpack.c.bf16 %v4989_v27, %v4988_v45 }
 0x70e   : > { %v5030_v29 = vpack.c.bf16 %v4987_v44, %v4986_v0  ;;  %v7301_v22 = vpop.f32.mrb[12].mxu1 }
 0x70f   : > { %v5063_v53 = vadd.bf16 %v5031_v57, %v9286_v9  ;;  %v4876_v36 = vadd.f32 %v7301_v22, %v9351_v42  ;;  %v4867_v13 = vpop.f32.mrb[13].mxu1 }
 0x710   : > { %v4868_v18 = vadd.f32 %v9351_v42, %v4867_v13  ;;  %v7302_v14 = vpop.f32.mrb[14].mxu1  ;;  %v5062_v48 = vadd.bf16 %v5030_v29, %v9290_v50 }
 0x711   : > { %v6261_v20 = vcombine.low %v5063_v53, %v5063_v53  ;;  %v6262_v4 = vcombine.high %v5063_v53, %v5063_v53  ;;  %v4879_v31 = vadd.f32 %v7302_v14, %v9351_v42  ;;  %v4870_v37 = vpop.f32.mrb[15].mxu1  ;;  %v4992_v9 = vmax.f32 %v4876_v36, 0.0 }
 0x712   : > { %v4871_v26 = vadd.f32 %v9351_v42, %v4870_v37  ;;  %v6259_v41 = vcombine.low %v5062_v48, %v5062_v48  ;;  %v6260_v43 = vcombine.high %v5062_v48, %v5062_v48  ;;  %7375 = vmatprep.mubr.bf16.mxu0 %v5062_v48  ;;  %v4990_v56 = vmax.f32 %v4868_v18, 0.0 }
 0x713   : > { %5340 = vst [vmem:[%s9365_s16 + $0xa8] sm:$0xf] %v6261_v20  ;;  %5341 = vst [vmem:[%s9365_s16 + $0xac] sm:$0xf] %v6262_v4  ;;  %v4993_v17 = vmax.f32 %v4879_v31, 0.0  ;;  %7376 = vmatmul.mubr.bf16.gmra.mrb[8].mxu0 %v5063_v53 }
 0x714   : > { %v4991_v1 = vmax.f32 %v4871_v26, 0.0  ;;  %5338 = vst [vmem:[%s9365_s16 + $0xa0] sm:$0xf] %v6259_v41  ;;  %5339 = vst [vmem:[%s9365_s16 + $0xa4] sm:$0xf] %v6260_v43 }
 0x715   : > { %v5033_v50 = vpack.c.bf16 %v4993_v17, %v4992_v9 }
 0x716   : > { %v5032_v23 = vpack.c.bf16 %v4991_v1, %v4990_v56  ;;  %v7305_v19 = vpop.f32.mrb[16].mxu1 }
 0x717   : > { %v5065_v59 = vadd.bf16 %v5033_v50, %v9298_v58  ;;  %v4892_v25 = vadd.f32 %v7305_v19, %v9351_v42  ;;  %v4883_v60 = vpop.f32.mrb[17].mxu1 }
 0x718   : > { %v4884_v40 = vadd.f32 %v9351_v42, %v4883_v60  ;;  %v7306_v11 = vpop.f32.mrb[18].mxu1  ;;  %v5064_v54 = vadd.bf16 %v5032_v23, %v9302_v8 }
 0x719   : > { %v6265_v7 = vcombine.low %v5065_v59, %v5065_v59  ;;  %v6266_v47 = vcombine.high %v5065_v59, %v5065_v59  ;;  %v4895_v15 = vadd.f32 %v7306_v11, %v9351_v42  ;;  %v4886_v16 = vpop.f32.mrb[19].mxu1  ;;  %v4996_v58 = vmax.f32 %v4892_v25, 0.0 }
 0x71a   : > { %v4887_v52 = vadd.f32 %v9351_v42, %v4886_v16  ;;  %v6263_v30 = vcombine.low %v5064_v54, %v5064_v54  ;;  %v6264_v61 = vcombine.high %v5064_v54, %v5064_v54  ;;  %7379 = vmatprep.mubr.bf16.mxu0 %v5064_v54  ;;  %v4994_v38 = vmax.f32 %v4884_v40, 0.0 }
 0x71b   : > { %5344 = vst [vmem:[%s9365_s16 + $0xb8] sm:$0xf] %v6265_v7  ;;  %5345 = vst [vmem:[%s9365_s16 + $0xbc] sm:$0xf] %v6266_v47  ;;  %v4997_v49 = vmax.f32 %v4895_v15, 0.0  ;;  %7380 = vmatmul.mubr.bf16.gmra.mrb[12].mxu0 %v5065_v59 }
 0x71c   : > { %v4995_v33 = vmax.f32 %v4887_v52, 0.0  ;;  %5342 = vst [vmem:[%s9365_s16 + $0xb0] sm:$0xf] %v6263_v30  ;;  %5343 = vst [vmem:[%s9365_s16 + $0xb4] sm:$0xf] %v6264_v61 }
 0x71d   : > { %v5035_v8 = vpack.c.bf16 %v4997_v49, %v4996_v58 }
 0x71e   : > { %v5034_v39 = vpack.c.bf16 %v4995_v33, %v4994_v38  ;;  %v7309_v12 = vpop.f32.mrb[20].mxu1 }
 0x71f   : > { %v5067_v24 = vadd.bf16 %v5035_v8, %v9310_v28  ;;  %v4908_v46 = vadd.f32 %v7309_v12, %v9351_v42  ;;  %v4899_v6 = vpop.f32.mrb[21].mxu1 }
 0x720   : > { %v4900_v63 = vadd.f32 %v9351_v42, %v4899_v6  ;;  %v7310_v3 = vpop.f32.mrb[22].mxu1  ;;  %v5066_v2 = vadd.bf16 %v5034_v39, %v9314_v34 }
 0x721   : > { %v6269_v10 = vcombine.low %v5067_v24, %v5067_v24  ;;  %v6270_v55 = vcombine.high %v5067_v24, %v5067_v24  ;;  %v4911_v45 = vadd.f32 %v7310_v3, %v9351_v42  ;;  %v4902_v27 = vpop.f32.mrb[23].mxu1  ;;  %v5000_v28 = vmax.f32 %v4908_v46, 0.0 }
 0x722   : > { %v4903_v0 = vadd.f32 %v9351_v42, %v4902_v27  ;;  %v6267_v44 = vcombine.low %v5066_v2, %v5066_v2  ;;  %v6268_v57 = vcombine.high %v5066_v2, %v5066_v2  ;;  %7383 = vmatprep.mubr.bf16.mxu0 %v5066_v2  ;;  %v4998_v22 = vmax.f32 %v4900_v63, 0.0 }
 0x723   : > { %5348 = vst [vmem:[%s9365_s16 + $0xc8] sm:$0xf] %v6269_v10  ;;  %5349 = vst [vmem:[%s9365_s16 + $0xcc] sm:$0xf] %v6270_v55  ;;  %v5001_v29 = vmax.f32 %v4911_v45, 0.0  ;;  %7384 = vmatmul.mubr.bf16.gmra.mrb[16].mxu0 %v5067_v24 }
 0x724   : > { %v4999_v53 = vmax.f32 %v4903_v0, 0.0  ;;  %5346 = vst [vmem:[%s9365_s16 + $0xc0] sm:$0xf] %v6267_v44  ;;  %5347 = vst [vmem:[%s9365_s16 + $0xc4] sm:$0xf] %v6268_v57 }
 0x725   : > { %v5037_v34 = vpack.c.bf16 %v5001_v29, %v5000_v28 }
 0x726   : > { %v5036_v36 = vpack.c.bf16 %v4999_v53, %v4998_v22  ;;  %v7313_v13 = vpop.f32.mrb[24].mxu1 }
 0x727   : > { %v5069_v18 = vadd.bf16 %v5037_v34, %v9322_v62  ;;  %v4924_v14 = vadd.f32 %v7313_v13, %v9351_v42  ;;  %v4915_v48 = vpop.f32.mrb[25].mxu1 }
 0x728   : > { %v4916_v20 = vadd.f32 %v9351_v42, %v4915_v48  ;;  %v7314_v4 = vpop.f32.mrb[26].mxu1  ;;  %v5068_v31 = vadd.bf16 %v5036_v36, %v9326_v5 }
 0x729   : > { %v6273_v37 = vcombine.low %v5069_v18, %v5069_v18  ;;  %v6274_v26 = vcombine.high %v5069_v18, %v5069_v18  ;;  %v4927_v41 = vadd.f32 %v7314_v4, %v9351_v42  ;;  %v4918_v43 = vpop.f32.mrb[27].mxu1  ;;  %v5004_v62 = vmax.f32 %v4924_v14, 0.0 }
 0x72a   : > { %v4919_v9 = vadd.f32 %v9351_v42, %v4918_v43  ;;  %v6271_v17 = vcombine.low %v5068_v31, %v5068_v31  ;;  %v6272_v56 = vcombine.high %v5068_v31, %v5068_v31  ;;  %7387 = vmatprep.mubr.bf16.mxu0 %v5068_v31  ;;  %v5002_v50 = vmax.f32 %v4916_v20, 0.0 }
 0x72b   : > { %5352 = vst [vmem:[%s9365_s16 + $0xd8] sm:$0xf] %v6273_v37  ;;  %5353 = vst [vmem:[%s9365_s16 + $0xdc] sm:$0xf] %v6274_v26  ;;  %v5005_v1 = vmax.f32 %v4927_v41, 0.0  ;;  %7388 = vmatmul.mubr.bf16.gmra.mrb[20].mxu0 %v5069_v18 }
 0x72c   : > { %v5003_v23 = vmax.f32 %v4919_v9, 0.0  ;;  %5350 = vst [vmem:[%s9365_s16 + $0xd0] sm:$0xf] %v6271_v17  ;;  %5351 = vst [vmem:[%s9365_s16 + $0xd4] sm:$0xf] %v6272_v56 }
 0x72d   : > { %v5039_v5 = vpack.c.bf16 %v5005_v1, %v5004_v62 }
 0x72e   : > { %v5038_v19 = vpack.c.bf16 %v5003_v23, %v5002_v50  ;;  %v7317_v59 = vpop.f32.mrb[28].mxu1 }
 0x72f   : > { %v5071_v25 = vadd.bf16 %v5039_v5, %v9334_v51  ;;  %v4940_v60 = vadd.f32 %v7317_v59, %v9351_v42  ;;  %v4931_v40 = vpop.f32.mrb[29].mxu1 }
 0x730   : > { %v4932_v11 = vadd.f32 %v9351_v42, %v4931_v40  ;;  %v7318_v54 = vpop.f32.mrb[30].mxu1  ;;  %v5070_v7 = vadd.bf16 %v5038_v19, %v9338_v35 }
 0x731   : > { %v6277_v47 = vcombine.low %v5071_v25, %v5071_v25  ;;  %v6278_v15 = vcombine.high %v5071_v25, %v5071_v25  ;;  %v4943_v16 = vadd.f32 %v7318_v54, %v9351_v42  ;;  %v4934_v52 = vpop.f32.mrb[31].mxu1  ;;  %v5008_v51 = vmax.f32 %v4940_v60, 0.0 }
 0x732   : > { %v4935_v30 = vadd.f32 %v9351_v42, %v4934_v52  ;;  %v6275_v61 = vcombine.low %v5070_v7, %v5070_v7  ;;  %v6276_v58 = vcombine.high %v5070_v7, %v5070_v7  ;;  %7391 = vmatprep.mubr.bf16.mxu0 %v5070_v7  ;;  %v5006_v35 = vmax.f32 %v4932_v11, 0.0 }
 0x733   : > { %5356 = vst [vmem:[%s9365_s16 + $0xe8] sm:$0xf] %v6277_v47  ;;  %5357 = vst [vmem:[%s9365_s16 + $0xec] sm:$0xf] %v6278_v15  ;;  %v5009_v49 = vmax.f32 %v4943_v16, 0.0  ;;  %7392 = vmatmul.mubr.bf16.gmra.mrb[24].mxu0 %v5071_v25 }
 0x734   : > { %v5007_v38 = vmax.f32 %v4935_v30, 0.0  ;;  %5354 = vst [vmem:[%s9365_s16 + $0xe0] sm:$0xf] %v6275_v61  ;;  %5355 = vst [vmem:[%s9365_s16 + $0xe4] sm:$0xf] %v6276_v58 }
 0x735   : > { %v5041_v33 = vpack.c.bf16 %v5009_v49, %v5008_v51 }
 0x736   : > { %v5040_v42 = vpack.c.bf16 %v5007_v38, %v5006_v35 }
 0x737   : > { %v5073_v8 = vadd.bf16 %v5041_v33, %v9343_v21  ;;  %v9527_v21 = vld [vmem:[%s9816_s3 + $0x9] ss:$0 sm:$0xff] }
 0x738   : > { %v5072_v39 = vadd.bf16 %v5040_v42, %v9346_v32 }
 0x739   : > { %v6281_v12 = vcombine.low %v5073_v8, %v5073_v8  ;;  %v6282_v24 = vcombine.high %v5073_v8, %v5073_v8 }
 0x73a   : > { %v6279_v46 = vcombine.low %v5072_v39, %v5072_v39  ;;  %v6280_v6 = vcombine.high %v5072_v39, %v5072_v39  ;;  %7395 = vmatprep.mubr.bf16.mxu0 %v5072_v39 }
 0x73b   : > { %5360 = vst [vmem:[%s9365_s16 + $0xf8] sm:$0xf] %v6281_v12  ;;  %5361 = vst [vmem:[%s9365_s16 + $0xfc] sm:$0xf] %v6282_v24  ;;  %7396 = vmatmul.mubr.bf16.gmra.mrb[28].mxu0 %v5073_v8 }
 0x73c   : > { %5358 = vst [vmem:[%s9365_s16 + $0xf0] sm:$0xf] %v6279_v46  ;;  %5359 = vst [vmem:[%s9365_s16 + $0xf4] sm:$0xf] %v6280_v6 }
 0x796   : > { %v7337_v32 = vpop.f32.mrb[224].mxu0 }
 0x797   : > { %v5478_v63 = vadd.f32 %v7337_v32, %v9527_v21  ;;  %v5469_v3 = vpop.f32.mrb[225].mxu0 }
 0x798   : > { %v5470_v2 = vadd.f32 %v9527_v21, %v5469_v3  ;;  %v7338_v10 = vpop.f32.mrb[226].mxu0 }
 0x799   : > { %7549 = shalt.err (!%p7546_p3)
}
 0x79a   : > { %s7550_s20 = scalar_lea.hbm %s9535_s12, 4096  ;;  %s7554_s10 = scalar_lea.hbm %s9817_s4, 8192 }
 0x79b   : > { %p7551_p4 = scmp.ne.s32.totalorder %s9535_s12, %s7550_s20  ;;  %p7555_p9 = scmp.lt.u32.totalorder %s9535_s12, %s9817_s4 }
 0x79c   : > { %p7556_p10 = scmp.lt.u32.totalorder %s7554_s10, %s7550_s20  ;;  %p7558_p12 = scmp.lt.u32.totalorder %s7550_s20, %s9535_s12 }
 0x79d   : > { %p7552_p7 = pnand %p7551_p4, %p7710_p5 }
 0x79e   : > { %p7557_p11 = por %p7556_p10, %p7555_p9 }
 0x79f   : > { %p7553_p8 = pneg %p7552_p7 }
 0x7a0   : > { %p7559_p13 = por %p7558_p12, %p7557_p11 }
 0x7a2   : > { %p7560_p0 = pnand %p7559_p13, %p7553_p8 }
 0x7a4   : > { %7563 = shalt.err (!%p7560_p0)
}
 0x7a5   : > { %s7634_s14 = smov 64   ;;  %s7635_s17 = smov 4   ;;  %5727 = vst.msk [vmem:[%s9522_s18 + $0x10] sm:$0xff] %vm5724_vm0, %v5478_v63  ;;  %v5481_v55 = vadd.f32 %v7338_v10, %v9527_v21  ;;  %v5472_v45 = vpop.f32.mrb[227].mxu0  ;;  %5725 = vst.msk [vmem:[%s9522_s18] sm:$0xff] %vm5724_vm0, %v5470_v2 }
 0x7a6   : > { %7415 = dma.vmem_to_hbm [thread:$0]  (%p7710_p5), %s9538_s13, 4096, %s9535_s12, %s5790_s9, %s7634_s14, %s7634_s14, %s7635_s17   ;;  %v5473_v27 = vadd.f32 %v9527_v21, %v5472_v45 }
 0x7a7   : > { %s9577_s29 = scalar_lea.hbm %s9818_s5, %s6317_s28  ;;  %s5829_s10 = sshll.u32 %s9365_s16, 4  ;;  %5728 = vst.msk [vmem:[%s9522_s18 + $0x18] sm:$0xff] %vm5724_vm0, %v5481_v55  ;;  %s9583_s10 = int_to_ptr.vmem [resolvable:$true] %s5829_s10 }
 0x7a8   : > { %s5795_s12 = scalar_lea.sflag [#allocation5], %s8282_s26  ;;  %s7564_s13 = scalar_lea.vmem %s9583_s10, 4096 }
 0x7a9   : > { %p7565_p1 = scmp.ne.s32.totalorder %s9583_s10, %s7564_s13  ;;  %s7636_s25 = smov [#allocation4]  }
 0x7aa   : > { %s7568_s28 = sshll.u32 %s7636_s25, 4  ;;  %s7569_s28 = int_to_ptr.vmem [resolvable:$false] %s7568_s28 }
 0x7ab   : > { %p7566_p2 = pnand %p7565_p1, %p7710_p5  ;;  %s7570_s16 = scalar_lea.vmem %s7569_s28, 8192 }
 0x7ac   : > { %p7571_p4 = scmp.lt.s32.totalorder %s9583_s10, %s7569_s28  ;;  %p7572_p7 = scmp.lt.s32.totalorder %s7570_s16, %s7564_s13 }
 0x7ad   : > { %p7567_p3 = pneg %p7566_p2 }
 0x7ae   : > { %p7573_p8 = por %p7572_p7, %p7571_p4 }
 0x7b0   : > { %p7574_p9 = pnand %p7573_p8, %p7567_p3 }
 0x7b2   : > { %7577 = shalt.err (!%p7574_p9)
}
 0x7b3   : > { %s7578_s9 = scalar_lea.hbm %s9577_s29, 4096  ;;  %s7582_s20 = scalar_lea.hbm %s9818_s5, 8192 }
 0x7b4   : > { %p7579_p10 = scmp.ne.s32.totalorder %s9577_s29, %s7578_s9  ;;  %p7583_p13 = scmp.lt.u32.totalorder %s9577_s29, %s9818_s5 }
 0x7b5   : > { %p7584_p0 = scmp.lt.u32.totalorder %s7582_s20, %s7578_s9  ;;  %p7586_p2 = scmp.lt.u32.totalorder %s7578_s9, %s9577_s29 }
 0x7b6   : > { %p7580_p11 = pnand %p7579_p10, %p7710_p5 }
 0x7b7   : > { %p7585_p1 = por %p7584_p0, %p7583_p13 }
 0x7b8   : > { %p7581_p12 = pneg %p7580_p11 }
 0x7b9   : > { %p7587_p3 = por %p7586_p2, %p7585_p1 }
 0x7bb   : > { %p7588_p4 = pnand %p7587_p3, %p7581_p12 }
 0x7bd   : > { %7591 = shalt.err (!%p7588_p4)
}
 0x7be   : > { %7416 = dma.vmem_to_hbm [thread:$0]  (%p7710_p5), %s9583_s10, 4096, %s9577_s29, %s5795_s12, %s7634_s14, %s7634_s14, %s7635_s17   ;;  %v7341_v0 = vpop.f32.mrb[228].mxu0 }
 0x7bf   : > { %5726 = vst.msk [vmem:[%s9522_s18 + $0x8] sm:$0xff] %vm5724_vm0, %v5473_v27  ;;  %v5494_v44 = vadd.f32 %v7341_v0, %v9527_v21  ;;  %v5485_v57 = vpop.f32.mrb[229].mxu0 }
 0x7c0   : > { %v5486_v28 = vadd.f32 %v9527_v21, %v5485_v57  ;;  %v7342_v29 = vpop.f32.mrb[230].mxu0 }
 0x7c1   : > { %5731 = vst.msk [vmem:[%s9522_s18 + $0x30] sm:$0xff] %vm5724_vm0, %v5494_v44  ;;  %v5497_v22 = vadd.f32 %v7342_v29, %v9527_v21  ;;  %v5488_v53 = vpop.f32.mrb[231].mxu0 }
 0x7c2   : > { %5729 = vst.msk [vmem:[%s9522_s18 + $0x20] sm:$0xff] %vm5724_vm0, %v5486_v28  ;;  %v5489_v34 = vadd.f32 %v9527_v21, %v5488_v53  ;;  %v7345_v36 = vpop.f32.mrb[232].mxu0 }
 0x7c3   : > { %5732 = vst.msk [vmem:[%s9522_s18 + $0x38] sm:$0xff] %vm5724_vm0, %v5497_v22  ;;  %v5510_v13 = vadd.f32 %v7345_v36, %v9527_v21  ;;  %v5501_v18 = vpop.f32.mrb[233].mxu0 }
 0x7c4   : > { %5730 = vst.msk [vmem:[%s9522_s18 + $0x28] sm:$0xff] %vm5724_vm0, %v5489_v34  ;;  %v5502_v14 = vadd.f32 %v9527_v21, %v5501_v18  ;;  %v7346_v48 = vpop.f32.mrb[234].mxu0 }
 0x7c5   : > { %5735 = vst.msk [vmem:[%s9522_s18 + $0x50] sm:$0xff] %vm5724_vm0, %v5510_v13  ;;  %v5513_v20 = vadd.f32 %v7346_v48, %v9527_v21  ;;  %v5504_v4 = vpop.f32.mrb[235].mxu0 }
 0x7c6   : > { %5733 = vst.msk [vmem:[%s9522_s18 + $0x40] sm:$0xff] %vm5724_vm0, %v5502_v14  ;;  %v5505_v31 = vadd.f32 %v9527_v21, %v5504_v4  ;;  %v7349_v37 = vpop.f32.mrb[236].mxu0 }
 0x7c7   : > { %5736 = vst.msk [vmem:[%s9522_s18 + $0x58] sm:$0xff] %vm5724_vm0, %v5513_v20  ;;  %v5526_v26 = vadd.f32 %v7349_v37, %v9527_v21  ;;  %v5517_v41 = vpop.f32.mrb[237].mxu0 }
 0x7c8   : > { %5734 = vst.msk [vmem:[%s9522_s18 + $0x48] sm:$0xff] %vm5724_vm0, %v5505_v31  ;;  %v5518_v43 = vadd.f32 %v9527_v21, %v5517_v41  ;;  %v7350_v9 = vpop.f32.mrb[238].mxu0 }
 0x7c9   : > { %5739 = vst.msk [vmem:[%s9522_s18 + $0x70] sm:$0xff] %vm5724_vm0, %v5526_v26  ;;  %v5529_v17 = vadd.f32 %v7350_v9, %v9527_v21  ;;  %v5520_v56 = vpop.f32.mrb[239].mxu0 }
 0x7ca   : > { %5737 = vst.msk [vmem:[%s9522_s18 + $0x60] sm:$0xff] %vm5724_vm0, %v5518_v43  ;;  %v5521_v62 = vadd.f32 %v9527_v21, %v5520_v56  ;;  %v7353_v1 = vpop.f32.mrb[240].mxu0 }
 0x7cb   : > { %5740 = vst.msk [vmem:[%s9522_s18 + $0x78] sm:$0xff] %vm5724_vm0, %v5529_v17  ;;  %v5542_v50 = vadd.f32 %v7353_v1, %v9527_v21  ;;  %v5533_v23 = vpop.f32.mrb[241].mxu0 }
 0x7cc   : > { %5738 = vst.msk [vmem:[%s9522_s18 + $0x68] sm:$0xff] %vm5724_vm0, %v5521_v62  ;;  %v5534_v5 = vadd.f32 %v9527_v21, %v5533_v23  ;;  %v7354_v19 = vpop.f32.mrb[242].mxu0 }
 0x7cd   : > { %5743 = vst.msk [vmem:[%s9522_s18 + $0x90] sm:$0xff] %vm5724_vm0, %v5542_v50  ;;  %v5545_v59 = vadd.f32 %v7354_v19, %v9527_v21  ;;  %v5536_v25 = vpop.f32.mrb[243].mxu0 }
 0x7ce   : > { %5741 = vst.msk [vmem:[%s9522_s18 + $0x80] sm:$0xff] %vm5724_vm0, %v5534_v5  ;;  %v5537_v60 = vadd.f32 %v9527_v21, %v5536_v25  ;;  %v7357_v40 = vpop.f32.mrb[244].mxu0 }
 0x7cf   : > { %5744 = vst.msk [vmem:[%s9522_s18 + $0x98] sm:$0xff] %vm5724_vm0, %v5545_v59  ;;  %v5558_v11 = vadd.f32 %v7357_v40, %v9527_v21  ;;  %v5549_v54 = vpop.f32.mrb[245].mxu0 }
 0x7d0   : > { %5742 = vst.msk [vmem:[%s9522_s18 + $0x88] sm:$0xff] %vm5724_vm0, %v5537_v60  ;;  %v5550_v7 = vadd.f32 %v9527_v21, %v5549_v54  ;;  %v7358_v47 = vpop.f32.mrb[246].mxu0 }
 0x7d1   : > { %5747 = vst.msk [vmem:[%s9522_s18 + $0xb0] sm:$0xff] %vm5724_vm0, %v5558_v11  ;;  %v5561_v15 = vadd.f32 %v7358_v47, %v9527_v21  ;;  %v5552_v16 = vpop.f32.mrb[247].mxu0 }
 0x7d2   : > { %5745 = vst.msk [vmem:[%s9522_s18 + $0xa0] sm:$0xff] %vm5724_vm0, %v5550_v7  ;;  %v5553_v52 = vadd.f32 %v9527_v21, %v5552_v16  ;;  %v7361_v30 = vpop.f32.mrb[248].mxu0 }
 0x7d3   : > { %5748 = vst.msk [vmem:[%s9522_s18 + $0xb8] sm:$0xff] %vm5724_vm0, %v5561_v15  ;;  %v5574_v61 = vadd.f32 %v7361_v30, %v9527_v21  ;;  %v5565_v58 = vpop.f32.mrb[249].mxu0 }
 0x7d4   : > { %5746 = vst.msk [vmem:[%s9522_s18 + $0xa8] sm:$0xff] %vm5724_vm0, %v5553_v52  ;;  %v5566_v51 = vadd.f32 %v9527_v21, %v5565_v58  ;;  %v7362_v49 = vpop.f32.mrb[250].mxu0 }
 0x7d5   : > { %5751 = vst.msk [vmem:[%s9522_s18 + $0xd0] sm:$0xff] %vm5724_vm0, %v5574_v61  ;;  %v5577_v35 = vadd.f32 %v7362_v49, %v9527_v21  ;;  %v5568_v38 = vpop.f32.mrb[251].mxu0 }
 0x7d6   : > { %5749 = vst.msk [vmem:[%s9522_s18 + $0xc0] sm:$0xff] %vm5724_vm0, %v5566_v51  ;;  %v5569_v33 = vadd.f32 %v9527_v21, %v5568_v38  ;;  %v7365_v42 = vpop.f32.mrb[252].mxu0 }
 0x7d7   : > { %5752 = vst.msk [vmem:[%s9522_s18 + $0xd8] sm:$0xff] %vm5724_vm0, %v5577_v35  ;;  %v5590_v8 = vadd.f32 %v7365_v42, %v9527_v21  ;;  %v5581_v39 = vpop.f32.mrb[253].mxu0 }
 0x7d8   : > { %5750 = vst.msk [vmem:[%s9522_s18 + $0xc8] sm:$0xff] %vm5724_vm0, %v5569_v33  ;;  %v5582_v12 = vadd.f32 %v9527_v21, %v5581_v39  ;;  %v7366_v24 = vpop.f32.mrb[254].mxu0 }
 0x7d9   : > { %5755 = vst.msk [vmem:[%s9522_s18 + $0xf0] sm:$0xff] %vm5724_vm0, %v5590_v8  ;;  %v5593_v46 = vadd.f32 %v7366_v24, %v9527_v21  ;;  %v5584_v6 = vpop.f32.mrb[255].mxu0 }
 0x7da   : > { %5753 = vst.msk [vmem:[%s9522_s18 + $0xe0] sm:$0xff] %vm5724_vm0, %v5582_v12  ;;  %v5585_v32 = vadd.f32 %v9527_v21, %v5584_v6  ;;  %v7369_v63 = vpop.f32.mrb[0].mxu0 }
 0x7db   : > { %5756 = vst.msk [vmem:[%s9522_s18 + $0xf8] sm:$0xff] %vm5724_vm0, %v5593_v46  ;;  %v5606_v3 = vadd.f32 %v7369_v63, %v9527_v21  ;;  %v5597_v2 = vpop.f32.mrb[1].mxu0 }
 0x7dc   : > { %5754 = vst.msk [vmem:[%s9522_s18 + $0xe8] sm:$0xff] %vm5724_vm0, %v5585_v32  ;;  %v5598_v10 = vadd.f32 %v9527_v21, %v5597_v2  ;;  %v7370_v55 = vpop.f32.mrb[2].mxu0 }
 0x7dd   : > { %5759 = vst.msk [vmem:[%s9522_s18 + $0x110] sm:$0xff] %vm5724_vm0, %v5606_v3  ;;  %v5609_v45 = vadd.f32 %v7370_v55, %v9527_v21  ;;  %v5600_v27 = vpop.f32.mrb[3].mxu0 }
 0x7de   : > { %5757 = vst.msk [vmem:[%s9522_s18 + $0x100] sm:$0xff] %vm5724_vm0, %v5598_v10  ;;  %v5601_v0 = vadd.f32 %v9527_v21, %v5600_v27  ;;  %v7373_v44 = vpop.f32.mrb[4].mxu0 }
 0x7df   : > { %5760 = vst.msk [vmem:[%s9522_s18 + $0x118] sm:$0xff] %vm5724_vm0, %v5609_v45  ;;  %v5622_v57 = vadd.f32 %v7373_v44, %v9527_v21  ;;  %v5613_v28 = vpop.f32.mrb[5].mxu0 }
 0x7e0   : > { %5758 = vst.msk [vmem:[%s9522_s18 + $0x108] sm:$0xff] %vm5724_vm0, %v5601_v0  ;;  %v5614_v29 = vadd.f32 %v9527_v21, %v5613_v28  ;;  %v7374_v22 = vpop.f32.mrb[6].mxu0 }
 0x7e1   : > { %5763 = vst.msk [vmem:[%s9522_s18 + $0x130] sm:$0xff] %vm5724_vm0, %v5622_v57  ;;  %v5625_v53 = vadd.f32 %v7374_v22, %v9527_v21  ;;  %v5616_v34 = vpop.f32.mrb[7].mxu0 }
 0x7e2   : > { %5761 = vst.msk [vmem:[%s9522_s18 + $0x120] sm:$0xff] %vm5724_vm0, %v5614_v29  ;;  %v5617_v36 = vadd.f32 %v9527_v21, %v5616_v34 }
 0x7e3   : > { %5764 = vst.msk [vmem:[%s9522_s18 + $0x138] sm:$0xff] %vm5724_vm0, %v5625_v53 }
 0x7e4   : > { %5762 = vst.msk [vmem:[%s9522_s18 + $0x128] sm:$0xff] %vm5724_vm0, %v5617_v36 }
 0x7e6   : > { %v7377_v13 = vpop.f32.mrb[8].mxu0 }
 0x7e7   : > { %v5638_v18 = vadd.f32 %v7377_v13, %v9527_v21  ;;  %v5629_v14 = vpop.f32.mrb[9].mxu0 }
 0x7e8   : > { %v5630_v48 = vadd.f32 %v9527_v21, %v5629_v14  ;;  %v7378_v20 = vpop.f32.mrb[10].mxu0 }
 0x7e9   : > { %5767 = vst.msk [vmem:[%s9522_s18 + $0x150] sm:$0xff] %vm5724_vm0, %v5638_v18  ;;  %v5641_v4 = vadd.f32 %v7378_v20, %v9527_v21  ;;  %v5632_v31 = vpop.f32.mrb[11].mxu0 }
 0x7ea   : > { %5765 = vst.msk [vmem:[%s9522_s18 + $0x140] sm:$0xff] %vm5724_vm0, %v5630_v48  ;;  %v5633_v37 = vadd.f32 %v9527_v21, %v5632_v31 }
 0x7eb   : > { %5768 = vst.msk [vmem:[%s9522_s18 + $0x158] sm:$0xff] %vm5724_vm0, %v5641_v4 }
 0x7ec   : > { %5766 = vst.msk [vmem:[%s9522_s18 + $0x148] sm:$0xff] %vm5724_vm0, %v5633_v37 }
 0x7ee   : > { %v7381_v26 = vpop.f32.mrb[12].mxu0 }
 0x7ef   : > { %v5654_v41 = vadd.f32 %v7381_v26, %v9527_v21  ;;  %v5645_v43 = vpop.f32.mrb[13].mxu0 }
 0x7f0   : > { %v5646_v9 = vadd.f32 %v9527_v21, %v5645_v43  ;;  %v7382_v17 = vpop.f32.mrb[14].mxu0 }
 0x7f1   : > { %5771 = vst.msk [vmem:[%s9522_s18 + $0x170] sm:$0xff] %vm5724_vm0, %v5654_v41  ;;  %v5657_v56 = vadd.f32 %v7382_v17, %v9527_v21  ;;  %v5648_v62 = vpop.f32.mrb[15].mxu0 }
 0x7f2   : > { %5769 = vst.msk [vmem:[%s9522_s18 + $0x160] sm:$0xff] %vm5724_vm0, %v5646_v9  ;;  %v5649_v1 = vadd.f32 %v9527_v21, %v5648_v62 }
 0x7f3   : > { %5772 = vst.msk [vmem:[%s9522_s18 + $0x178] sm:$0xff] %vm5724_vm0, %v5657_v56 }
 0x7f4   : > { %5770 = vst.msk [vmem:[%s9522_s18 + $0x168] sm:$0xff] %vm5724_vm0, %v5649_v1 }
 0x7f6   : > { %v7385_v50 = vpop.f32.mrb[16].mxu0 }
 0x7f7   : > { %v5670_v23 = vadd.f32 %v7385_v50, %v9527_v21  ;;  %v5661_v5 = vpop.f32.mrb[17].mxu0 }
 0x7f8   : > { %v5662_v19 = vadd.f32 %v9527_v21, %v5661_v5  ;;  %v7386_v59 = vpop.f32.mrb[18].mxu0 }
 0x7f9   : > { %5775 = vst.msk [vmem:[%s9522_s18 + $0x190] sm:$0xff] %vm5724_vm0, %v5670_v23  ;;  %v5673_v25 = vadd.f32 %v7386_v59, %v9527_v21  ;;  %v5664_v60 = vpop.f32.mrb[19].mxu0 }
 0x7fa   : > { %5773 = vst.msk [vmem:[%s9522_s18 + $0x180] sm:$0xff] %vm5724_vm0, %v5662_v19  ;;  %v5665_v40 = vadd.f32 %v9527_v21, %v5664_v60 }
 0x7fb   : > { %5776 = vst.msk [vmem:[%s9522_s18 + $0x198] sm:$0xff] %vm5724_vm0, %v5673_v25 }
 0x7fc   : > { %5774 = vst.msk [vmem:[%s9522_s18 + $0x188] sm:$0xff] %vm5724_vm0, %v5665_v40 }
 0x7fe   : > { %v7389_v11 = vpop.f32.mrb[20].mxu0 }
 0x7ff   : > { %v5686_v54 = vadd.f32 %v7389_v11, %v9527_v21  ;;  %v5677_v7 = vpop.f32.mrb[21].mxu0 }
 0x800   : > { %v5678_v47 = vadd.f32 %v9527_v21, %v5677_v7  ;;  %v7390_v15 = vpop.f32.mrb[22].mxu0 }
 0x801   : > { %5779 = vst.msk [vmem:[%s9522_s18 + $0x1b0] sm:$0xff] %vm5724_vm0, %v5686_v54  ;;  %v5689_v16 = vadd.f32 %v7390_v15, %v9527_v21  ;;  %v5680_v52 = vpop.f32.mrb[23].mxu0 }
 0x802   : > { %5777 = vst.msk [vmem:[%s9522_s18 + $0x1a0] sm:$0xff] %vm5724_vm0, %v5678_v47  ;;  %v5681_v30 = vadd.f32 %v9527_v21, %v5680_v52 }
 0x803   : > { %5780 = vst.msk [vmem:[%s9522_s18 + $0x1b8] sm:$0xff] %vm5724_vm0, %v5689_v16 }
 0x804   : > { %5778 = vst.msk [vmem:[%s9522_s18 + $0x1a8] sm:$0xff] %vm5724_vm0, %v5681_v30 }
 0x806   : > { %v7393_v61 = vpop.f32.mrb[24].mxu0 }
 0x807   : > { %v5702_v58 = vadd.f32 %v7393_v61, %v9527_v21  ;;  %v5693_v51 = vpop.f32.mrb[25].mxu0 }
 0x808   : > { %v5694_v49 = vadd.f32 %v9527_v21, %v5693_v51  ;;  %v7394_v35 = vpop.f32.mrb[26].mxu0 }
 0x809   : > { %5783 = vst.msk [vmem:[%s9522_s18 + $0x1d0] sm:$0xff] %vm5724_vm0, %v5702_v58  ;;  %v5705_v38 = vadd.f32 %v7394_v35, %v9527_v21  ;;  %v5696_v33 = vpop.f32.mrb[27].mxu0 }
 0x80a   : > { %5781 = vst.msk [vmem:[%s9522_s18 + $0x1c0] sm:$0xff] %vm5724_vm0, %v5694_v49  ;;  %v5697_v42 = vadd.f32 %v9527_v21, %v5696_v33 }
 0x80b   : > { %5784 = vst.msk [vmem:[%s9522_s18 + $0x1d8] sm:$0xff] %vm5724_vm0, %v5705_v38 }
 0x80c   : > { %5782 = vst.msk [vmem:[%s9522_s18 + $0x1c8] sm:$0xff] %vm5724_vm0, %v5697_v42 }
 0x80e   : > { %v7397_v8 = vpop.f32.mrb[28].mxu0 }
 0x80f   : > { %v5718_v39 = vadd.f32 %v7397_v8, %v9527_v21  ;;  %v5709_v12 = vpop.f32.mrb[29].mxu0 }
 0x810   : > { %v5710_v24 = vadd.f32 %v9527_v21, %v5709_v12  ;;  %v7398_v46 = vpop.f32.mrb[30].mxu0 }
 0x811   : > { %5787 = vst.msk [vmem:[%s9522_s18 + $0x1f0] sm:$0xff] %vm5724_vm0, %v5718_v39  ;;  %v5721_v6 = vadd.f32 %v7398_v46, %v9527_v21  ;;  %v5712_v32 = vpop.f32.mrb[31].mxu0 }
 0x812   : > { %5785 = vst.msk [vmem:[%s9522_s18 + $0x1e0] sm:$0xff] %vm5724_vm0, %v5710_v24  ;;  %v5713_v63 = vadd.f32 %v9527_v21, %v5712_v32 }
 0x813   : > { %5788 = vst.msk [vmem:[%s9522_s18 + $0x1f8] sm:$0xff] %vm5724_vm0, %v5721_v6 }
 0x814   : > { %5786 = vst.msk [vmem:[%s9522_s18 + $0x1e8] sm:$0xff] %vm5724_vm0, %v5713_v63 }
 0x815 PF: > { %p7426_p5 = scmp.ge.s32.totalorder %s7630_s24, 2  ;;  %s5848_s7 = sand.u32 1, %s7618_s21  }
 0x816   : > { %s5849_s26 = scalar_lea.sflag [#allocation3], %s5848_s7 }
 0x817   : > { %p7420_p7 = pnand %p7426_p5, %p7714_p6 }
 0x819   : > { %7609 = dma.done.wait (!%p7420_p7), %s5849_s26, 4096  }
 0x81a   : > { %7611 = vsyncadd (!%p7420_p7), %s5849_s26, 4294963200  ;;  %s5858_s14 = scalar_lea.sflag [#allocation5], %s5848_s7 }
 0x81b   : > { %7613 = dma.done.wait (!%p7420_p7), %s5858_s14, 4096  }
 0x81c   : > { %7615 = vsyncadd (!%p7420_p7), %s5858_s14, 4294963200  ;;  %p20_p8 = scmp.ge.s32.totalorder %s7697_s27, 4   ;;  %s9976_s21 = smov %s7622_s22 }
 0x81d   : > { %s9977_s22 = smov %s7626_s23  ;;  %s9978_s23 = smov %s7708_s30 }
 0x81e   : > { %s9979_s24 = smov %s7697_s27  ;;  %22 = sbr.rel (!%p20_p8) target bundleno = 5 (0x5), region = 117 }
 0x825   :  { %5871 = vsyncpa [#allocation3], 1 }
 0x826   :  { %5873 = vsyncpa [#allocation3 + $0x1], 1 }
 0x827   :  { %5874 = vsyncpa [#allocation5], 1 }
 0x828   :  { %5876 = vsyncpa [#allocation5 + $0x1], 1 }

</bundles_post_ra>
